<compile_context>
chip_gen: v6e
topology: v6e:2x2x1
jax: 0.10.0
libtpu: 0.0.40
codegen_flags: <defaults>
</compile_context>

<pallas_src>
import functools

import jax
import jax.numpy as jnp
from jax import lax
from jax.experimental import pallas as pl
from jax.experimental.pallas import tpu as pltpu


# ----------------------------------------------------------------------------
# Fused Pallas kernel: embedding -> stacked biLSTM -> FC -> Softmax(dim=1)
# ----------------------------------------------------------------------------
def _fused_forward_kernel(*refs, n_layers):
    # refs = [tokens, emb,
    #         (wih_cat, whh_f, whh_b, b_cat) * n_layers,
    #         fc_w, fc_b,
    #         out,
    #         xg_scratch, h_scratch]
    tokens_ref, emb_ref = refs[0], refs[1]
    layer_refs = [refs[2 + 4 * l: 2 + 4 * (l + 1)] for l in range(n_layers)]
    fcw_ref = refs[2 + 4 * n_layers]
    fcb_ref = refs[3 + 4 * n_layers]
    out_ref = refs[4 + 4 * n_layers]
    xg_ref = refs[5 + 4 * n_layers]     # (T*B, 8H) hoisted input gates
    h_ref = refs[6 + 4 * n_layers]      # (T*B, 2H) layer output [fwd | bwd]

    T, B, O = out_ref.shape
    V = emb_ref.shape[0]
    H = layer_refs[0][1].shape[0]       # whh_f: (H, 4H)
    H4 = 4 * H

    # ---- Embedding lookup fused as a one-hot matmul (table is VMEM resident).
    tok = tokens_ref[...]                                        # (T*B, 1) int32
    vocab_ids = lax.broadcasted_iota(jnp.int32, (T * B, V), 1)   # (T*B, V)
    onehot = (vocab_ids == tok).astype(jnp.float32)
    x = jnp.dot(onehot, emb_ref[...], preferred_element_type=jnp.float32)

    # ---- Stacked bidirectional LSTM layers (statically unrolled).
    for layer in range(n_layers):
        wih_ref, whhf_ref, whhb_ref, b_ref = layer_refs[layer]
        whh_f = whhf_ref[...]                                    # (H, 4H)
        whh_b = whhb_ref[...]                                    # (H, 4H)

        # Hoisted input projection for BOTH directions in one matmul:
        # columns [0:4H] = fwd gates (i|f|g|o), [4H:8H] = bwd gates.
        xg_ref[...] = (
            jnp.dot(x, wih_ref[...], preferred_element_type=jnp.float32)
            + b_ref[...]
        )

        h_f = jnp.zeros((B, H), jnp.float32)
        c_f = jnp.zeros((B, H), jnp.float32)
        h_b = jnp.zeros((B, H), jnp.float32)
        c_b = jnp.zeros((B, H), jnp.float32)

        # Fully unrolled recurrence: fwd processes step t, bwd step T-1-t.
        for t in range(T):
            tb = T - 1 - t
            g_f = xg_ref[t * B:(t + 1) * B, 0:H4] + jnp.dot(
                h_f, whh_f, preferred_element_type=jnp.float32)
            g_b = xg_ref[tb * B:(tb + 1) * B, H4:2 * H4] + jnp.dot(
                h_b, whh_b, preferred_element_type=jnp.float32)

            # PyTorch gate order [i, f, g, o].
            i_f = jax.nn.sigmoid(g_f[:, 0:H])
            f_f = jax.nn.sigmoid(g_f[:, H:2 * H])
            gg_f = jnp.tanh(g_f[:, 2 * H:3 * H])
            o_f = jax.nn.sigmoid(g_f[:, 3 * H:4 * H])
            c_f = f_f * c_f + i_f * gg_f
            h_f = o_f * jnp.tanh(c_f)

            i_b = jax.nn.sigmoid(g_b[:, 0:H])
            f_b = jax.nn.sigmoid(g_b[:, H:2 * H])
            gg_b = jnp.tanh(g_b[:, 2 * H:3 * H])
            o_b = jax.nn.sigmoid(g_b[:, 3 * H:4 * H])
            c_b = f_b * c_b + i_b * gg_b
            h_b = o_b * jnp.tanh(c_b)

            h_ref[t * B:(t + 1) * B, 0:H] = h_f
            h_ref[tb * B:(tb + 1) * B, H:2 * H] = h_b

        # Next layer consumes the (T*B, 2H) concatenated fwd/bwd states.
        x = h_ref[...]

    # ---- Dropout(p=0.2) in eval mode == identity.
    # ---- FC + Softmax over dim=1 (the BATCH axis), as torch.nn.Softmax(dim=1).
    logits = jnp.dot(x, fcw_ref[...], preferred_element_type=jnp.float32) + fcb_ref[...]
    logits = logits.reshape(T, B, O)
    m = jnp.max(logits, axis=1, keepdims=True)
    e = jnp.exp(logits - m)
    s = jnp.sum(e, axis=1, keepdims=True)
    out_ref[...] = e * pl.reciprocal(s, approx=True)


# ----------------------------------------------------------------------------
# Host-side wrappers
# ----------------------------------------------------------------------------
_VMEM = pl.BlockSpec(memory_space=pltpu.MemorySpace.VMEM)


def pack_params(params, n_layers):
    """Pre-pack weights for the fused kernel (done once, outside the call)."""
    layers = []
    for layer in range(n_layers):
        pf = params[f"l{layer}_fwd"]
        pb = params[f"l{layer}_bwd"]
        layers.append({
            "wih": jnp.concatenate([pf["wih"], pb["wih"]], axis=1),  # (Din, 8H)
            "whh_f": pf["whh"],                                      # (H, 4H)
            "whh_b": pb["whh"],                                      # (H, 4H)
            "b": jnp.concatenate([pf["b"], pb["b"]], axis=1),        # (1, 8H)
        })
    return {
        "embedding": params["embedding"],
        "layers": layers,
        "fc_w": params["fc_w"],
        "fc_b": params["fc_b"],
    }


@jax.jit
def pos_lstm_forward(tokens, packed):
    T, B = tokens.shape
    n_layers = len(packed["layers"])
    H = packed["layers"][0]["whh_f"].shape[0]
    O = packed["fc_w"].shape[1]

    args = [tokens.reshape(T * B, 1), packed["embedding"]]
    for lp in packed["layers"]:
        args += [lp["wih"], lp["whh_f"], lp["whh_b"], lp["b"]]
    args += [packed["fc_w"], packed["fc_b"]]

    kernel = functools.partial(_fused_forward_kernel, n_layers=n_layers)
    return pl.pallas_call(
        kernel,
        out_shape=jax.ShapeDtypeStruct((T, B, O), jnp.float32),
        in_specs=[_VMEM] * len(args),
        out_specs=_VMEM,
        scratch_shapes=[
            pltpu.VMEM((T * B, 8 * H), jnp.float32),  # hoisted input gates
            pltpu.VMEM((T * B, 2 * H), jnp.float32),  # layer output [fwd|bwd]
        ],
    )(*args)


# ----------------------------------------------------------------------------
# Pure-JAX reference (same math) for correctness check
# ----------------------------------------------------------------------------
def _lstm_layer_ref(x, wih, whh, b, reverse):
    T, B, _ = x.shape
    H = whh.shape[0]
    xs = x[::-1] if reverse else x

    def step(carry, x_t):
        h, c = carry
        gates = x_t @ wih + h @ whh + b
        i_g = jax.nn.sigmoid(gates[:, 0:H])
        f_g = jax.nn.sigmoid(gates[:, H:2 * H])
        g_g = jnp.tanh(gates[:, 2 * H:3 * H])
        o_g = jax.nn.sigmoid(gates[:, 3 * H:4 * H])
        c = f_g * c + i_g * g_g
        h = o_g * jnp.tanh(c)
        return (h, c), h

    init = (jnp.zeros((B, H), jnp.float32), jnp.zeros((B, H), jnp.float32))
    _, hs = lax.scan(step, init, xs)
    return hs[::-1] if reverse else hs


def pos_lstm_forward_ref(tokens, params, n_layers):
    x = params["embedding"][tokens]
    for layer in range(n_layers):
        pf = params[f"l{layer}_fwd"]
        pb = params[f"l{layer}_bwd"]
        h_f = _lstm_layer_ref(x, pf["wih"], pf["whh"], pf["b"], reverse=False)
        h_b = _lstm_layer_ref(x, pb["wih"], pb["whh"], pb["b"], reverse=True)
        x = jnp.concatenate([h_f, h_b], axis=-1)
    logits = x @ params["fc_w"] + params["fc_b"]
    return jax.nn.softmax(logits, axis=1)


# ----------------------------------------------------------------------------
# Deterministic parameter construction + driver
# ----------------------------------------------------------------------------
def make_params(key, vocab_size, emb_dim, hidden_dim, n_layers, output_dim):
    params = {}
    k_emb, k_fc_w, k_fc_b, k_rest = jax.random.split(key, 4)
    params["embedding"] = jax.random.normal(
        k_emb, (vocab_size, emb_dim), jnp.float32
    )
    scale = 1.0 / jnp.sqrt(hidden_dim)
    for layer in range(n_layers):
        din = emb_dim if layer == 0 else 2 * hidden_dim
        for direction in ("fwd", "bwd"):
            k_rest, k1, k2, k3 = jax.random.split(k_rest, 4)
            params[f"l{layer}_{direction}"] = {
                "wih": jax.random.uniform(
                    k1, (din, 4 * hidden_dim), jnp.float32, -scale, scale
                ),
                "whh": jax.random.uniform(
                    k2, (hidden_dim, 4 * hidden_dim), jnp.float32, -scale, scale
                ),
                # b_ih + b_hh folded together
                "b": jax.random.uniform(
                    k3, (1, 4 * hidden_dim), jnp.float32, -scale, scale
                ),
            }
    params["fc_w"] = jax.random.uniform(
        k_fc_w, (2 * hidden_dim, output_dim), jnp.float32, -scale, scale
    )
    params["fc_b"] = jax.random.uniform(
        k_fc_b, (1, output_dim), jnp.float32, -scale, scale
    )
    return params


if __name__ == "__main__":
    # Small shapes consistent with the module (bidirectional, 2 layers).
    SEQ_LEN = 8
    BATCH = 2
    EMB_DIM = 100
    HIDDEN = 32
    N_LAYERS = 2
    OUTPUT_DIM = 2
    VOCAB = 50

    key = jax.random.PRNGKey(0)
    k_tok, k_par = jax.random.split(key)
    # tokens: (seq_len, batch) -- torch LSTM default batch_first=False layout
    tokens = jax.random.randint(k_tok, (SEQ_LEN, BATCH), 0, VOCAB, dtype=jnp.int32)
    params = make_params(k_par, VOCAB, EMB_DIM, HIDDEN, N_LAYERS, OUTPUT_DIM)
    packed = pack_params(params, N_LAYERS)

    out = pos_lstm_forward(tokens, packed)
    out = jax.block_until_ready(out)

    ref = jax.block_until_ready(pos_lstm_forward_ref(tokens, params, N_LAYERS))
    assert out.shape == (SEQ_LEN, BATCH, OUTPUT_DIM)
    assert jnp.allclose(out, ref, atol=1e-2, rtol=1e-2)

    # TODO(synk): torch.nn.Softmax(dim=1) normalizes over the BATCH axis of the
    # (T, B, O) tensor; reproduced faithfully here even though it is likely a
    # bug in the original model.
    print("KERNEL_OK")
</pallas_src>

<mosaic_0001>
module attributes {stable_mosaic.version = 11 : i64} {
  func.func @_fused_forward_kernel(%arg0: memref<16x1xi32, #tpu.memory_space<vmem>>, %arg1: memref<50x100xf32, #tpu.memory_space<vmem>>, %arg2: memref<100x256xf32, #tpu.memory_space<vmem>>, %arg3: memref<32x128xf32, #tpu.memory_space<vmem>>, %arg4: memref<32x128xf32, #tpu.memory_space<vmem>>, %arg5: memref<1x256xf32, #tpu.memory_space<vmem>>, %arg6: memref<64x256xf32, #tpu.memory_space<vmem>>, %arg7: memref<32x128xf32, #tpu.memory_space<vmem>>, %arg8: memref<32x128xf32, #tpu.memory_space<vmem>>, %arg9: memref<1x256xf32, #tpu.memory_space<vmem>>, %arg10: memref<64x2xf32, #tpu.memory_space<vmem>>, %arg11: memref<1x2xf32, #tpu.memory_space<vmem>>, %arg12: memref<8x2x2xf32, #tpu.memory_space<vmem>>, %arg13: memref<16x256xf32, #tpu.memory_space<vmem>>, %arg14: memref<16x64xf32, #tpu.memory_space<vmem>>) attributes {dimension_semantics = [], scalar_prefetch = 0 : i64, scratch_operands = 2 : i64, tpu.core_type = #tpu.core_type<tc>} {
    %c0 = arith.constant 0 : index
    %c0_0 = arith.constant 0 : index
    %0 = vector.load %arg0[%c0, %c0_0] : memref<16x1xi32, #tpu.memory_space<vmem>>, vector<16x1xi32>
    %1 = tpu.iota {dimensions = array<i32: 1>} : vector<16x50xi32>
    %2 = vector.broadcast %0 : vector<16x1xi32> to vector<16x50xi32>
    %3 = arith.cmpi eq, %1, %2 : vector<16x50xi32>
    %4 = arith.extui %3 : vector<16x50xi1> to vector<16x50xi32>
    %5 = arith.sitofp %4 : vector<16x50xi32> to vector<16x50xf32>
    %c0_1 = arith.constant 0 : index
    %c0_2 = arith.constant 0 : index
    %6 = vector.load %arg1[%c0_1, %c0_2] : memref<50x100xf32, #tpu.memory_space<vmem>>, vector<50x100xf32>
    %cst = arith.constant dense<0.000000e+00> : vector<16x100xf32>
    %7 = tpu.matmul %5, %6, %cst {dimension_numbers = #tpu.dot_dimension_numbers<[1], [0], [0], [1], [0, 0, 1, 1], [], []>} : vector<16x50xf32>, vector<50x100xf32>, vector<16x100xf32> -> vector<16x100xf32>
    %c0_3 = arith.constant 0 : index
    %c0_4 = arith.constant 0 : index
    %8 = vector.load %arg3[%c0_3, %c0_4] : memref<32x128xf32, #tpu.memory_space<vmem>>, vector<32x128xf32>
    %c0_5 = arith.constant 0 : index
    %c0_6 = arith.constant 0 : index
    %9 = vector.load %arg4[%c0_5, %c0_6] : memref<32x128xf32, #tpu.memory_space<vmem>>, vector<32x128xf32>
    %c0_7 = arith.constant 0 : index
    %c0_8 = arith.constant 0 : index
    %10 = vector.load %arg2[%c0_7, %c0_8] : memref<100x256xf32, #tpu.memory_space<vmem>>, vector<100x256xf32>
    %cst_9 = arith.constant dense<0.000000e+00> : vector<16x256xf32>
    %11 = tpu.matmul %7, %10, %cst_9 {dimension_numbers = #tpu.dot_dimension_numbers<[1], [0], [0], [1], [0, 0, 1, 1], [], []>} : vector<16x100xf32>, vector<100x256xf32>, vector<16x256xf32> -> vector<16x256xf32>
    %c0_10 = arith.constant 0 : index
    %c0_11 = arith.constant 0 : index
    %12 = vector.load %arg5[%c0_10, %c0_11] : memref<1x256xf32, #tpu.memory_space<vmem>>, vector<1x256xf32>
    %13 = vector.broadcast %12 : vector<1x256xf32> to vector<16x256xf32>
    %14 = arith.addf %11, %13 : vector<16x256xf32>
    %c0_12 = arith.constant 0 : index
    %c0_13 = arith.constant 0 : index
    %15 = vector.load %arg13[%c0_12, %c0_13] : memref<16x256xf32, #tpu.memory_space<vmem>>, vector<16x256xf32>
    tpu.vector_store %arg13[%c0_12, %c0_13], %14 {strides = array<i32>} : memref<16x256xf32, #tpu.memory_space<vmem>>, vector<16x256xf32>,
    %cst_14 = arith.constant 0.000000e+00 : f32
    %16 = vector.broadcast %cst_14 : f32 to vector<2x32xf32>
    %cst_15 = arith.constant 0.000000e+00 : f32
    %17 = vector.broadcast %cst_15 : f32 to vector<2x32xf32>
    %cst_16 = arith.constant 0.000000e+00 : f32
    %18 = vector.broadcast %cst_16 : f32 to vector<2x32xf32>
    %cst_17 = arith.constant 0.000000e+00 : f32
    %19 = vector.broadcast %cst_17 : f32 to vector<2x32xf32>
    %c0_18 = arith.constant 0 : index
    %c0_19 = arith.constant 0 : index
    %20 = vector.load %arg13[%c0_18, %c0_19] : memref<16x256xf32, #tpu.memory_space<vmem>>, vector<2x128xf32>
    %cst_20 = arith.constant dense<0.000000e+00> : vector<2x128xf32>
    %21 = tpu.matmul %16, %8, %cst_20 {dimension_numbers = #tpu.dot_dimension_numbers<[1], [0], [0], [1], [0, 0, 1, 1], [], []>} : vector<2x32xf32>, vector<32x128xf32>, vector<2x128xf32> -> vector<2x128xf32>
    %22 = arith.addf %20, %21 : vector<2x128xf32>
    %c14 = arith.constant 14 : index
    %c128 = arith.constant 128 : index
    %23 = vector.load %arg13[%c14, %c128] : memref<16x256xf32, #tpu.memory_space<vmem>>, vector<2x128xf32>
    %cst_21 = arith.constant dense<0.000000e+00> : vector<2x128xf32>
    %24 = tpu.matmul %18, %9, %cst_21 {dimension_numbers = #tpu.dot_dimension_numbers<[1], [0], [0], [1], [0, 0, 1, 1], [], []>} : vector<2x32xf32>, vector<32x128xf32>, vector<2x128xf32> -> vector<2x128xf32>
    %25 = arith.addf %23, %24 : vector<2x128xf32>
    %26 = vector.extract_strided_slice %22 {offsets = [0, 0], sizes = [2, 32], strides = [1, 1]} : vector<2x128xf32> to vector<2x32xf32>
    %27 = arith.negf %26 : vector<2x32xf32>
    %28 = math.exp %27 : vector<2x32xf32>
    %cst_22 = arith.constant 1.000000e+00 : f32
    %29 = vector.broadcast %cst_22 : f32 to vector<2x32xf32>
    %30 = arith.addf %29, %28 : vector<2x32xf32>
    %31 = arith.divf %29, %30 : vector<2x32xf32>
    %32 = vector.extract_strided_slice %22 {offsets = [0, 32], sizes = [2, 32], strides = [1, 1]} : vector<2x128xf32> to vector<2x32xf32>
    %33 = arith.negf %32 : vector<2x32xf32>
    %34 = math.exp %33 : vector<2x32xf32>
    %cst_23 = arith.constant 1.000000e+00 : f32
    %35 = vector.broadcast %cst_23 : f32 to vector<2x32xf32>
    %36 = arith.addf %35, %34 : vector<2x32xf32>
    %37 = arith.divf %35, %36 : vector<2x32xf32>
    %38 = vector.extract_strided_slice %22 {offsets = [0, 64], sizes = [2, 32], strides = [1, 1]} : vector<2x128xf32> to vector<2x32xf32>
    %39 = math.tanh %38 : vector<2x32xf32>
    %40 = vector.extract_strided_slice %22 {offsets = [0, 96], sizes = [2, 32], strides = [1, 1]} : vector<2x128xf32> to vector<2x32xf32>
    %41 = arith.negf %40 : vector<2x32xf32>
    %42 = math.exp %41 : vector<2x32xf32>
    %cst_24 = arith.constant 1.000000e+00 : f32
    %43 = vector.broadcast %cst_24 : f32 to vector<2x32xf32>
    %44 = arith.addf %43, %42 : vector<2x32xf32>
    %45 = arith.divf %43, %44 : vector<2x32xf32>
    %46 = arith.mulf %37, %17 : vector<2x32xf32>
    %47 = arith.mulf %31, %39 : vector<2x32xf32>
    %48 = arith.addf %46, %47 : vector<2x32xf32>
    %49 = math.tanh %48 : vector<2x32xf32>
    %50 = arith.mulf %45, %49 : vector<2x32xf32>
    %51 = vector.extract_strided_slice %25 {offsets = [0, 0], sizes = [2, 32], strides = [1, 1]} : vector<2x128xf32> to vector<2x32xf32>
    %52 = arith.negf %51 : vector<2x32xf32>
    %53 = math.exp %52 : vector<2x32xf32>
    %cst_25 = arith.constant 1.000000e+00 : f32
    %54 = vector.broadcast %cst_25 : f32 to vector<2x32xf32>
    %55 = arith.addf %54, %53 : vector<2x32xf32>
    %56 = arith.divf %54, %55 : vector<2x32xf32>
    %57 = vector.extract_strided_slice %25 {offsets = [0, 32], sizes = [2, 32], strides = [1, 1]} : vector<2x128xf32> to vector<2x32xf32>
    %58 = arith.negf %57 : vector<2x32xf32>
    %59 = math.exp %58 : vector<2x32xf32>
    %cst_26 = arith.constant 1.000000e+00 : f32
    %60 = vector.broadcast %cst_26 : f32 to vector<2x32xf32>
    %61 = arith.addf %60, %59 : vector<2x32xf32>
    %62 = arith.divf %60, %61 : vector<2x32xf32>
    %63 = vector.extract_strided_slice %25 {offsets = [0, 64], sizes = [2, 32], strides = [1, 1]} : vector<2x128xf32> to vector<2x32xf32>
    %64 = math.tanh %63 : vector<2x32xf32>
    %65 = vector.extract_strided_slice %25 {offsets = [0, 96], sizes = [2, 32], strides = [1, 1]} : vector<2x128xf32> to vector<2x32xf32>
    %66 = arith.negf %65 : vector<2x32xf32>
    %67 = math.exp %66 : vector<2x32xf32>
    %cst_27 = arith.constant 1.000000e+00 : f32
    %68 = vector.broadcast %cst_27 : f32 to vector<2x32xf32>
    %69 = arith.addf %68, %67 : vector<2x32xf32>
    %70 = arith.divf %68, %69 : vector<2x32xf32>
    %71 = arith.mulf %62, %19 : vector<2x32xf32>
    %72 = arith.mulf %56, %64 : vector<2x32xf32>
    %73 = arith.addf %71, %72 : vector<2x32xf32>
    %74 = math.tanh %73 : vector<2x32xf32>
    %75 = arith.mulf %70, %74 : vector<2x32xf32>
    %c0_28 = arith.constant 0 : index
    %c0_29 = arith.constant 0 : index
    %76 = vector.load %arg14[%c0_28, %c0_29] : memref<16x64xf32, #tpu.memory_space<vmem>>, vector<2x32xf32>
    tpu.vector_store %arg14[%c0_28, %c0_29], %50 {strides = array<i32>} : memref<16x64xf32, #tpu.memory_space<vmem>>, vector<2x32xf32>,
    %c14_30 = arith.constant 14 : index
    %c32 = arith.constant 32 : index
    %77 = vector.load %arg14[%c14_30, %c32] : memref<16x64xf32, #tpu.memory_space<vmem>>, vector<2x32xf32>
    tpu.vector_store %arg14[%c14_30, %c32], %75 {strides = array<i32>} : memref<16x64xf32, #tpu.memory_space<vmem>>, vector<2x32xf32>,
    %c2 = arith.constant 2 : index
    %c0_31 = arith.constant 0 : index
    %78 = vector.load %arg13[%c2, %c0_31] : memref<16x256xf32, #tpu.memory_space<vmem>>, vector<2x128xf32>
    %cst_32 = arith.constant dense<0.000000e+00> : vector<2x128xf32>
    %79 = tpu.matmul %50, %8, %cst_32 {dimension_numbers = #tpu.dot_dimension_numbers<[1], [0], [0], [1], [0, 0, 1, 1], [], []>} : vector<2x32xf32>, vector<32x128xf32>, vector<2x128xf32> -> vector<2x128xf32>
    %80 = arith.addf %78, %79 : vector<2x128xf32>
    %c12 = arith.constant 12 : index
    %c128_33 = arith.constant 128 : index
    %81 = vector.load %arg13[%c12, %c128_33] : memref<16x256xf32, #tpu.memory_space<vmem>>, vector<2x128xf32>
    %cst_34 = arith.constant dense<0.000000e+00> : vector<2x128xf32>
    %82 = tpu.matmul %75, %9, %cst_34 {dimension_numbers = #tpu.dot_dimension_numbers<[1], [0], [0], [1], [0, 0, 1, 1], [], []>} : vector<2x32xf32>, vector<32x128xf32>, vector<2x128xf32> -> vector<2x128xf32>
    %83 = arith.addf %81, %82 : vector<2x128xf32>
    %84 = vector.extract_strided_slice %80 {offsets = [0, 0], sizes = [2, 32], strides = [1, 1]} : vector<2x128xf32> to vector<2x32xf32>
    %85 = arith.negf %84 : vector<2x32xf32>
    %86 = math.exp %85 : vector<2x32xf32>
    %cst_35 = arith.constant 1.000000e+00 : f32
    %87 = vector.broadcast %cst_35 : f32 to vector<2x32xf32>
    %88 = arith.addf %87, %86 : vector<2x32xf32>
    %89 = arith.divf %87, %88 : vector<2x32xf32>
    %90 = vector.extract_strided_slice %80 {offsets = [0, 32], sizes = [2, 32], strides = [1, 1]} : vector<2x128xf32> to vector<2x32xf32>
    %91 = arith.negf %90 : vector<2x32xf32>
    %92 = math.exp %91 : vector<2x32xf32>
    %cst_36 = arith.constant 1.000000e+00 : f32
    %93 = vector.broadcast %cst_36 : f32 to vector<2x32xf32>
    %94 = arith.addf %93, %92 : vector<2x32xf32>
    %95 = arith.divf %93, %94 : vector<2x32xf32>
    %96 = vector.extract_strided_slice %80 {offsets = [0, 64], sizes = [2, 32], strides = [1, 1]} : vector<2x128xf32> to vector<2x32xf32>
    %97 = math.tanh %96 : vector<2x32xf32>
    %98 = vector.extract_strided_slice %80 {offsets = [0, 96], sizes = [2, 32], strides = [1, 1]} : vector<2x128xf32> to vector<2x32xf32>
    %99 = arith.negf %98 : vector<2x32xf32>
    %100 = math.exp %99 : vector<2x32xf32>
    %cst_37 = arith.constant 1.000000e+00 : f32
    %101 = vector.broadcast %cst_37 : f32 to vector<2x32xf32>
    %102 = arith.addf %101, %100 : vector<2x32xf32>
    %103 = arith.divf %101, %102 : vector<2x32xf32>
    %104 = arith.mulf %95, %48 : vector<2x32xf32>
    %105 = arith.mulf %89, %97 : vector<2x32xf32>
    %106 = arith.addf %104, %105 : vector<2x32xf32>
    %107 = math.tanh %106 : vector<2x32xf32>
    %108 = arith.mulf %103, %107 : vector<2x32xf32>
    %109 = vector.extract_strided_slice %83 {offsets = [0, 0], sizes = [2, 32], strides = [1, 1]} : vector<2x128xf32> to vector<2x32xf32>
    %110 = arith.negf %109 : vector<2x32xf32>
    %111 = math.exp %110 : vector<2x32xf32>
    %cst_38 = arith.constant 1.000000e+00 : f32
    %112 = vector.broadcast %cst_38 : f32 to vector<2x32xf32>
    %113 = arith.addf %112, %111 : vector<2x32xf32>
    %114 = arith.divf %112, %113 : vector<2x32xf32>
    %115 = vector.extract_strided_slice %83 {offsets = [0, 32], sizes = [2, 32], strides = [1, 1]} : vector<2x128xf32> to vector<2x32xf32>
    %116 = arith.negf %115 : vector<2x32xf32>
    %117 = math.exp %116 : vector<2x32xf32>
    %cst_39 = arith.constant 1.000000e+00 : f32
    %118 = vector.broadcast %cst_39 : f32 to vector<2x32xf32>
    %119 = arith.addf %118, %117 : vector<2x32xf32>
    %120 = arith.divf %118, %119 : vector<2x32xf32>
    %121 = vector.extract_strided_slice %83 {offsets = [0, 64], sizes = [2, 32], strides = [1, 1]} : vector<2x128xf32> to vector<2x32xf32>
    %122 = math.tanh %121 : vector<2x32xf32>
    %123 = vector.extract_strided_slice %83 {offsets = [0, 96], sizes = [2, 32], strides = [1, 1]} : vector<2x128xf32> to vector<2x32xf32>
    %124 = arith.negf %123 : vector<2x32xf32>
    %125 = math.exp %124 : vector<2x32xf32>
    %cst_40 = arith.constant 1.000000e+00 : f32
    %126 = vector.broadcast %cst_40 : f32 to vector<2x32xf32>
    %127 = arith.addf %126, %125 : vector<2x32xf32>
    %128 = arith.divf %126, %127 : vector<2x32xf32>
    %129 = arith.mulf %120, %73 : vector<2x32xf32>
    %130 = arith.mulf %114, %122 : vector<2x32xf32>
    %131 = arith.addf %129, %130 : vector<2x32xf32>
    %132 = math.tanh %131 : vector<2x32xf32>
    %133 = arith.mulf %128, %132 : vector<2x32xf32>
    %c2_41 = arith.constant 2 : index
    %c0_42 = arith.constant 0 : index
    %134 = vector.load %arg14[%c2_41, %c0_42] : memref<16x64xf32, #tpu.memory_space<vmem>>, vector<2x32xf32>
    tpu.vector_store %arg14[%c2_41, %c0_42], %108 {strides = array<i32>} : memref<16x64xf32, #tpu.memory_space<vmem>>, vector<2x32xf32>,
    %c12_43 = arith.constant 12 : index
    %c32_44 = arith.constant 32 : index
    %135 = vector.load %arg14[%c12_43, %c32_44] : memref<16x64xf32, #tpu.memory_space<vmem>>, vector<2x32xf32>
    tpu.vector_store %arg14[%c12_43, %c32_44], %133 {strides = array<i32>} : memref<16x64xf32, #tpu.memory_space<vmem>>, vector<2x32xf32>,
    %c4 = arith.constant 4 : index
    %c0_45 = arith.constant 0 : index
    %136 = vector.load %arg13[%c4, %c0_45] : memref<16x256xf32, #tpu.memory_space<vmem>>, vector<2x128xf32>
    %cst_46 = arith.constant dense<0.000000e+00> : vector<2x128xf32>
    %137 = tpu.matmul %108, %8, %cst_46 {dimension_numbers = #tpu.dot_dimension_numbers<[1], [0], [0], [1], [0, 0, 1, 1], [], []>} : vector<2x32xf32>, vector<32x128xf32>, vector<2x128xf32> -> vector<2x128xf32>
    %138 = arith.addf %136, %137 : vector<2x128xf32>
    %c10 = arith.constant 10 : index
    %c128_47 = arith.constant 128 : index
    %139 = vector.load %arg13[%c10, %c128_47] : memref<16x256xf32, #tpu.memory_space<vmem>>, vector<2x128xf32>
    %cst_48 = arith.constant dense<0.000000e+00> : vector<2x128xf32>
    %140 = tpu.matmul %133, %9, %cst_48 {dimension_numbers = #tpu.dot_dimension_numbers<[1], [0], [0], [1], [0, 0, 1, 1], [], []>} : vector<2x32xf32>, vector<32x128xf32>, vector<2x128xf32> -> vector<2x128xf32>
    %141 = arith.addf %139, %140 : vector<2x128xf32>
    %142 = vector.extract_strided_slice %138 {offsets = [0, 0], sizes = [2, 32], strides = [1, 1]} : vector<2x128xf32> to vector<2x32xf32>
    %143 = arith.negf %142 : vector<2x32xf32>
    %144 = math.exp %143 : vector<2x32xf32>
    %cst_49 = arith.constant 1.000000e+00 : f32
    %145 = vector.broadcast %cst_49 : f32 to vector<2x32xf32>
    %146 = arith.addf %145, %144 : vector<2x32xf32>
    %147 = arith.divf %145, %146 : vector<2x32xf32>
    %148 = vector.extract_strided_slice %138 {offsets = [0, 32], sizes = [2, 32], strides = [1, 1]} : vector<2x128xf32> to vector<2x32xf32>
    %149 = arith.negf %148 : vector<2x32xf32>
    %150 = math.exp %149 : vector<2x32xf32>
    %cst_50 = arith.constant 1.000000e+00 : f32
    %151 = vector.broadcast %cst_50 : f32 to vector<2x32xf32>
    %152 = arith.addf %151, %150 : vector<2x32xf32>
    %153 = arith.divf %151, %152 : vector<2x32xf32>
    %154 = vector.extract_strided_slice %138 {offsets = [0, 64], sizes = [2, 32], strides = [1, 1]} : vector<2x128xf32> to vector<2x32xf32>
    %155 = math.tanh %154 : vector<2x32xf32>
    %156 = vector.extract_strided_slice %138 {offsets = [0, 96], sizes = [2, 32], strides = [1, 1]} : vector<2x128xf32> to vector<2x32xf32>
    %157 = arith.negf %156 : vector<2x32xf32>
    %158 = math.exp %157 : vector<2x32xf32>
    %cst_51 = arith.constant 1.000000e+00 : f32
    %159 = vector.broadcast %cst_51 : f32 to vector<2x32xf32>
    %160 = arith.addf %159, %158 : vector<2x32xf32>
    %161 = arith.divf %159, %160 : vector<2x32xf32>
    %162 = arith.mulf %153, %106 : vector<2x32xf32>
    %163 = arith.mulf %147, %155 : vector<2x32xf32>
    %164 = arith.addf %162, %163 : vector<2x32xf32>
    %165 = math.tanh %164 : vector<2x32xf32>
    %166 = arith.mulf %161, %165 : vector<2x32xf32>
    %167 = vector.extract_strided_slice %141 {offsets = [0, 0], sizes = [2, 32], strides = [1, 1]} : vector<2x128xf32> to vector<2x32xf32>
    %168 = arith.negf %167 : vector<2x32xf32>
    %169 = math.exp %168 : vector<2x32xf32>
    %cst_52 = arith.constant 1.000000e+00 : f32
    %170 = vector.broadcast %cst_52 : f32 to vector<2x32xf32>
    %171 = arith.addf %170, %169 : vector<2x32xf32>
    %172 = arith.divf %170, %171 : vector<2x32xf32>
    %173 = vector.extract_strided_slice %141 {offsets = [0, 32], sizes = [2, 32], strides = [1, 1]} : vector<2x128xf32> to vector<2x32xf32>
    %174 = arith.negf %173 : vector<2x32xf32>
    %175 = math.exp %174 : vector<2x32xf32>
    %cst_53 = arith.constant 1.000000e+00 : f32
    %176 = vector.broadcast %cst_53 : f32 to vector<2x32xf32>
    %177 = arith.addf %176, %175 : vector<2x32xf32>
    %178 = arith.divf %176, %177 : vector<2x32xf32>
    %179 = vector.extract_strided_slice %141 {offsets = [0, 64], sizes = [2, 32], strides = [1, 1]} : vector<2x128xf32> to vector<2x32xf32>
    %180 = math.tanh %179 : vector<2x32xf32>
    %181 = vector.extract_strided_slice %141 {offsets = [0, 96], sizes = [2, 32], strides = [1, 1]} : vector<2x128xf32> to vector<2x32xf32>
    %182 = arith.negf %181 : vector<2x32xf32>
    %183 = math.exp %182 : vector<2x32xf32>
    %cst_54 = arith.constant 1.000000e+00 : f32
    %184 = vector.broadcast %cst_54 : f32 to vector<2x32xf32>
    %185 = arith.addf %184, %183 : vector<2x32xf32>
    %186 = arith.divf %184, %185 : vector<2x32xf32>
    %187 = arith.mulf %178, %131 : vector<2x32xf32>
    %188 = arith.mulf %172, %180 : vector<2x32xf32>
    %189 = arith.addf %187, %188 : vector<2x32xf32>
    %190 = math.tanh %189 : vector<2x32xf32>
    %191 = arith.mulf %186, %190 : vector<2x32xf32>
    %c4_55 = arith.constant 4 : index
    %c0_56 = arith.constant 0 : index
    %192 = vector.load %arg14[%c4_55, %c0_56] : memref<16x64xf32, #tpu.memory_space<vmem>>, vector<2x32xf32>
    tpu.vector_store %arg14[%c4_55, %c0_56], %166 {strides = array<i32>} : memref<16x64xf32, #tpu.memory_space<vmem>>, vector<2x32xf32>,
    %c10_57 = arith.constant 10 : index
    %c32_58 = arith.constant 32 : index
    %193 = vector.load %arg14[%c10_57, %c32_58] : memref<16x64xf32, #tpu.memory_space<vmem>>, vector<2x32xf32>
    tpu.vector_store %arg14[%c10_57, %c32_58], %191 {strides = array<i32>} : memref<16x64xf32, #tpu.memory_space<vmem>>, vector<2x32xf32>,
    %c6 = arith.constant 6 : index
    %c0_59 = arith.constant 0 : index
    %194 = vector.load %arg13[%c6, %c0_59] : memref<16x256xf32, #tpu.memory_space<vmem>>, vector<2x128xf32>
    %cst_60 = arith.constant dense<0.000000e+00> : vector<2x128xf32>
    %195 = tpu.matmul %166, %8, %cst_60 {dimension_numbers = #tpu.dot_dimension_numbers<[1], [0], [0], [1], [0, 0, 1, 1], [], []>} : vector<2x32xf32>, vector<32x128xf32>, vector<2x128xf32> -> vector<2x128xf32>
    %196 = arith.addf %194, %195 : vector<2x128xf32>
    %c8 = arith.constant 8 : index
    %c128_61 = arith.constant 128 : index
    %197 = vector.load %arg13[%c8, %c128_61] : memref<16x256xf32, #tpu.memory_space<vmem>>, vector<2x128xf32>
    %cst_62 = arith.constant dense<0.000000e+00> : vector<2x128xf32>
    %198 = tpu.matmul %191, %9, %cst_62 {dimension_numbers = #tpu.dot_dimension_numbers<[1], [0], [0], [1], [0, 0, 1, 1], [], []>} : vector<2x32xf32>, vector<32x128xf32>, vector<2x128xf32> -> vector<2x128xf32>
    %199 = arith.addf %197, %198 : vector<2x128xf32>
    %200 = vector.extract_strided_slice %196 {offsets = [0, 0], sizes = [2, 32], strides = [1, 1]} : vector<2x128xf32> to vector<2x32xf32>
    %201 = arith.negf %200 : vector<2x32xf32>
    %202 = math.exp %201 : vector<2x32xf32>
    %cst_63 = arith.constant 1.000000e+00 : f32
    %203 = vector.broadcast %cst_63 : f32 to vector<2x32xf32>
    %204 = arith.addf %203, %202 : vector<2x32xf32>
    %205 = arith.divf %203, %204 : vector<2x32xf32>
    %206 = vector.extract_strided_slice %196 {offsets = [0, 32], sizes = [2, 32], strides = [1, 1]} : vector<2x128xf32> to vector<2x32xf32>
    %207 = arith.negf %206 : vector<2x32xf32>
    %208 = math.exp %207 : vector<2x32xf32>
    %cst_64 = arith.constant 1.000000e+00 : f32
    %209 = vector.broadcast %cst_64 : f32 to vector<2x32xf32>
    %210 = arith.addf %209, %208 : vector<2x32xf32>
    %211 = arith.divf %209, %210 : vector<2x32xf32>
    %212 = vector.extract_strided_slice %196 {offsets = [0, 64], sizes = [2, 32], strides = [1, 1]} : vector<2x128xf32> to vector<2x32xf32>
    %213 = math.tanh %212 : vector<2x32xf32>
    %214 = vector.extract_strided_slice %196 {offsets = [0, 96], sizes = [2, 32], strides = [1, 1]} : vector<2x128xf32> to vector<2x32xf32>
    %215 = arith.negf %214 : vector<2x32xf32>
    %216 = math.exp %215 : vector<2x32xf32>
    %cst_65 = arith.constant 1.000000e+00 : f32
    %217 = vector.broadcast %cst_65 : f32 to vector<2x32xf32>
    %218 = arith.addf %217, %216 : vector<2x32xf32>
    %219 = arith.divf %217, %218 : vector<2x32xf32>
    %220 = arith.mulf %211, %164 : vector<2x32xf32>
    %221 = arith.mulf %205, %213 : vector<2x32xf32>
    %222 = arith.addf %220, %221 : vector<2x32xf32>
    %223 = math.tanh %222 : vector<2x32xf32>
    %224 = arith.mulf %219, %223 : vector<2x32xf32>
    %225 = vector.extract_strided_slice %199 {offsets = [0, 0], sizes = [2, 32], strides = [1, 1]} : vector<2x128xf32> to vector<2x32xf32>
    %226 = arith.negf %225 : vector<2x32xf32>
    %227 = math.exp %226 : vector<2x32xf32>
    %cst_66 = arith.constant 1.000000e+00 : f32
    %228 = vector.broadcast %cst_66 : f32 to vector<2x32xf32>
    %229 = arith.addf %228, %227 : vector<2x32xf32>
    %230 = arith.divf %228, %229 : vector<2x32xf32>
    %231 = vector.extract_strided_slice %199 {offsets = [0, 32], sizes = [2, 32], strides = [1, 1]} : vector<2x128xf32> to vector<2x32xf32>
    %232 = arith.negf %231 : vector<2x32xf32>
    %233 = math.exp %232 : vector<2x32xf32>
    %cst_67 = arith.constant 1.000000e+00 : f32
    %234 = vector.broadcast %cst_67 : f32 to vector<2x32xf32>
    %235 = arith.addf %234, %233 : vector<2x32xf32>
    %236 = arith.divf %234, %235 : vector<2x32xf32>
    %237 = vector.extract_strided_slice %199 {offsets = [0, 64], sizes = [2, 32], strides = [1, 1]} : vector<2x128xf32> to vector<2x32xf32>
    %238 = math.tanh %237 : vector<2x32xf32>
    %239 = vector.extract_strided_slice %199 {offsets = [0, 96], sizes = [2, 32], strides = [1, 1]} : vector<2x128xf32> to vector<2x32xf32>
    %240 = arith.negf %239 : vector<2x32xf32>
    %241 = math.exp %240 : vector<2x32xf32>
    %cst_68 = arith.constant 1.000000e+00 : f32
    %242 = vector.broadcast %cst_68 : f32 to vector<2x32xf32>
    %243 = arith.addf %242, %241 : vector<2x32xf32>
    %244 = arith.divf %242, %243 : vector<2x32xf32>
    %245 = arith.mulf %236, %189 : vector<2x32xf32>
    %246 = arith.mulf %230, %238 : vector<2x32xf32>
    %247 = arith.addf %245, %246 : vector<2x32xf32>
    %248 = math.tanh %247 : vector<2x32xf32>
    %249 = arith.mulf %244, %248 : vector<2x32xf32>
    %c6_69 = arith.constant 6 : index
    %c0_70 = arith.constant 0 : index
    %250 = vector.load %arg14[%c6_69, %c0_70] : memref<16x64xf32, #tpu.memory_space<vmem>>, vector<2x32xf32>
    tpu.vector_store %arg14[%c6_69, %c0_70], %224 {strides = array<i32>} : memref<16x64xf32, #tpu.memory_space<vmem>>, vector<2x32xf32>,
    %c8_71 = arith.constant 8 : index
    %c32_72 = arith.constant 32 : index
    %251 = vector.load %arg14[%c8_71, %c32_72] : memref<16x64xf32, #tpu.memory_space<vmem>>, vector<2x32xf32>
    tpu.vector_store %arg14[%c8_71, %c32_72], %249 {strides = array<i32>} : memref<16x64xf32, #tpu.memory_space<vmem>>, vector<2x32xf32>,
    %c8_73 = arith.constant 8 : index
    %c0_74 = arith.constant 0 : index
    %252 = vector.load %arg13[%c8_73, %c0_74] : memref<16x256xf32, #tpu.memory_space<vmem>>, vector<2x128xf32>
    %cst_75 = arith.constant dense<0.000000e+00> : vector<2x128xf32>
    %253 = tpu.matmul %224, %8, %cst_75 {dimension_numbers = #tpu.dot_dimension_numbers<[1], [0], [0], [1], [0, 0, 1, 1], [], []>} : vector<2x32xf32>, vector<32x128xf32>, vector<2x128xf32> -> vector<2x128xf32>
    %254 = arith.addf %252, %253 : vector<2x128xf32>
    %c6_76 = arith.constant 6 : index
    %c128_77 = arith.constant 128 : index
    %255 = vector.load %arg13[%c6_76, %c128_77] : memref<16x256xf32, #tpu.memory_space<vmem>>, vector<2x128xf32>
    %cst_78 = arith.constant dense<0.000000e+00> : vector<2x128xf32>
    %256 = tpu.matmul %249, %9, %cst_78 {dimension_numbers = #tpu.dot_dimension_numbers<[1], [0], [0], [1], [0, 0, 1, 1], [], []>} : vector<2x32xf32>, vector<32x128xf32>, vector<2x128xf32> -> vector<2x128xf32>
    %257 = arith.addf %255, %256 : vector<2x128xf32>
    %258 = vector.extract_strided_slice %254 {offsets = [0, 0], sizes = [2, 32], strides = [1, 1]} : vector<2x128xf32> to vector<2x32xf32>
    %259 = arith.negf %258 : vector<2x32xf32>
    %260 = math.exp %259 : vector<2x32xf32>
    %cst_79 = arith.constant 1.000000e+00 : f32
    %261 = vector.broadcast %cst_79 : f32 to vector<2x32xf32>
    %262 = arith.addf %261, %260 : vector<2x32xf32>
    %263 = arith.divf %261, %262 : vector<2x32xf32>
    %264 = vector.extract_strided_slice %254 {offsets = [0, 32], sizes = [2, 32], strides = [1, 1]} : vector<2x128xf32> to vector<2x32xf32>
    %265 = arith.negf %264 : vector<2x32xf32>
    %266 = math.exp %265 : vector<2x32xf32>
    %cst_80 = arith.constant 1.000000e+00 : f32
    %267 = vector.broadcast %cst_80 : f32 to vector<2x32xf32>
    %268 = arith.addf %267, %266 : vector<2x32xf32>
    %269 = arith.divf %267, %268 : vector<2x32xf32>
    %270 = vector.extract_strided_slice %254 {offsets = [0, 64], sizes = [2, 32], strides = [1, 1]} : vector<2x128xf32> to vector<2x32xf32>
    %271 = math.tanh %270 : vector<2x32xf32>
    %272 = vector.extract_strided_slice %254 {offsets = [0, 96], sizes = [2, 32], strides = [1, 1]} : vector<2x128xf32> to vector<2x32xf32>
    %273 = arith.negf %272 : vector<2x32xf32>
    %274 = math.exp %273 : vector<2x32xf32>
    %cst_81 = arith.constant 1.000000e+00 : f32
    %275 = vector.broadcast %cst_81 : f32 to vector<2x32xf32>
    %276 = arith.addf %275, %274 : vector<2x32xf32>
    %277 = arith.divf %275, %276 : vector<2x32xf32>
    %278 = arith.mulf %269, %222 : vector<2x32xf32>
    %279 = arith.mulf %263, %271 : vector<2x32xf32>
    %280 = arith.addf %278, %279 : vector<2x32xf32>
    %281 = math.tanh %280 : vector<2x32xf32>
    %282 = arith.mulf %277, %281 : vector<2x32xf32>
    %283 = vector.extract_strided_slice %257 {offsets = [0, 0], sizes = [2, 32], strides = [1, 1]} : vector<2x128xf32> to vector<2x32xf32>
    %284 = arith.negf %283 : vector<2x32xf32>
    %285 = math.exp %284 : vector<2x32xf32>
    %cst_82 = arith.constant 1.000000e+00 : f32
    %286 = vector.broadcast %cst_82 : f32 to vector<2x32xf32>
    %287 = arith.addf %286, %285 : vector<2x32xf32>
    %288 = arith.divf %286, %287 : vector<2x32xf32>
    %289 = vector.extract_strided_slice %257 {offsets = [0, 32], sizes = [2, 32], strides = [1, 1]} : vector<2x128xf32> to vector<2x32xf32>
    %290 = arith.negf %289 : vector<2x32xf32>
    %291 = math.exp %290 : vector<2x32xf32>
    %cst_83 = arith.constant 1.000000e+00 : f32
    %292 = vector.broadcast %cst_83 : f32 to vector<2x32xf32>
    %293 = arith.addf %292, %291 : vector<2x32xf32>
    %294 = arith.divf %292, %293 : vector<2x32xf32>
    %295 = vector.extract_strided_slice %257 {offsets = [0, 64], sizes = [2, 32], strides = [1, 1]} : vector<2x128xf32> to vector<2x32xf32>
    %296 = math.tanh %295 : vector<2x32xf32>
    %297 = vector.extract_strided_slice %257 {offsets = [0, 96], sizes = [2, 32], strides = [1, 1]} : vector<2x128xf32> to vector<2x32xf32>
    %298 = arith.negf %297 : vector<2x32xf32>
    %299 = math.exp %298 : vector<2x32xf32>
    %cst_84 = arith.constant 1.000000e+00 : f32
    %300 = vector.broadcast %cst_84 : f32 to vector<2x32xf32>
    %301 = arith.addf %300, %299 : vector<2x32xf32>
    %302 = arith.divf %300, %301 : vector<2x32xf32>
    %303 = arith.mulf %294, %247 : vector<2x32xf32>
    %304 = arith.mulf %288, %296 : vector<2x32xf32>
    %305 = arith.addf %303, %304 : vector<2x32xf32>
    %306 = math.tanh %305 : vector<2x32xf32>
    %307 = arith.mulf %302, %306 : vector<2x32xf32>
    %c8_85 = arith.constant 8 : index
    %c0_86 = arith.constant 0 : index
    %308 = vector.load %arg14[%c8_85, %c0_86] : memref<16x64xf32, #tpu.memory_space<vmem>>, vector<2x32xf32>
    tpu.vector_store %arg14[%c8_85, %c0_86], %282 {strides = array<i32>} : memref<16x64xf32, #tpu.memory_space<vmem>>, vector<2x32xf32>,
    %c6_87 = arith.constant 6 : index
    %c32_88 = arith.constant 32 : index
    %309 = vector.load %arg14[%c6_87, %c32_88] : memref<16x64xf32, #tpu.memory_space<vmem>>, vector<2x32xf32>
    tpu.vector_store %arg14[%c6_87, %c32_88], %307 {strides = array<i32>} : memref<16x64xf32, #tpu.memory_space<vmem>>, vector<2x32xf32>,
    %c10_89 = arith.constant 10 : index
    %c0_90 = arith.constant 0 : index
    %310 = vector.load %arg13[%c10_89, %c0_90] : memref<16x256xf32, #tpu.memory_space<vmem>>, vector<2x128xf32>
    %cst_91 = arith.constant dense<0.000000e+00> : vector<2x128xf32>
    %311 = tpu.matmul %282, %8, %cst_91 {dimension_numbers = #tpu.dot_dimension_numbers<[1], [0], [0], [1], [0, 0, 1, 1], [], []>} : vector<2x32xf32>, vector<32x128xf32>, vector<2x128xf32> -> vector<2x128xf32>
    %312 = arith.addf %310, %311 : vector<2x128xf32>
    %c4_92 = arith.constant 4 : index
    %c128_93 = arith.constant 128 : index
    %313 = vector.load %arg13[%c4_92, %c128_93] : memref<16x256xf32, #tpu.memory_space<vmem>>, vector<2x128xf32>
    %cst_94 = arith.constant dense<0.000000e+00> : vector<2x128xf32>
    %314 = tpu.matmul %307, %9, %cst_94 {dimension_numbers = #tpu.dot_dimension_numbers<[1], [0], [0], [1], [0, 0, 1, 1], [], []>} : vector<2x32xf32>, vector<32x128xf32>, vector<2x128xf32> -> vector<2x128xf32>
    %315 = arith.addf %313, %314 : vector<2x128xf32>
    %316 = vector.extract_strided_slice %312 {offsets = [0, 0], sizes = [2, 32], strides = [1, 1]} : vector<2x128xf32> to vector<2x32xf32>
    %317 = arith.negf %316 : vector<2x32xf32>
    %318 = math.exp %317 : vector<2x32xf32>
    %cst_95 = arith.constant 1.000000e+00 : f32
    %319 = vector.broadcast %cst_95 : f32 to vector<2x32xf32>
    %320 = arith.addf %319, %318 : vector<2x32xf32>
    %321 = arith.divf %319, %320 : vector<2x32xf32>
    %322 = vector.extract_strided_slice %312 {offsets = [0, 32], sizes = [2, 32], strides = [1, 1]} : vector<2x128xf32> to vector<2x32xf32>
    %323 = arith.negf %322 : vector<2x32xf32>
    %324 = math.exp %323 : vector<2x32xf32>
    %cst_96 = arith.constant 1.000000e+00 : f32
    %325 = vector.broadcast %cst_96 : f32 to vector<2x32xf32>
    %326 = arith.addf %325, %324 : vector<2x32xf32>
    %327 = arith.divf %325, %326 : vector<2x32xf32>
    %328 = vector.extract_strided_slice %312 {offsets = [0, 64], sizes = [2, 32], strides = [1, 1]} : vector<2x128xf32> to vector<2x32xf32>
    %329 = math.tanh %328 : vector<2x32xf32>
    %330 = vector.extract_strided_slice %312 {offsets = [0, 96], sizes = [2, 32], strides = [1, 1]} : vector<2x128xf32> to vector<2x32xf32>
    %331 = arith.negf %330 : vector<2x32xf32>
    %332 = math.exp %331 : vector<2x32xf32>
    %cst_97 = arith.constant 1.000000e+00 : f32
    %333 = vector.broadcast %cst_97 : f32 to vector<2x32xf32>
    %334 = arith.addf %333, %332 : vector<2x32xf32>
    %335 = arith.divf %333, %334 : vector<2x32xf32>
    %336 = arith.mulf %327, %280 : vector<2x32xf32>
    %337 = arith.mulf %321, %329 : vector<2x32xf32>
    %338 = arith.addf %336, %337 : vector<2x32xf32>
    %339 = math.tanh %338 : vector<2x32xf32>
    %340 = arith.mulf %335, %339 : vector<2x32xf32>
    %341 = vector.extract_strided_slice %315 {offsets = [0, 0], sizes = [2, 32], strides = [1, 1]} : vector<2x128xf32> to vector<2x32xf32>
    %342 = arith.negf %341 : vector<2x32xf32>
    %343 = math.exp %342 : vector<2x32xf32>
    %cst_98 = arith.constant 1.000000e+00 : f32
    %344 = vector.broadcast %cst_98 : f32 to vector<2x32xf32>
    %345 = arith.addf %344, %343 : vector<2x32xf32>
    %346 = arith.divf %344, %345 : vector<2x32xf32>
    %347 = vector.extract_strided_slice %315 {offsets = [0, 32], sizes = [2, 32], strides = [1, 1]} : vector<2x128xf32> to vector<2x32xf32>
    %348 = arith.negf %347 : vector<2x32xf32>
    %349 = math.exp %348 : vector<2x32xf32>
    %cst_99 = arith.constant 1.000000e+00 : f32
    %350 = vector.broadcast %cst_99 : f32 to vector<2x32xf32>
    %351 = arith.addf %350, %349 : vector<2x32xf32>
    %352 = arith.divf %350, %351 : vector<2x32xf32>
    %353 = vector.extract_strided_slice %315 {offsets = [0, 64], sizes = [2, 32], strides = [1, 1]} : vector<2x128xf32> to vector<2x32xf32>
    %354 = math.tanh %353 : vector<2x32xf32>
    %355 = vector.extract_strided_slice %315 {offsets = [0, 96], sizes = [2, 32], strides = [1, 1]} : vector<2x128xf32> to vector<2x32xf32>
    %356 = arith.negf %355 : vector<2x32xf32>
    %357 = math.exp %356 : vector<2x32xf32>
    %cst_100 = arith.constant 1.000000e+00 : f32
    %358 = vector.broadcast %cst_100 : f32 to vector<2x32xf32>
    %359 = arith.addf %358, %357 : vector<2x32xf32>
    %360 = arith.divf %358, %359 : vector<2x32xf32>
    %361 = arith.mulf %352, %305 : vector<2x32xf32>
    %362 = arith.mulf %346, %354 : vector<2x32xf32>
    %363 = arith.addf %361, %362 : vector<2x32xf32>
    %364 = math.tanh %363 : vector<2x32xf32>
    %365 = arith.mulf %360, %364 : vector<2x32xf32>
    %c10_101 = arith.constant 10 : index
    %c0_102 = arith.constant 0 : index
    %366 = vector.load %arg14[%c10_101, %c0_102] : memref<16x64xf32, #tpu.memory_space<vmem>>, vector<2x32xf32>
    tpu.vector_store %arg14[%c10_101, %c0_102], %340 {strides = array<i32>} : memref<16x64xf32, #tpu.memory_space<vmem>>, vector<2x32xf32>,
    %c4_103 = arith.constant 4 : index
    %c32_104 = arith.constant 32 : index
    %367 = vector.load %arg14[%c4_103, %c32_104] : memref<16x64xf32, #tpu.memory_space<vmem>>, vector<2x32xf32>
    tpu.vector_store %arg14[%c4_103, %c32_104], %365 {strides = array<i32>} : memref<16x64xf32, #tpu.memory_space<vmem>>, vector<2x32xf32>,
    %c12_105 = arith.constant 12 : index
    %c0_106 = arith.constant 0 : index
    %368 = vector.load %arg13[%c12_105, %c0_106] : memref<16x256xf32, #tpu.memory_space<vmem>>, vector<2x128xf32>
    %cst_107 = arith.constant dense<0.000000e+00> : vector<2x128xf32>
    %369 = tpu.matmul %340, %8, %cst_107 {dimension_numbers = #tpu.dot_dimension_numbers<[1], [0], [0], [1], [0, 0, 1, 1], [], []>} : vector<2x32xf32>, vector<32x128xf32>, vector<2x128xf32> -> vector<2x128xf32>
    %370 = arith.addf %368, %369 : vector<2x128xf32>
    %c2_108 = arith.constant 2 : index
    %c128_109 = arith.constant 128 : index
    %371 = vector.load %arg13[%c2_108, %c128_109] : memref<16x256xf32, #tpu.memory_space<vmem>>, vector<2x128xf32>
    %cst_110 = arith.constant dense<0.000000e+00> : vector<2x128xf32>
    %372 = tpu.matmul %365, %9, %cst_110 {dimension_numbers = #tpu.dot_dimension_numbers<[1], [0], [0], [1], [0, 0, 1, 1], [], []>} : vector<2x32xf32>, vector<32x128xf32>, vector<2x128xf32> -> vector<2x128xf32>
    %373 = arith.addf %371, %372 : vector<2x128xf32>
    %374 = vector.extract_strided_slice %370 {offsets = [0, 0], sizes = [2, 32], strides = [1, 1]} : vector<2x128xf32> to vector<2x32xf32>
    %375 = arith.negf %374 : vector<2x32xf32>
    %376 = math.exp %375 : vector<2x32xf32>
    %cst_111 = arith.constant 1.000000e+00 : f32
    %377 = vector.broadcast %cst_111 : f32 to vector<2x32xf32>
    %378 = arith.addf %377, %376 : vector<2x32xf32>
    %379 = arith.divf %377, %378 : vector<2x32xf32>
    %380 = vector.extract_strided_slice %370 {offsets = [0, 32], sizes = [2, 32], strides = [1, 1]} : vector<2x128xf32> to vector<2x32xf32>
    %381 = arith.negf %380 : vector<2x32xf32>
    %382 = math.exp %381 : vector<2x32xf32>
    %cst_112 = arith.constant 1.000000e+00 : f32
    %383 = vector.broadcast %cst_112 : f32 to vector<2x32xf32>
    %384 = arith.addf %383, %382 : vector<2x32xf32>
    %385 = arith.divf %383, %384 : vector<2x32xf32>
    %386 = vector.extract_strided_slice %370 {offsets = [0, 64], sizes = [2, 32], strides = [1, 1]} : vector<2x128xf32> to vector<2x32xf32>
    %387 = math.tanh %386 : vector<2x32xf32>
    %388 = vector.extract_strided_slice %370 {offsets = [0, 96], sizes = [2, 32], strides = [1, 1]} : vector<2x128xf32> to vector<2x32xf32>
    %389 = arith.negf %388 : vector<2x32xf32>
    %390 = math.exp %389 : vector<2x32xf32>
    %cst_113 = arith.constant 1.000000e+00 : f32
    %391 = vector.broadcast %cst_113 : f32 to vector<2x32xf32>
    %392 = arith.addf %391, %390 : vector<2x32xf32>
    %393 = arith.divf %391, %392 : vector<2x32xf32>
    %394 = arith.mulf %385, %338 : vector<2x32xf32>
    %395 = arith.mulf %379, %387 : vector<2x32xf32>
    %396 = arith.addf %394, %395 : vector<2x32xf32>
    %397 = math.tanh %396 : vector<2x32xf32>
    %398 = arith.mulf %393, %397 : vector<2x32xf32>
    %399 = vector.extract_strided_slice %373 {offsets = [0, 0], sizes = [2, 32], strides = [1, 1]} : vector<2x128xf32> to vector<2x32xf32>
    %400 = arith.negf %399 : vector<2x32xf32>
    %401 = math.exp %400 : vector<2x32xf32>
    %cst_114 = arith.constant 1.000000e+00 : f32
    %402 = vector.broadcast %cst_114 : f32 to vector<2x32xf32>
    %403 = arith.addf %402, %401 : vector<2x32xf32>
    %404 = arith.divf %402, %403 : vector<2x32xf32>
    %405 = vector.extract_strided_slice %373 {offsets = [0, 32], sizes = [2, 32], strides = [1, 1]} : vector<2x128xf32> to vector<2x32xf32>
    %406 = arith.negf %405 : vector<2x32xf32>
    %407 = math.exp %406 : vector<2x32xf32>
    %cst_115 = arith.constant 1.000000e+00 : f32
    %408 = vector.broadcast %cst_115 : f32 to vector<2x32xf32>
    %409 = arith.addf %408, %407 : vector<2x32xf32>
    %410 = arith.divf %408, %409 : vector<2x32xf32>
    %411 = vector.extract_strided_slice %373 {offsets = [0, 64], sizes = [2, 32], strides = [1, 1]} : vector<2x128xf32> to vector<2x32xf32>
    %412 = math.tanh %411 : vector<2x32xf32>
    %413 = vector.extract_strided_slice %373 {offsets = [0, 96], sizes = [2, 32], strides = [1, 1]} : vector<2x128xf32> to vector<2x32xf32>
    %414 = arith.negf %413 : vector<2x32xf32>
    %415 = math.exp %414 : vector<2x32xf32>
    %cst_116 = arith.constant 1.000000e+00 : f32
    %416 = vector.broadcast %cst_116 : f32 to vector<2x32xf32>
    %417 = arith.addf %416, %415 : vector<2x32xf32>
    %418 = arith.divf %416, %417 : vector<2x32xf32>
    %419 = arith.mulf %410, %363 : vector<2x32xf32>
    %420 = arith.mulf %404, %412 : vector<2x32xf32>
    %421 = arith.addf %419, %420 : vector<2x32xf32>
    %422 = math.tanh %421 : vector<2x32xf32>
    %423 = arith.mulf %418, %422 : vector<2x32xf32>
    %c12_117 = arith.constant 12 : index
    %c0_118 = arith.constant 0 : index
    %424 = vector.load %arg14[%c12_117, %c0_118] : memref<16x64xf32, #tpu.memory_space<vmem>>, vector<2x32xf32>
    tpu.vector_store %arg14[%c12_117, %c0_118], %398 {strides = array<i32>} : memref<16x64xf32, #tpu.memory_space<vmem>>, vector<2x32xf32>,
    %c2_119 = arith.constant 2 : index
    %c32_120 = arith.constant 32 : index
    %425 = vector.load %arg14[%c2_119, %c32_120] : memref<16x64xf32, #tpu.memory_space<vmem>>, vector<2x32xf32>
    tpu.vector_store %arg14[%c2_119, %c32_120], %423 {strides = array<i32>} : memref<16x64xf32, #tpu.memory_space<vmem>>, vector<2x32xf32>,
    %c14_121 = arith.constant 14 : index
    %c0_122 = arith.constant 0 : index
    %426 = vector.load %arg13[%c14_121, %c0_122] : memref<16x256xf32, #tpu.memory_space<vmem>>, vector<2x128xf32>
    %cst_123 = arith.constant dense<0.000000e+00> : vector<2x128xf32>
    %427 = tpu.matmul %398, %8, %cst_123 {dimension_numbers = #tpu.dot_dimension_numbers<[1], [0], [0], [1], [0, 0, 1, 1], [], []>} : vector<2x32xf32>, vector<32x128xf32>, vector<2x128xf32> -> vector<2x128xf32>
    %428 = arith.addf %426, %427 : vector<2x128xf32>
    %c0_124 = arith.constant 0 : index
    %c128_125 = arith.constant 128 : index
    %429 = vector.load %arg13[%c0_124, %c128_125] : memref<16x256xf32, #tpu.memory_space<vmem>>, vector<2x128xf32>
    %cst_126 = arith.constant dense<0.000000e+00> : vector<2x128xf32>
    %430 = tpu.matmul %423, %9, %cst_126 {dimension_numbers = #tpu.dot_dimension_numbers<[1], [0], [0], [1], [0, 0, 1, 1], [], []>} : vector<2x32xf32>, vector<32x128xf32>, vector<2x128xf32> -> vector<2x128xf32>
    %431 = arith.addf %429, %430 : vector<2x128xf32>
    %432 = vector.extract_strided_slice %428 {offsets = [0, 0], sizes = [2, 32], strides = [1, 1]} : vector<2x128xf32> to vector<2x32xf32>
    %433 = arith.negf %432 : vector<2x32xf32>
    %434 = math.exp %433 : vector<2x32xf32>
    %cst_127 = arith.constant 1.000000e+00 : f32
    %435 = vector.broadcast %cst_127 : f32 to vector<2x32xf32>
    %436 = arith.addf %435, %434 : vector<2x32xf32>
    %437 = arith.divf %435, %436 : vector<2x32xf32>
    %438 = vector.extract_strided_slice %428 {offsets = [0, 32], sizes = [2, 32], strides = [1, 1]} : vector<2x128xf32> to vector<2x32xf32>
    %439 = arith.negf %438 : vector<2x32xf32>
    %440 = math.exp %439 : vector<2x32xf32>
    %cst_128 = arith.constant 1.000000e+00 : f32
    %441 = vector.broadcast %cst_128 : f32 to vector<2x32xf32>
    %442 = arith.addf %441, %440 : vector<2x32xf32>
    %443 = arith.divf %441, %442 : vector<2x32xf32>
    %444 = vector.extract_strided_slice %428 {offsets = [0, 64], sizes = [2, 32], strides = [1, 1]} : vector<2x128xf32> to vector<2x32xf32>
    %445 = math.tanh %444 : vector<2x32xf32>
    %446 = vector.extract_strided_slice %428 {offsets = [0, 96], sizes = [2, 32], strides = [1, 1]} : vector<2x128xf32> to vector<2x32xf32>
    %447 = arith.negf %446 : vector<2x32xf32>
    %448 = math.exp %447 : vector<2x32xf32>
    %cst_129 = arith.constant 1.000000e+00 : f32
    %449 = vector.broadcast %cst_129 : f32 to vector<2x32xf32>
    %450 = arith.addf %449, %448 : vector<2x32xf32>
    %451 = arith.divf %449, %450 : vector<2x32xf32>
    %452 = arith.mulf %443, %396 : vector<2x32xf32>
    %453 = arith.mulf %437, %445 : vector<2x32xf32>
    %454 = arith.addf %452, %453 : vector<2x32xf32>
    %455 = math.tanh %454 : vector<2x32xf32>
    %456 = arith.mulf %451, %455 : vector<2x32xf32>
    %457 = vector.extract_strided_slice %431 {offsets = [0, 0], sizes = [2, 32], strides = [1, 1]} : vector<2x128xf32> to vector<2x32xf32>
    %458 = arith.negf %457 : vector<2x32xf32>
    %459 = math.exp %458 : vector<2x32xf32>
    %cst_130 = arith.constant 1.000000e+00 : f32
    %460 = vector.broadcast %cst_130 : f32 to vector<2x32xf32>
    %461 = arith.addf %460, %459 : vector<2x32xf32>
    %462 = arith.divf %460, %461 : vector<2x32xf32>
    %463 = vector.extract_strided_slice %431 {offsets = [0, 32], sizes = [2, 32], strides = [1, 1]} : vector<2x128xf32> to vector<2x32xf32>
    %464 = arith.negf %463 : vector<2x32xf32>
    %465 = math.exp %464 : vector<2x32xf32>
    %cst_131 = arith.constant 1.000000e+00 : f32
    %466 = vector.broadcast %cst_131 : f32 to vector<2x32xf32>
    %467 = arith.addf %466, %465 : vector<2x32xf32>
    %468 = arith.divf %466, %467 : vector<2x32xf32>
    %469 = vector.extract_strided_slice %431 {offsets = [0, 64], sizes = [2, 32], strides = [1, 1]} : vector<2x128xf32> to vector<2x32xf32>
    %470 = math.tanh %469 : vector<2x32xf32>
    %471 = vector.extract_strided_slice %431 {offsets = [0, 96], sizes = [2, 32], strides = [1, 1]} : vector<2x128xf32> to vector<2x32xf32>
    %472 = arith.negf %471 : vector<2x32xf32>
    %473 = math.exp %472 : vector<2x32xf32>
    %cst_132 = arith.constant 1.000000e+00 : f32
    %474 = vector.broadcast %cst_132 : f32 to vector<2x32xf32>
    %475 = arith.addf %474, %473 : vector<2x32xf32>
    %476 = arith.divf %474, %475 : vector<2x32xf32>
    %477 = arith.mulf %468, %421 : vector<2x32xf32>
    %478 = arith.mulf %462, %470 : vector<2x32xf32>
    %479 = arith.addf %477, %478 : vector<2x32xf32>
    %480 = math.tanh %479 : vector<2x32xf32>
    %481 = arith.mulf %476, %480 : vector<2x32xf32>
    %c14_133 = arith.constant 14 : index
    %c0_134 = arith.constant 0 : index
    %482 = vector.load %arg14[%c14_133, %c0_134] : memref<16x64xf32, #tpu.memory_space<vmem>>, vector<2x32xf32>
    tpu.vector_store %arg14[%c14_133, %c0_134], %456 {strides = array<i32>} : memref<16x64xf32, #tpu.memory_space<vmem>>, vector<2x32xf32>,
    %c0_135 = arith.constant 0 : index
    %c32_136 = arith.constant 32 : index
    %483 = vector.load %arg14[%c0_135, %c32_136] : memref<16x64xf32, #tpu.memory_space<vmem>>, vector<2x32xf32>
    tpu.vector_store %arg14[%c0_135, %c32_136], %481 {strides = array<i32>} : memref<16x64xf32, #tpu.memory_space<vmem>>, vector<2x32xf32>,
    %c0_137 = arith.constant 0 : index
    %c0_138 = arith.constant 0 : index
    %484 = vector.load %arg14[%c0_137, %c0_138] : memref<16x64xf32, #tpu.memory_space<vmem>>, vector<16x64xf32>
    %c0_139 = arith.constant 0 : index
    %c0_140 = arith.constant 0 : index
    %485 = vector.load %arg7[%c0_139, %c0_140] : memref<32x128xf32, #tpu.memory_space<vmem>>, vector<32x128xf32>
    %c0_141 = arith.constant 0 : index
    %c0_142 = arith.constant 0 : index
    %486 = vector.load %arg8[%c0_141, %c0_142] : memref<32x128xf32, #tpu.memory_space<vmem>>, vector<32x128xf32>
    %c0_143 = arith.constant 0 : index
    %c0_144 = arith.constant 0 : index
    %487 = vector.load %arg6[%c0_143, %c0_144] : memref<64x256xf32, #tpu.memory_space<vmem>>, vector<64x256xf32>
    %cst_145 = arith.constant dense<0.000000e+00> : vector<16x256xf32>
    %488 = tpu.matmul %484, %487, %cst_145 {dimension_numbers = #tpu.dot_dimension_numbers<[1], [0], [0], [1], [0, 0, 1, 1], [], []>} : vector<16x64xf32>, vector<64x256xf32>, vector<16x256xf32> -> vector<16x256xf32>
    %c0_146 = arith.constant 0 : index
    %c0_147 = arith.constant 0 : index
    %489 = vector.load %arg9[%c0_146, %c0_147] : memref<1x256xf32, #tpu.memory_space<vmem>>, vector<1x256xf32>
    %490 = vector.broadcast %489 : vector<1x256xf32> to vector<16x256xf32>
    %491 = arith.addf %488, %490 : vector<16x256xf32>
    %c0_148 = arith.constant 0 : index
    %c0_149 = arith.constant 0 : index
    %492 = vector.load %arg13[%c0_148, %c0_149] : memref<16x256xf32, #tpu.memory_space<vmem>>, vector<16x256xf32>
    tpu.vector_store %arg13[%c0_148, %c0_149], %491 {strides = array<i32>} : memref<16x256xf32, #tpu.memory_space<vmem>>, vector<16x256xf32>,
    %cst_150 = arith.constant 0.000000e+00 : f32
    %493 = vector.broadcast %cst_150 : f32 to vector<2x32xf32>
    %cst_151 = arith.constant 0.000000e+00 : f32
    %494 = vector.broadcast %cst_151 : f32 to vector<2x32xf32>
    %cst_152 = arith.constant 0.000000e+00 : f32
    %495 = vector.broadcast %cst_152 : f32 to vector<2x32xf32>
    %cst_153 = arith.constant 0.000000e+00 : f32
    %496 = vector.broadcast %cst_153 : f32 to vector<2x32xf32>
    %c0_154 = arith.constant 0 : index
    %c0_155 = arith.constant 0 : index
    %497 = vector.load %arg13[%c0_154, %c0_155] : memref<16x256xf32, #tpu.memory_space<vmem>>, vector<2x128xf32>
    %cst_156 = arith.constant dense<0.000000e+00> : vector<2x128xf32>
    %498 = tpu.matmul %493, %485, %cst_156 {dimension_numbers = #tpu.dot_dimension_numbers<[1], [0], [0], [1], [0, 0, 1, 1], [], []>} : vector<2x32xf32>, vector<32x128xf32>, vector<2x128xf32> -> vector<2x128xf32>
    %499 = arith.addf %497, %498 : vector<2x128xf32>
    %c14_157 = arith.constant 14 : index
    %c128_158 = arith.constant 128 : index
    %500 = vector.load %arg13[%c14_157, %c128_158] : memref<16x256xf32, #tpu.memory_space<vmem>>, vector<2x128xf32>
    %cst_159 = arith.constant dense<0.000000e+00> : vector<2x128xf32>
    %501 = tpu.matmul %495, %486, %cst_159 {dimension_numbers = #tpu.dot_dimension_numbers<[1], [0], [0], [1], [0, 0, 1, 1], [], []>} : vector<2x32xf32>, vector<32x128xf32>, vector<2x128xf32> -> vector<2x128xf32>
    %502 = arith.addf %500, %501 : vector<2x128xf32>
    %503 = vector.extract_strided_slice %499 {offsets = [0, 0], sizes = [2, 32], strides = [1, 1]} : vector<2x128xf32> to vector<2x32xf32>
    %504 = arith.negf %503 : vector<2x32xf32>
    %505 = math.exp %504 : vector<2x32xf32>
    %cst_160 = arith.constant 1.000000e+00 : f32
    %506 = vector.broadcast %cst_160 : f32 to vector<2x32xf32>
    %507 = arith.addf %506, %505 : vector<2x32xf32>
    %508 = arith.divf %506, %507 : vector<2x32xf32>
    %509 = vector.extract_strided_slice %499 {offsets = [0, 32], sizes = [2, 32], strides = [1, 1]} : vector<2x128xf32> to vector<2x32xf32>
    %510 = arith.negf %509 : vector<2x32xf32>
    %511 = math.exp %510 : vector<2x32xf32>
    %cst_161 = arith.constant 1.000000e+00 : f32
    %512 = vector.broadcast %cst_161 : f32 to vector<2x32xf32>
    %513 = arith.addf %512, %511 : vector<2x32xf32>
    %514 = arith.divf %512, %513 : vector<2x32xf32>
    %515 = vector.extract_strided_slice %499 {offsets = [0, 64], sizes = [2, 32], strides = [1, 1]} : vector<2x128xf32> to vector<2x32xf32>
    %516 = math.tanh %515 : vector<2x32xf32>
    %517 = vector.extract_strided_slice %499 {offsets = [0, 96], sizes = [2, 32], strides = [1, 1]} : vector<2x128xf32> to vector<2x32xf32>
    %518 = arith.negf %517 : vector<2x32xf32>
    %519 = math.exp %518 : vector<2x32xf32>
    %cst_162 = arith.constant 1.000000e+00 : f32
    %520 = vector.broadcast %cst_162 : f32 to vector<2x32xf32>
    %521 = arith.addf %520, %519 : vector<2x32xf32>
    %522 = arith.divf %520, %521 : vector<2x32xf32>
    %523 = arith.mulf %514, %494 : vector<2x32xf32>
    %524 = arith.mulf %508, %516 : vector<2x32xf32>
    %525 = arith.addf %523, %524 : vector<2x32xf32>
    %526 = math.tanh %525 : vector<2x32xf32>
    %527 = arith.mulf %522, %526 : vector<2x32xf32>
    %528 = vector.extract_strided_slice %502 {offsets = [0, 0], sizes = [2, 32], strides = [1, 1]} : vector<2x128xf32> to vector<2x32xf32>
    %529 = arith.negf %528 : vector<2x32xf32>
    %530 = math.exp %529 : vector<2x32xf32>
    %cst_163 = arith.constant 1.000000e+00 : f32
    %531 = vector.broadcast %cst_163 : f32 to vector<2x32xf32>
    %532 = arith.addf %531, %530 : vector<2x32xf32>
    %533 = arith.divf %531, %532 : vector<2x32xf32>
    %534 = vector.extract_strided_slice %502 {offsets = [0, 32], sizes = [2, 32], strides = [1, 1]} : vector<2x128xf32> to vector<2x32xf32>
    %535 = arith.negf %534 : vector<2x32xf32>
    %536 = math.exp %535 : vector<2x32xf32>
    %cst_164 = arith.constant 1.000000e+00 : f32
    %537 = vector.broadcast %cst_164 : f32 to vector<2x32xf32>
    %538 = arith.addf %537, %536 : vector<2x32xf32>
    %539 = arith.divf %537, %538 : vector<2x32xf32>
    %540 = vector.extract_strided_slice %502 {offsets = [0, 64], sizes = [2, 32], strides = [1, 1]} : vector<2x128xf32> to vector<2x32xf32>
    %541 = math.tanh %540 : vector<2x32xf32>
    %542 = vector.extract_strided_slice %502 {offsets = [0, 96], sizes = [2, 32], strides = [1, 1]} : vector<2x128xf32> to vector<2x32xf32>
    %543 = arith.negf %542 : vector<2x32xf32>
    %544 = math.exp %543 : vector<2x32xf32>
    %cst_165 = arith.constant 1.000000e+00 : f32
    %545 = vector.broadcast %cst_165 : f32 to vector<2x32xf32>
    %546 = arith.addf %545, %544 : vector<2x32xf32>
    %547 = arith.divf %545, %546 : vector<2x32xf32>
    %548 = arith.mulf %539, %496 : vector<2x32xf32>
    %549 = arith.mulf %533, %541 : vector<2x32xf32>
    %550 = arith.addf %548, %549 : vector<2x32xf32>
    %551 = math.tanh %550 : vector<2x32xf32>
    %552 = arith.mulf %547, %551 : vector<2x32xf32>
    %c0_166 = arith.constant 0 : index
    %c0_167 = arith.constant 0 : index
    %553 = vector.load %arg14[%c0_166, %c0_167] : memref<16x64xf32, #tpu.memory_space<vmem>>, vector<2x32xf32>
    tpu.vector_store %arg14[%c0_166, %c0_167], %527 {strides = array<i32>} : memref<16x64xf32, #tpu.memory_space<vmem>>, vector<2x32xf32>,
    %c14_168 = arith.constant 14 : index
    %c32_169 = arith.constant 32 : index
    %554 = vector.load %arg14[%c14_168, %c32_169] : memref<16x64xf32, #tpu.memory_space<vmem>>, vector<2x32xf32>
    tpu.vector_store %arg14[%c14_168, %c32_169], %552 {strides = array<i32>} : memref<16x64xf32, #tpu.memory_space<vmem>>, vector<2x32xf32>,
    %c2_170 = arith.constant 2 : index
    %c0_171 = arith.constant 0 : index
    %555 = vector.load %arg13[%c2_170, %c0_171] : memref<16x256xf32, #tpu.memory_space<vmem>>, vector<2x128xf32>
    %cst_172 = arith.constant dense<0.000000e+00> : vector<2x128xf32>
    %556 = tpu.matmul %527, %485, %cst_172 {dimension_numbers = #tpu.dot_dimension_numbers<[1], [0], [0], [1], [0, 0, 1, 1], [], []>} : vector<2x32xf32>, vector<32x128xf32>, vector<2x128xf32> -> vector<2x128xf32>
    %557 = arith.addf %555, %556 : vector<2x128xf32>
    %c12_173 = arith.constant 12 : index
    %c128_174 = arith.constant 128 : index
    %558 = vector.load %arg13[%c12_173, %c128_174] : memref<16x256xf32, #tpu.memory_space<vmem>>, vector<2x128xf32>
    %cst_175 = arith.constant dense<0.000000e+00> : vector<2x128xf32>
    %559 = tpu.matmul %552, %486, %cst_175 {dimension_numbers = #tpu.dot_dimension_numbers<[1], [0], [0], [1], [0, 0, 1, 1], [], []>} : vector<2x32xf32>, vector<32x128xf32>, vector<2x128xf32> -> vector<2x128xf32>
    %560 = arith.addf %558, %559 : vector<2x128xf32>
    %561 = vector.extract_strided_slice %557 {offsets = [0, 0], sizes = [2, 32], strides = [1, 1]} : vector<2x128xf32> to vector<2x32xf32>
    %562 = arith.negf %561 : vector<2x32xf32>
    %563 = math.exp %562 : vector<2x32xf32>
    %cst_176 = arith.constant 1.000000e+00 : f32
    %564 = vector.broadcast %cst_176 : f32 to vector<2x32xf32>
    %565 = arith.addf %564, %563 : vector<2x32xf32>
    %566 = arith.divf %564, %565 : vector<2x32xf32>
    %567 = vector.extract_strided_slice %557 {offsets = [0, 32], sizes = [2, 32], strides = [1, 1]} : vector<2x128xf32> to vector<2x32xf32>
    %568 = arith.negf %567 : vector<2x32xf32>
    %569 = math.exp %568 : vector<2x32xf32>
    %cst_177 = arith.constant 1.000000e+00 : f32
    %570 = vector.broadcast %cst_177 : f32 to vector<2x32xf32>
    %571 = arith.addf %570, %569 : vector<2x32xf32>
    %572 = arith.divf %570, %571 : vector<2x32xf32>
    %573 = vector.extract_strided_slice %557 {offsets = [0, 64], sizes = [2, 32], strides = [1, 1]} : vector<2x128xf32> to vector<2x32xf32>
    %574 = math.tanh %573 : vector<2x32xf32>
    %575 = vector.extract_strided_slice %557 {offsets = [0, 96], sizes = [2, 32], strides = [1, 1]} : vector<2x128xf32> to vector<2x32xf32>
    %576 = arith.negf %575 : vector<2x32xf32>
    %577 = math.exp %576 : vector<2x32xf32>
    %cst_178 = arith.constant 1.000000e+00 : f32
    %578 = vector.broadcast %cst_178 : f32 to vector<2x32xf32>
    %579 = arith.addf %578, %577 : vector<2x32xf32>
    %580 = arith.divf %578, %579 : vector<2x32xf32>
    %581 = arith.mulf %572, %525 : vector<2x32xf32>
    %582 = arith.mulf %566, %574 : vector<2x32xf32>
    %583 = arith.addf %581, %582 : vector<2x32xf32>
    %584 = math.tanh %583 : vector<2x32xf32>
    %585 = arith.mulf %580, %584 : vector<2x32xf32>
    %586 = vector.extract_strided_slice %560 {offsets = [0, 0], sizes = [2, 32], strides = [1, 1]} : vector<2x128xf32> to vector<2x32xf32>
    %587 = arith.negf %586 : vector<2x32xf32>
    %588 = math.exp %587 : vector<2x32xf32>
    %cst_179 = arith.constant 1.000000e+00 : f32
    %589 = vector.broadcast %cst_179 : f32 to vector<2x32xf32>
    %590 = arith.addf %589, %588 : vector<2x32xf32>
    %591 = arith.divf %589, %590 : vector<2x32xf32>
    %592 = vector.extract_strided_slice %560 {offsets = [0, 32], sizes = [2, 32], strides = [1, 1]} : vector<2x128xf32> to vector<2x32xf32>
    %593 = arith.negf %592 : vector<2x32xf32>
    %594 = math.exp %593 : vector<2x32xf32>
    %cst_180 = arith.constant 1.000000e+00 : f32
    %595 = vector.broadcast %cst_180 : f32 to vector<2x32xf32>
    %596 = arith.addf %595, %594 : vector<2x32xf32>
    %597 = arith.divf %595, %596 : vector<2x32xf32>
    %598 = vector.extract_strided_slice %560 {offsets = [0, 64], sizes = [2, 32], strides = [1, 1]} : vector<2x128xf32> to vector<2x32xf32>
    %599 = math.tanh %598 : vector<2x32xf32>
    %600 = vector.extract_strided_slice %560 {offsets = [0, 96], sizes = [2, 32], strides = [1, 1]} : vector<2x128xf32> to vector<2x32xf32>
    %601 = arith.negf %600 : vector<2x32xf32>
    %602 = math.exp %601 : vector<2x32xf32>
    %cst_181 = arith.constant 1.000000e+00 : f32
    %603 = vector.broadcast %cst_181 : f32 to vector<2x32xf32>
    %604 = arith.addf %603, %602 : vector<2x32xf32>
    %605 = arith.divf %603, %604 : vector<2x32xf32>
    %606 = arith.mulf %597, %550 : vector<2x32xf32>
    %607 = arith.mulf %591, %599 : vector<2x32xf32>
    %608 = arith.addf %606, %607 : vector<2x32xf32>
    %609 = math.tanh %608 : vector<2x32xf32>
    %610 = arith.mulf %605, %609 : vector<2x32xf32>
    %c2_182 = arith.constant 2 : index
    %c0_183 = arith.constant 0 : index
    %611 = vector.load %arg14[%c2_182, %c0_183] : memref<16x64xf32, #tpu.memory_space<vmem>>, vector<2x32xf32>
    tpu.vector_store %arg14[%c2_182, %c0_183], %585 {strides = array<i32>} : memref<16x64xf32, #tpu.memory_space<vmem>>, vector<2x32xf32>,
    %c12_184 = arith.constant 12 : index
    %c32_185 = arith.constant 32 : index
    %612 = vector.load %arg14[%c12_184, %c32_185] : memref<16x64xf32, #tpu.memory_space<vmem>>, vector<2x32xf32>
    tpu.vector_store %arg14[%c12_184, %c32_185], %610 {strides = array<i32>} : memref<16x64xf32, #tpu.memory_space<vmem>>, vector<2x32xf32>,
    %c4_186 = arith.constant 4 : index
    %c0_187 = arith.constant 0 : index
    %613 = vector.load %arg13[%c4_186, %c0_187] : memref<16x256xf32, #tpu.memory_space<vmem>>, vector<2x128xf32>
    %cst_188 = arith.constant dense<0.000000e+00> : vector<2x128xf32>
    %614 = tpu.matmul %585, %485, %cst_188 {dimension_numbers = #tpu.dot_dimension_numbers<[1], [0], [0], [1], [0, 0, 1, 1], [], []>} : vector<2x32xf32>, vector<32x128xf32>, vector<2x128xf32> -> vector<2x128xf32>
    %615 = arith.addf %613, %614 : vector<2x128xf32>
    %c10_189 = arith.constant 10 : index
    %c128_190 = arith.constant 128 : index
    %616 = vector.load %arg13[%c10_189, %c128_190] : memref<16x256xf32, #tpu.memory_space<vmem>>, vector<2x128xf32>
    %cst_191 = arith.constant dense<0.000000e+00> : vector<2x128xf32>
    %617 = tpu.matmul %610, %486, %cst_191 {dimension_numbers = #tpu.dot_dimension_numbers<[1], [0], [0], [1], [0, 0, 1, 1], [], []>} : vector<2x32xf32>, vector<32x128xf32>, vector<2x128xf32> -> vector<2x128xf32>
    %618 = arith.addf %616, %617 : vector<2x128xf32>
    %619 = vector.extract_strided_slice %615 {offsets = [0, 0], sizes = [2, 32], strides = [1, 1]} : vector<2x128xf32> to vector<2x32xf32>
    %620 = arith.negf %619 : vector<2x32xf32>
    %621 = math.exp %620 : vector<2x32xf32>
    %cst_192 = arith.constant 1.000000e+00 : f32
    %622 = vector.broadcast %cst_192 : f32 to vector<2x32xf32>
    %623 = arith.addf %622, %621 : vector<2x32xf32>
    %624 = arith.divf %622, %623 : vector<2x32xf32>
    %625 = vector.extract_strided_slice %615 {offsets = [0, 32], sizes = [2, 32], strides = [1, 1]} : vector<2x128xf32> to vector<2x32xf32>
    %626 = arith.negf %625 : vector<2x32xf32>
    %627 = math.exp %626 : vector<2x32xf32>
    %cst_193 = arith.constant 1.000000e+00 : f32
    %628 = vector.broadcast %cst_193 : f32 to vector<2x32xf32>
    %629 = arith.addf %628, %627 : vector<2x32xf32>
    %630 = arith.divf %628, %629 : vector<2x32xf32>
    %631 = vector.extract_strided_slice %615 {offsets = [0, 64], sizes = [2, 32], strides = [1, 1]} : vector<2x128xf32> to vector<2x32xf32>
    %632 = math.tanh %631 : vector<2x32xf32>
    %633 = vector.extract_strided_slice %615 {offsets = [0, 96], sizes = [2, 32], strides = [1, 1]} : vector<2x128xf32> to vector<2x32xf32>
    %634 = arith.negf %633 : vector<2x32xf32>
    %635 = math.exp %634 : vector<2x32xf32>
    %cst_194 = arith.constant 1.000000e+00 : f32
    %636 = vector.broadcast %cst_194 : f32 to vector<2x32xf32>
    %637 = arith.addf %636, %635 : vector<2x32xf32>
    %638 = arith.divf %636, %637 : vector<2x32xf32>
    %639 = arith.mulf %630, %583 : vector<2x32xf32>
    %640 = arith.mulf %624, %632 : vector<2x32xf32>
    %641 = arith.addf %639, %640 : vector<2x32xf32>
    %642 = math.tanh %641 : vector<2x32xf32>
    %643 = arith.mulf %638, %642 : vector<2x32xf32>
    %644 = vector.extract_strided_slice %618 {offsets = [0, 0], sizes = [2, 32], strides = [1, 1]} : vector<2x128xf32> to vector<2x32xf32>
    %645 = arith.negf %644 : vector<2x32xf32>
    %646 = math.exp %645 : vector<2x32xf32>
    %cst_195 = arith.constant 1.000000e+00 : f32
    %647 = vector.broadcast %cst_195 : f32 to vector<2x32xf32>
    %648 = arith.addf %647, %646 : vector<2x32xf32>
    %649 = arith.divf %647, %648 : vector<2x32xf32>
    %650 = vector.extract_strided_slice %618 {offsets = [0, 32], sizes = [2, 32], strides = [1, 1]} : vector<2x128xf32> to vector<2x32xf32>
    %651 = arith.negf %650 : vector<2x32xf32>
    %652 = math.exp %651 : vector<2x32xf32>
    %cst_196 = arith.constant 1.000000e+00 : f32
    %653 = vector.broadcast %cst_196 : f32 to vector<2x32xf32>
    %654 = arith.addf %653, %652 : vector<2x32xf32>
    %655 = arith.divf %653, %654 : vector<2x32xf32>
    %656 = vector.extract_strided_slice %618 {offsets = [0, 64], sizes = [2, 32], strides = [1, 1]} : vector<2x128xf32> to vector<2x32xf32>
    %657 = math.tanh %656 : vector<2x32xf32>
    %658 = vector.extract_strided_slice %618 {offsets = [0, 96], sizes = [2, 32], strides = [1, 1]} : vector<2x128xf32> to vector<2x32xf32>
    %659 = arith.negf %658 : vector<2x32xf32>
    %660 = math.exp %659 : vector<2x32xf32>
    %cst_197 = arith.constant 1.000000e+00 : f32
    %661 = vector.broadcast %cst_197 : f32 to vector<2x32xf32>
    %662 = arith.addf %661, %660 : vector<2x32xf32>
    %663 = arith.divf %661, %662 : vector<2x32xf32>
    %664 = arith.mulf %655, %608 : vector<2x32xf32>
    %665 = arith.mulf %649, %657 : vector<2x32xf32>
    %666 = arith.addf %664, %665 : vector<2x32xf32>
    %667 = math.tanh %666 : vector<2x32xf32>
    %668 = arith.mulf %663, %667 : vector<2x32xf32>
    %c4_198 = arith.constant 4 : index
    %c0_199 = arith.constant 0 : index
    %669 = vector.load %arg14[%c4_198, %c0_199] : memref<16x64xf32, #tpu.memory_space<vmem>>, vector<2x32xf32>
    tpu.vector_store %arg14[%c4_198, %c0_199], %643 {strides = array<i32>} : memref<16x64xf32, #tpu.memory_space<vmem>>, vector<2x32xf32>,
    %c10_200 = arith.constant 10 : index
    %c32_201 = arith.constant 32 : index
    %670 = vector.load %arg14[%c10_200, %c32_201] : memref<16x64xf32, #tpu.memory_space<vmem>>, vector<2x32xf32>
    tpu.vector_store %arg14[%c10_200, %c32_201], %668 {strides = array<i32>} : memref<16x64xf32, #tpu.memory_space<vmem>>, vector<2x32xf32>,
    %c6_202 = arith.constant 6 : index
    %c0_203 = arith.constant 0 : index
    %671 = vector.load %arg13[%c6_202, %c0_203] : memref<16x256xf32, #tpu.memory_space<vmem>>, vector<2x128xf32>
    %cst_204 = arith.constant dense<0.000000e+00> : vector<2x128xf32>
    %672 = tpu.matmul %643, %485, %cst_204 {dimension_numbers = #tpu.dot_dimension_numbers<[1], [0], [0], [1], [0, 0, 1, 1], [], []>} : vector<2x32xf32>, vector<32x128xf32>, vector<2x128xf32> -> vector<2x128xf32>
    %673 = arith.addf %671, %672 : vector<2x128xf32>
    %c8_205 = arith.constant 8 : index
    %c128_206 = arith.constant 128 : index
    %674 = vector.load %arg13[%c8_205, %c128_206] : memref<16x256xf32, #tpu.memory_space<vmem>>, vector<2x128xf32>
    %cst_207 = arith.constant dense<0.000000e+00> : vector<2x128xf32>
    %675 = tpu.matmul %668, %486, %cst_207 {dimension_numbers = #tpu.dot_dimension_numbers<[1], [0], [0], [1], [0, 0, 1, 1], [], []>} : vector<2x32xf32>, vector<32x128xf32>, vector<2x128xf32> -> vector<2x128xf32>
    %676 = arith.addf %674, %675 : vector<2x128xf32>
    %677 = vector.extract_strided_slice %673 {offsets = [0, 0], sizes = [2, 32], strides = [1, 1]} : vector<2x128xf32> to vector<2x32xf32>
    %678 = arith.negf %677 : vector<2x32xf32>
    %679 = math.exp %678 : vector<2x32xf32>
    %cst_208 = arith.constant 1.000000e+00 : f32
    %680 = vector.broadcast %cst_208 : f32 to vector<2x32xf32>
    %681 = arith.addf %680, %679 : vector<2x32xf32>
    %682 = arith.divf %680, %681 : vector<2x32xf32>
    %683 = vector.extract_strided_slice %673 {offsets = [0, 32], sizes = [2, 32], strides = [1, 1]} : vector<2x128xf32> to vector<2x32xf32>
    %684 = arith.negf %683 : vector<2x32xf32>
    %685 = math.exp %684 : vector<2x32xf32>
    %cst_209 = arith.constant 1.000000e+00 : f32
    %686 = vector.broadcast %cst_209 : f32 to vector<2x32xf32>
    %687 = arith.addf %686, %685 : vector<2x32xf32>
    %688 = arith.divf %686, %687 : vector<2x32xf32>
    %689 = vector.extract_strided_slice %673 {offsets = [0, 64], sizes = [2, 32], strides = [1, 1]} : vector<2x128xf32> to vector<2x32xf32>
    %690 = math.tanh %689 : vector<2x32xf32>
    %691 = vector.extract_strided_slice %673 {offsets = [0, 96], sizes = [2, 32], strides = [1, 1]} : vector<2x128xf32> to vector<2x32xf32>
    %692 = arith.negf %691 : vector<2x32xf32>
    %693 = math.exp %692 : vector<2x32xf32>
    %cst_210 = arith.constant 1.000000e+00 : f32
    %694 = vector.broadcast %cst_210 : f32 to vector<2x32xf32>
    %695 = arith.addf %694, %693 : vector<2x32xf32>
    %696 = arith.divf %694, %695 : vector<2x32xf32>
    %697 = arith.mulf %688, %641 : vector<2x32xf32>
    %698 = arith.mulf %682, %690 : vector<2x32xf32>
    %699 = arith.addf %697, %698 : vector<2x32xf32>
    %700 = math.tanh %699 : vector<2x32xf32>
    %701 = arith.mulf %696, %700 : vector<2x32xf32>
    %702 = vector.extract_strided_slice %676 {offsets = [0, 0], sizes = [2, 32], strides = [1, 1]} : vector<2x128xf32> to vector<2x32xf32>
    %703 = arith.negf %702 : vector<2x32xf32>
    %704 = math.exp %703 : vector<2x32xf32>
    %cst_211 = arith.constant 1.000000e+00 : f32
    %705 = vector.broadcast %cst_211 : f32 to vector<2x32xf32>
    %706 = arith.addf %705, %704 : vector<2x32xf32>
    %707 = arith.divf %705, %706 : vector<2x32xf32>
    %708 = vector.extract_strided_slice %676 {offsets = [0, 32], sizes = [2, 32], strides = [1, 1]} : vector<2x128xf32> to vector<2x32xf32>
    %709 = arith.negf %708 : vector<2x32xf32>
    %710 = math.exp %709 : vector<2x32xf32>
    %cst_212 = arith.constant 1.000000e+00 : f32
    %711 = vector.broadcast %cst_212 : f32 to vector<2x32xf32>
    %712 = arith.addf %711, %710 : vector<2x32xf32>
    %713 = arith.divf %711, %712 : vector<2x32xf32>
    %714 = vector.extract_strided_slice %676 {offsets = [0, 64], sizes = [2, 32], strides = [1, 1]} : vector<2x128xf32> to vector<2x32xf32>
    %715 = math.tanh %714 : vector<2x32xf32>
    %716 = vector.extract_strided_slice %676 {offsets = [0, 96], sizes = [2, 32], strides = [1, 1]} : vector<2x128xf32> to vector<2x32xf32>
    %717 = arith.negf %716 : vector<2x32xf32>
    %718 = math.exp %717 : vector<2x32xf32>
    %cst_213 = arith.constant 1.000000e+00 : f32
    %719 = vector.broadcast %cst_213 : f32 to vector<2x32xf32>
    %720 = arith.addf %719, %718 : vector<2x32xf32>
    %721 = arith.divf %719, %720 : vector<2x32xf32>
    %722 = arith.mulf %713, %666 : vector<2x32xf32>
    %723 = arith.mulf %707, %715 : vector<2x32xf32>
    %724 = arith.addf %722, %723 : vector<2x32xf32>
    %725 = math.tanh %724 : vector<2x32xf32>
    %726 = arith.mulf %721, %725 : vector<2x32xf32>
    %c6_214 = arith.constant 6 : index
    %c0_215 = arith.constant 0 : index
    %727 = vector.load %arg14[%c6_214, %c0_215] : memref<16x64xf32, #tpu.memory_space<vmem>>, vector<2x32xf32>
    tpu.vector_store %arg14[%c6_214, %c0_215], %701 {strides = array<i32>} : memref<16x64xf32, #tpu.memory_space<vmem>>, vector<2x32xf32>,
    %c8_216 = arith.constant 8 : index
    %c32_217 = arith.constant 32 : index
    %728 = vector.load %arg14[%c8_216, %c32_217] : memref<16x64xf32, #tpu.memory_space<vmem>>, vector<2x32xf32>
    tpu.vector_store %arg14[%c8_216, %c32_217], %726 {strides = array<i32>} : memref<16x64xf32, #tpu.memory_space<vmem>>, vector<2x32xf32>,
    %c8_218 = arith.constant 8 : index
    %c0_219 = arith.constant 0 : index
    %729 = vector.load %arg13[%c8_218, %c0_219] : memref<16x256xf32, #tpu.memory_space<vmem>>, vector<2x128xf32>
    %cst_220 = arith.constant dense<0.000000e+00> : vector<2x128xf32>
    %730 = tpu.matmul %701, %485, %cst_220 {dimension_numbers = #tpu.dot_dimension_numbers<[1], [0], [0], [1], [0, 0, 1, 1], [], []>} : vector<2x32xf32>, vector<32x128xf32>, vector<2x128xf32> -> vector<2x128xf32>
    %731 = arith.addf %729, %730 : vector<2x128xf32>
    %c6_221 = arith.constant 6 : index
    %c128_222 = arith.constant 128 : index
    %732 = vector.load %arg13[%c6_221, %c128_222] : memref<16x256xf32, #tpu.memory_space<vmem>>, vector<2x128xf32>
    %cst_223 = arith.constant dense<0.000000e+00> : vector<2x128xf32>
    %733 = tpu.matmul %726, %486, %cst_223 {dimension_numbers = #tpu.dot_dimension_numbers<[1], [0], [0], [1], [0, 0, 1, 1], [], []>} : vector<2x32xf32>, vector<32x128xf32>, vector<2x128xf32> -> vector<2x128xf32>
    %734 = arith.addf %732, %733 : vector<2x128xf32>
    %735 = vector.extract_strided_slice %731 {offsets = [0, 0], sizes = [2, 32], strides = [1, 1]} : vector<2x128xf32> to vector<2x32xf32>
    %736 = arith.negf %735 : vector<2x32xf32>
    %737 = math.exp %736 : vector<2x32xf32>
    %cst_224 = arith.constant 1.000000e+00 : f32
    %738 = vector.broadcast %cst_224 : f32 to vector<2x32xf32>
    %739 = arith.addf %738, %737 : vector<2x32xf32>
    %740 = arith.divf %738, %739 : vector<2x32xf32>
    %741 = vector.extract_strided_slice %731 {offsets = [0, 32], sizes = [2, 32], strides = [1, 1]} : vector<2x128xf32> to vector<2x32xf32>
    %742 = arith.negf %741 : vector<2x32xf32>
    %743 = math.exp %742 : vector<2x32xf32>
    %cst_225 = arith.constant 1.000000e+00 : f32
    %744 = vector.broadcast %cst_225 : f32 to vector<2x32xf32>
    %745 = arith.addf %744, %743 : vector<2x32xf32>
    %746 = arith.divf %744, %745 : vector<2x32xf32>
    %747 = vector.extract_strided_slice %731 {offsets = [0, 64], sizes = [2, 32], strides = [1, 1]} : vector<2x128xf32> to vector<2x32xf32>
    %748 = math.tanh %747 : vector<2x32xf32>
    %749 = vector.extract_strided_slice %731 {offsets = [0, 96], sizes = [2, 32], strides = [1, 1]} : vector<2x128xf32> to vector<2x32xf32>
    %750 = arith.negf %749 : vector<2x32xf32>
    %751 = math.exp %750 : vector<2x32xf32>
    %cst_226 = arith.constant 1.000000e+00 : f32
    %752 = vector.broadcast %cst_226 : f32 to vector<2x32xf32>
    %753 = arith.addf %752, %751 : vector<2x32xf32>
    %754 = arith.divf %752, %753 : vector<2x32xf32>
    %755 = arith.mulf %746, %699 : vector<2x32xf32>
    %756 = arith.mulf %740, %748 : vector<2x32xf32>
    %757 = arith.addf %755, %756 : vector<2x32xf32>
    %758 = math.tanh %757 : vector<2x32xf32>
    %759 = arith.mulf %754, %758 : vector<2x32xf32>
    %760 = vector.extract_strided_slice %734 {offsets = [0, 0], sizes = [2, 32], strides = [1, 1]} : vector<2x128xf32> to vector<2x32xf32>
    %761 = arith.negf %760 : vector<2x32xf32>
    %762 = math.exp %761 : vector<2x32xf32>
    %cst_227 = arith.constant 1.000000e+00 : f32
    %763 = vector.broadcast %cst_227 : f32 to vector<2x32xf32>
    %764 = arith.addf %763, %762 : vector<2x32xf32>
    %765 = arith.divf %763, %764 : vector<2x32xf32>
    %766 = vector.extract_strided_slice %734 {offsets = [0, 32], sizes = [2, 32], strides = [1, 1]} : vector<2x128xf32> to vector<2x32xf32>
    %767 = arith.negf %766 : vector<2x32xf32>
    %768 = math.exp %767 : vector<2x32xf32>
    %cst_228 = arith.constant 1.000000e+00 : f32
    %769 = vector.broadcast %cst_228 : f32 to vector<2x32xf32>
    %770 = arith.addf %769, %768 : vector<2x32xf32>
    %771 = arith.divf %769, %770 : vector<2x32xf32>
    %772 = vector.extract_strided_slice %734 {offsets = [0, 64], sizes = [2, 32], strides = [1, 1]} : vector<2x128xf32> to vector<2x32xf32>
    %773 = math.tanh %772 : vector<2x32xf32>
    %774 = vector.extract_strided_slice %734 {offsets = [0, 96], sizes = [2, 32], strides = [1, 1]} : vector<2x128xf32> to vector<2x32xf32>
    %775 = arith.negf %774 : vector<2x32xf32>
    %776 = math.exp %775 : vector<2x32xf32>
    %cst_229 = arith.constant 1.000000e+00 : f32
    %777 = vector.broadcast %cst_229 : f32 to vector<2x32xf32>
    %778 = arith.addf %777, %776 : vector<2x32xf32>
    %779 = arith.divf %777, %778 : vector<2x32xf32>
    %780 = arith.mulf %771, %724 : vector<2x32xf32>
    %781 = arith.mulf %765, %773 : vector<2x32xf32>
    %782 = arith.addf %780, %781 : vector<2x32xf32>
    %783 = math.tanh %782 : vector<2x32xf32>
    %784 = arith.mulf %779, %783 : vector<2x32xf32>
    %c8_230 = arith.constant 8 : index
    %c0_231 = arith.constant 0 : index
    %785 = vector.load %arg14[%c8_230, %c0_231] : memref<16x64xf32, #tpu.memory_space<vmem>>, vector<2x32xf32>
    tpu.vector_store %arg14[%c8_230, %c0_231], %759 {strides = array<i32>} : memref<16x64xf32, #tpu.memory_space<vmem>>, vector<2x32xf32>,
    %c6_232 = arith.constant 6 : index
    %c32_233 = arith.constant 32 : index
    %786 = vector.load %arg14[%c6_232, %c32_233] : memref<16x64xf32, #tpu.memory_space<vmem>>, vector<2x32xf32>
    tpu.vector_store %arg14[%c6_232, %c32_233], %784 {strides = array<i32>} : memref<16x64xf32, #tpu.memory_space<vmem>>, vector<2x32xf32>,
    %c10_234 = arith.constant 10 : index
    %c0_235 = arith.constant 0 : index
    %787 = vector.load %arg13[%c10_234, %c0_235] : memref<16x256xf32, #tpu.memory_space<vmem>>, vector<2x128xf32>
    %cst_236 = arith.constant dense<0.000000e+00> : vector<2x128xf32>
    %788 = tpu.matmul %759, %485, %cst_236 {dimension_numbers = #tpu.dot_dimension_numbers<[1], [0], [0], [1], [0, 0, 1, 1], [], []>} : vector<2x32xf32>, vector<32x128xf32>, vector<2x128xf32> -> vector<2x128xf32>
    %789 = arith.addf %787, %788 : vector<2x128xf32>
    %c4_237 = arith.constant 4 : index
    %c128_238 = arith.constant 128 : index
    %790 = vector.load %arg13[%c4_237, %c128_238] : memref<16x256xf32, #tpu.memory_space<vmem>>, vector<2x128xf32>
    %cst_239 = arith.constant dense<0.000000e+00> : vector<2x128xf32>
    %791 = tpu.matmul %784, %486, %cst_239 {dimension_numbers = #tpu.dot_dimension_numbers<[1], [0], [0], [1], [0, 0, 1, 1], [], []>} : vector<2x32xf32>, vector<32x128xf32>, vector<2x128xf32> -> vector<2x128xf32>
    %792 = arith.addf %790, %791 : vector<2x128xf32>
    %793 = vector.extract_strided_slice %789 {offsets = [0, 0], sizes = [2, 32], strides = [1, 1]} : vector<2x128xf32> to vector<2x32xf32>
    %794 = arith.negf %793 : vector<2x32xf32>
    %795 = math.exp %794 : vector<2x32xf32>
    %cst_240 = arith.constant 1.000000e+00 : f32
    %796 = vector.broadcast %cst_240 : f32 to vector<2x32xf32>
    %797 = arith.addf %796, %795 : vector<2x32xf32>
    %798 = arith.divf %796, %797 : vector<2x32xf32>
    %799 = vector.extract_strided_slice %789 {offsets = [0, 32], sizes = [2, 32], strides = [1, 1]} : vector<2x128xf32> to vector<2x32xf32>
    %800 = arith.negf %799 : vector<2x32xf32>
    %801 = math.exp %800 : vector<2x32xf32>
    %cst_241 = arith.constant 1.000000e+00 : f32
    %802 = vector.broadcast %cst_241 : f32 to vector<2x32xf32>
    %803 = arith.addf %802, %801 : vector<2x32xf32>
    %804 = arith.divf %802, %803 : vector<2x32xf32>
    %805 = vector.extract_strided_slice %789 {offsets = [0, 64], sizes = [2, 32], strides = [1, 1]} : vector<2x128xf32> to vector<2x32xf32>
    %806 = math.tanh %805 : vector<2x32xf32>
    %807 = vector.extract_strided_slice %789 {offsets = [0, 96], sizes = [2, 32], strides = [1, 1]} : vector<2x128xf32> to vector<2x32xf32>
    %808 = arith.negf %807 : vector<2x32xf32>
    %809 = math.exp %808 : vector<2x32xf32>
    %cst_242 = arith.constant 1.000000e+00 : f32
    %810 = vector.broadcast %cst_242 : f32 to vector<2x32xf32>
    %811 = arith.addf %810, %809 : vector<2x32xf32>
    %812 = arith.divf %810, %811 : vector<2x32xf32>
    %813 = arith.mulf %804, %757 : vector<2x32xf32>
    %814 = arith.mulf %798, %806 : vector<2x32xf32>
    %815 = arith.addf %813, %814 : vector<2x32xf32>
    %816 = math.tanh %815 : vector<2x32xf32>
    %817 = arith.mulf %812, %816 : vector<2x32xf32>
    %818 = vector.extract_strided_slice %792 {offsets = [0, 0], sizes = [2, 32], strides = [1, 1]} : vector<2x128xf32> to vector<2x32xf32>
    %819 = arith.negf %818 : vector<2x32xf32>
    %820 = math.exp %819 : vector<2x32xf32>
    %cst_243 = arith.constant 1.000000e+00 : f32
    %821 = vector.broadcast %cst_243 : f32 to vector<2x32xf32>
    %822 = arith.addf %821, %820 : vector<2x32xf32>
    %823 = arith.divf %821, %822 : vector<2x32xf32>
    %824 = vector.extract_strided_slice %792 {offsets = [0, 32], sizes = [2, 32], strides = [1, 1]} : vector<2x128xf32> to vector<2x32xf32>
    %825 = arith.negf %824 : vector<2x32xf32>
    %826 = math.exp %825 : vector<2x32xf32>
    %cst_244 = arith.constant 1.000000e+00 : f32
    %827 = vector.broadcast %cst_244 : f32 to vector<2x32xf32>
    %828 = arith.addf %827, %826 : vector<2x32xf32>
    %829 = arith.divf %827, %828 : vector<2x32xf32>
    %830 = vector.extract_strided_slice %792 {offsets = [0, 64], sizes = [2, 32], strides = [1, 1]} : vector<2x128xf32> to vector<2x32xf32>
    %831 = math.tanh %830 : vector<2x32xf32>
    %832 = vector.extract_strided_slice %792 {offsets = [0, 96], sizes = [2, 32], strides = [1, 1]} : vector<2x128xf32> to vector<2x32xf32>
    %833 = arith.negf %832 : vector<2x32xf32>
    %834 = math.exp %833 : vector<2x32xf32>
    %cst_245 = arith.constant 1.000000e+00 : f32
    %835 = vector.broadcast %cst_245 : f32 to vector<2x32xf32>
    %836 = arith.addf %835, %834 : vector<2x32xf32>
    %837 = arith.divf %835, %836 : vector<2x32xf32>
    %838 = arith.mulf %829, %782 : vector<2x32xf32>
    %839 = arith.mulf %823, %831 : vector<2x32xf32>
    %840 = arith.addf %838, %839 : vector<2x32xf32>
    %841 = math.tanh %840 : vector<2x32xf32>
    %842 = arith.mulf %837, %841 : vector<2x32xf32>
    %c10_246 = arith.constant 10 : index
    %c0_247 = arith.constant 0 : index
    %843 = vector.load %arg14[%c10_246, %c0_247] : memref<16x64xf32, #tpu.memory_space<vmem>>, vector<2x32xf32>
    tpu.vector_store %arg14[%c10_246, %c0_247], %817 {strides = array<i32>} : memref<16x64xf32, #tpu.memory_space<vmem>>, vector<2x32xf32>,
    %c4_248 = arith.constant 4 : index
    %c32_249 = arith.constant 32 : index
    %844 = vector.load %arg14[%c4_248, %c32_249] : memref<16x64xf32, #tpu.memory_space<vmem>>, vector<2x32xf32>
    tpu.vector_store %arg14[%c4_248, %c32_249], %842 {strides = array<i32>} : memref<16x64xf32, #tpu.memory_space<vmem>>, vector<2x32xf32>,
    %c12_250 = arith.constant 12 : index
    %c0_251 = arith.constant 0 : index
    %845 = vector.load %arg13[%c12_250, %c0_251] : memref<16x256xf32, #tpu.memory_space<vmem>>, vector<2x128xf32>
    %cst_252 = arith.constant dense<0.000000e+00> : vector<2x128xf32>
    %846 = tpu.matmul %817, %485, %cst_252 {dimension_numbers = #tpu.dot_dimension_numbers<[1], [0], [0], [1], [0, 0, 1, 1], [], []>} : vector<2x32xf32>, vector<32x128xf32>, vector<2x128xf32> -> vector<2x128xf32>
    %847 = arith.addf %845, %846 : vector<2x128xf32>
    %c2_253 = arith.constant 2 : index
    %c128_254 = arith.constant 128 : index
    %848 = vector.load %arg13[%c2_253, %c128_254] : memref<16x256xf32, #tpu.memory_space<vmem>>, vector<2x128xf32>
    %cst_255 = arith.constant dense<0.000000e+00> : vector<2x128xf32>
    %849 = tpu.matmul %842, %486, %cst_255 {dimension_numbers = #tpu.dot_dimension_numbers<[1], [0], [0], [1], [0, 0, 1, 1], [], []>} : vector<2x32xf32>, vector<32x128xf32>, vector<2x128xf32> -> vector<2x128xf32>
    %850 = arith.addf %848, %849 : vector<2x128xf32>
    %851 = vector.extract_strided_slice %847 {offsets = [0, 0], sizes = [2, 32], strides = [1, 1]} : vector<2x128xf32> to vector<2x32xf32>
    %852 = arith.negf %851 : vector<2x32xf32>
    %853 = math.exp %852 : vector<2x32xf32>
    %cst_256 = arith.constant 1.000000e+00 : f32
    %854 = vector.broadcast %cst_256 : f32 to vector<2x32xf32>
    %855 = arith.addf %854, %853 : vector<2x32xf32>
    %856 = arith.divf %854, %855 : vector<2x32xf32>
    %857 = vector.extract_strided_slice %847 {offsets = [0, 32], sizes = [2, 32], strides = [1, 1]} : vector<2x128xf32> to vector<2x32xf32>
    %858 = arith.negf %857 : vector<2x32xf32>
    %859 = math.exp %858 : vector<2x32xf32>
    %cst_257 = arith.constant 1.000000e+00 : f32
    %860 = vector.broadcast %cst_257 : f32 to vector<2x32xf32>
    %861 = arith.addf %860, %859 : vector<2x32xf32>
    %862 = arith.divf %860, %861 : vector<2x32xf32>
    %863 = vector.extract_strided_slice %847 {offsets = [0, 64], sizes = [2, 32], strides = [1, 1]} : vector<2x128xf32> to vector<2x32xf32>
    %864 = math.tanh %863 : vector<2x32xf32>
    %865 = vector.extract_strided_slice %847 {offsets = [0, 96], sizes = [2, 32], strides = [1, 1]} : vector<2x128xf32> to vector<2x32xf32>
    %866 = arith.negf %865 : vector<2x32xf32>
    %867 = math.exp %866 : vector<2x32xf32>
    %cst_258 = arith.constant 1.000000e+00 : f32
    %868 = vector.broadcast %cst_258 : f32 to vector<2x32xf32>
    %869 = arith.addf %868, %867 : vector<2x32xf32>
    %870 = arith.divf %868, %869 : vector<2x32xf32>
    %871 = arith.mulf %862, %815 : vector<2x32xf32>
    %872 = arith.mulf %856, %864 : vector<2x32xf32>
    %873 = arith.addf %871, %872 : vector<2x32xf32>
    %874 = math.tanh %873 : vector<2x32xf32>
    %875 = arith.mulf %870, %874 : vector<2x32xf32>
    %876 = vector.extract_strided_slice %850 {offsets = [0, 0], sizes = [2, 32], strides = [1, 1]} : vector<2x128xf32> to vector<2x32xf32>
    %877 = arith.negf %876 : vector<2x32xf32>
    %878 = math.exp %877 : vector<2x32xf32>
    %cst_259 = arith.constant 1.000000e+00 : f32
    %879 = vector.broadcast %cst_259 : f32 to vector<2x32xf32>
    %880 = arith.addf %879, %878 : vector<2x32xf32>
    %881 = arith.divf %879, %880 : vector<2x32xf32>
    %882 = vector.extract_strided_slice %850 {offsets = [0, 32], sizes = [2, 32], strides = [1, 1]} : vector<2x128xf32> to vector<2x32xf32>
    %883 = arith.negf %882 : vector<2x32xf32>
    %884 = math.exp %883 : vector<2x32xf32>
    %cst_260 = arith.constant 1.000000e+00 : f32
    %885 = vector.broadcast %cst_260 : f32 to vector<2x32xf32>
    %886 = arith.addf %885, %884 : vector<2x32xf32>
    %887 = arith.divf %885, %886 : vector<2x32xf32>
    %888 = vector.extract_strided_slice %850 {offsets = [0, 64], sizes = [2, 32], strides = [1, 1]} : vector<2x128xf32> to vector<2x32xf32>
    %889 = math.tanh %888 : vector<2x32xf32>
    %890 = vector.extract_strided_slice %850 {offsets = [0, 96], sizes = [2, 32], strides = [1, 1]} : vector<2x128xf32> to vector<2x32xf32>
    %891 = arith.negf %890 : vector<2x32xf32>
    %892 = math.exp %891 : vector<2x32xf32>
    %cst_261 = arith.constant 1.000000e+00 : f32
    %893 = vector.broadcast %cst_261 : f32 to vector<2x32xf32>
    %894 = arith.addf %893, %892 : vector<2x32xf32>
    %895 = arith.divf %893, %894 : vector<2x32xf32>
    %896 = arith.mulf %887, %840 : vector<2x32xf32>
    %897 = arith.mulf %881, %889 : vector<2x32xf32>
    %898 = arith.addf %896, %897 : vector<2x32xf32>
    %899 = math.tanh %898 : vector<2x32xf32>
    %900 = arith.mulf %895, %899 : vector<2x32xf32>
    %c12_262 = arith.constant 12 : index
    %c0_263 = arith.constant 0 : index
    %901 = vector.load %arg14[%c12_262, %c0_263] : memref<16x64xf32, #tpu.memory_space<vmem>>, vector<2x32xf32>
    tpu.vector_store %arg14[%c12_262, %c0_263], %875 {strides = array<i32>} : memref<16x64xf32, #tpu.memory_space<vmem>>, vector<2x32xf32>,
    %c2_264 = arith.constant 2 : index
    %c32_265 = arith.constant 32 : index
    %902 = vector.load %arg14[%c2_264, %c32_265] : memref<16x64xf32, #tpu.memory_space<vmem>>, vector<2x32xf32>
    tpu.vector_store %arg14[%c2_264, %c32_265], %900 {strides = array<i32>} : memref<16x64xf32, #tpu.memory_space<vmem>>, vector<2x32xf32>,
    %c14_266 = arith.constant 14 : index
    %c0_267 = arith.constant 0 : index
    %903 = vector.load %arg13[%c14_266, %c0_267] : memref<16x256xf32, #tpu.memory_space<vmem>>, vector<2x128xf32>
    %cst_268 = arith.constant dense<0.000000e+00> : vector<2x128xf32>
    %904 = tpu.matmul %875, %485, %cst_268 {dimension_numbers = #tpu.dot_dimension_numbers<[1], [0], [0], [1], [0, 0, 1, 1], [], []>} : vector<2x32xf32>, vector<32x128xf32>, vector<2x128xf32> -> vector<2x128xf32>
    %905 = arith.addf %903, %904 : vector<2x128xf32>
    %c0_269 = arith.constant 0 : index
    %c128_270 = arith.constant 128 : index
    %906 = vector.load %arg13[%c0_269, %c128_270] : memref<16x256xf32, #tpu.memory_space<vmem>>, vector<2x128xf32>
    %cst_271 = arith.constant dense<0.000000e+00> : vector<2x128xf32>
    %907 = tpu.matmul %900, %486, %cst_271 {dimension_numbers = #tpu.dot_dimension_numbers<[1], [0], [0], [1], [0, 0, 1, 1], [], []>} : vector<2x32xf32>, vector<32x128xf32>, vector<2x128xf32> -> vector<2x128xf32>
    %908 = arith.addf %906, %907 : vector<2x128xf32>
    %909 = vector.extract_strided_slice %905 {offsets = [0, 0], sizes = [2, 32], strides = [1, 1]} : vector<2x128xf32> to vector<2x32xf32>
    %910 = arith.negf %909 : vector<2x32xf32>
    %911 = math.exp %910 : vector<2x32xf32>
    %cst_272 = arith.constant 1.000000e+00 : f32
    %912 = vector.broadcast %cst_272 : f32 to vector<2x32xf32>
    %913 = arith.addf %912, %911 : vector<2x32xf32>
    %914 = arith.divf %912, %913 : vector<2x32xf32>
    %915 = vector.extract_strided_slice %905 {offsets = [0, 32], sizes = [2, 32], strides = [1, 1]} : vector<2x128xf32> to vector<2x32xf32>
    %916 = arith.negf %915 : vector<2x32xf32>
    %917 = math.exp %916 : vector<2x32xf32>
    %cst_273 = arith.constant 1.000000e+00 : f32
    %918 = vector.broadcast %cst_273 : f32 to vector<2x32xf32>
    %919 = arith.addf %918, %917 : vector<2x32xf32>
    %920 = arith.divf %918, %919 : vector<2x32xf32>
    %921 = vector.extract_strided_slice %905 {offsets = [0, 64], sizes = [2, 32], strides = [1, 1]} : vector<2x128xf32> to vector<2x32xf32>
    %922 = math.tanh %921 : vector<2x32xf32>
    %923 = vector.extract_strided_slice %905 {offsets = [0, 96], sizes = [2, 32], strides = [1, 1]} : vector<2x128xf32> to vector<2x32xf32>
    %924 = arith.negf %923 : vector<2x32xf32>
    %925 = math.exp %924 : vector<2x32xf32>
    %cst_274 = arith.constant 1.000000e+00 : f32
    %926 = vector.broadcast %cst_274 : f32 to vector<2x32xf32>
    %927 = arith.addf %926, %925 : vector<2x32xf32>
    %928 = arith.divf %926, %927 : vector<2x32xf32>
    %929 = arith.mulf %920, %873 : vector<2x32xf32>
    %930 = arith.mulf %914, %922 : vector<2x32xf32>
    %931 = arith.addf %929, %930 : vector<2x32xf32>
    %932 = math.tanh %931 : vector<2x32xf32>
    %933 = arith.mulf %928, %932 : vector<2x32xf32>
    %934 = vector.extract_strided_slice %908 {offsets = [0, 0], sizes = [2, 32], strides = [1, 1]} : vector<2x128xf32> to vector<2x32xf32>
    %935 = arith.negf %934 : vector<2x32xf32>
    %936 = math.exp %935 : vector<2x32xf32>
    %cst_275 = arith.constant 1.000000e+00 : f32
    %937 = vector.broadcast %cst_275 : f32 to vector<2x32xf32>
    %938 = arith.addf %937, %936 : vector<2x32xf32>
    %939 = arith.divf %937, %938 : vector<2x32xf32>
    %940 = vector.extract_strided_slice %908 {offsets = [0, 32], sizes = [2, 32], strides = [1, 1]} : vector<2x128xf32> to vector<2x32xf32>
    %941 = arith.negf %940 : vector<2x32xf32>
    %942 = math.exp %941 : vector<2x32xf32>
    %cst_276 = arith.constant 1.000000e+00 : f32
    %943 = vector.broadcast %cst_276 : f32 to vector<2x32xf32>
    %944 = arith.addf %943, %942 : vector<2x32xf32>
    %945 = arith.divf %943, %944 : vector<2x32xf32>
    %946 = vector.extract_strided_slice %908 {offsets = [0, 64], sizes = [2, 32], strides = [1, 1]} : vector<2x128xf32> to vector<2x32xf32>
    %947 = math.tanh %946 : vector<2x32xf32>
    %948 = vector.extract_strided_slice %908 {offsets = [0, 96], sizes = [2, 32], strides = [1, 1]} : vector<2x128xf32> to vector<2x32xf32>
    %949 = arith.negf %948 : vector<2x32xf32>
    %950 = math.exp %949 : vector<2x32xf32>
    %cst_277 = arith.constant 1.000000e+00 : f32
    %951 = vector.broadcast %cst_277 : f32 to vector<2x32xf32>
    %952 = arith.addf %951, %950 : vector<2x32xf32>
    %953 = arith.divf %951, %952 : vector<2x32xf32>
    %954 = arith.mulf %945, %898 : vector<2x32xf32>
    %955 = arith.mulf %939, %947 : vector<2x32xf32>
    %956 = arith.addf %954, %955 : vector<2x32xf32>
    %957 = math.tanh %956 : vector<2x32xf32>
    %958 = arith.mulf %953, %957 : vector<2x32xf32>
    %c14_278 = arith.constant 14 : index
    %c0_279 = arith.constant 0 : index
    %959 = vector.load %arg14[%c14_278, %c0_279] : memref<16x64xf32, #tpu.memory_space<vmem>>, vector<2x32xf32>
    tpu.vector_store %arg14[%c14_278, %c0_279], %933 {strides = array<i32>} : memref<16x64xf32, #tpu.memory_space<vmem>>, vector<2x32xf32>,
    %c0_280 = arith.constant 0 : index
    %c32_281 = arith.constant 32 : index
    %960 = vector.load %arg14[%c0_280, %c32_281] : memref<16x64xf32, #tpu.memory_space<vmem>>, vector<2x32xf32>
    tpu.vector_store %arg14[%c0_280, %c32_281], %958 {strides = array<i32>} : memref<16x64xf32, #tpu.memory_space<vmem>>, vector<2x32xf32>,
    %c0_282 = arith.constant 0 : index
    %c0_283 = arith.constant 0 : index
    %961 = vector.load %arg14[%c0_282, %c0_283] : memref<16x64xf32, #tpu.memory_space<vmem>>, vector<16x64xf32>
    %c0_284 = arith.constant 0 : index
    %c0_285 = arith.constant 0 : index
    %962 = vector.load %arg10[%c0_284, %c0_285] : memref<64x2xf32, #tpu.memory_space<vmem>>, vector<64x2xf32>
    %cst_286 = arith.constant dense<0.000000e+00> : vector<16x2xf32>
    %963 = tpu.matmul %961, %962, %cst_286 {dimension_numbers = #tpu.dot_dimension_numbers<[1], [0], [0], [1], [0, 0, 1, 1], [], []>} : vector<16x64xf32>, vector<64x2xf32>, vector<16x2xf32> -> vector<16x2xf32>
    %c0_287 = arith.constant 0 : index
    %c0_288 = arith.constant 0 : index
    %964 = vector.load %arg11[%c0_287, %c0_288] : memref<1x2xf32, #tpu.memory_space<vmem>>, vector<1x2xf32>
    %965 = vector.broadcast %964 : vector<1x2xf32> to vector<16x2xf32>
    %966 = arith.addf %963, %965 : vector<16x2xf32>
    %967 = vector.shape_cast %966 : vector<16x2xf32> to vector<8x2x2xf32>
    %cst_289 = arith.constant dense<0xFF800000> : vector<8x2xf32>
    %968 = vector.multi_reduction <maximumf>, %967, %cst_289 [1] : vector<8x2x2xf32> to vector<8x2xf32>
    %969 = vector.shape_cast %968 : vector<8x2xf32> to vector<8x1x2xf32>
    %970 = vector.broadcast %969 : vector<8x1x2xf32> to vector<8x2x2xf32>
    %971 = arith.subf %967, %970 : vector<8x2x2xf32>
    %972 = math.exp %971 : vector<8x2x2xf32>
    %cst_290 = arith.constant dense<0.000000e+00> : vector<8x2xf32>
    %973 = vector.multi_reduction <add>, %972, %cst_290 [1] : vector<8x2x2xf32> to vector<8x2xf32>
    %974 = vector.shape_cast %973 : vector<8x2xf32> to vector<8x1x2xf32>
    %975 = tpu.reciprocal %974 {approx = true} : vector<8x1x2xf32> -> vector<8x1x2xf32>
    %976 = vector.broadcast %975 : vector<8x1x2xf32> to vector<8x2x2xf32>
    %977 = arith.mulf %972, %976 : vector<8x2x2xf32>
    %c0_291 = arith.constant 0 : index
    %c0_292 = arith.constant 0 : index
    %c0_293 = arith.constant 0 : index
    %978 = vector.load %arg12[%c0_291, %c0_292, %c0_293] : memref<8x2x2xf32, #tpu.memory_space<vmem>>, vector<8x2x2xf32>
    tpu.vector_store %arg12[%c0_291, %c0_292, %c0_293], %977 {strides = array<i32>} : memref<8x2x2xf32, #tpu.memory_space<vmem>>, vector<8x2x2xf32>,
    return
  }
}

</mosaic_0001>

<bundles_post_ra>
// kernel: pos_lstm_forward.1
= control target key start
LH: loop header
LB: loop body
LE: loop exit
PB: predicated region body
PF: predicated region fallthrough
CT: control target
= control target key end

     0   :  { %17 = vsyncpa [#allocation5], 0  ;;  %s6470_s0 = inlined_call_operand.vmem [shape: s32[16,1], index: 0, kind: input, shape index: {}]   ;;  %s6471_s1 = inlined_call_operand.vmem [shape: f32[50,100], index: 1, kind: input, shape index: {}]   ;;  %s6472_s2 = inlined_call_operand.hbm [shape: f32[100,256], index: 2, kind: input, shape index: {}]   ;;  %s6473_s3 = inlined_call_operand.vmem [shape: f32[32,128], index: 3, kind: input, shape index: {}]   ;;  %s6474_s4 = inlined_call_operand.hbm [shape: f32[32,128], index: 4, kind: input, shape index: {}]   ;;  %s6475_s5 = inlined_call_operand.vmem [shape: f32[1,256], index: 5, kind: input, shape index: {}]   ;;  %s6476_s6 = inlined_call_operand.hbm [shape: f32[64,256], index: 6, kind: input, shape index: {}]   ;;  %s6477_s7 = inlined_call_operand.hbm [shape: f32[32,128], index: 7, kind: input, shape index: {}]   ;;  %s6478_s8 = inlined_call_operand.hbm [shape: f32[32,128], index: 8, kind: input, shape index: {}]   ;;  %s6479_s9 = inlined_call_operand.vmem [shape: f32[1,256], index: 9, kind: input, shape index: {}]   ;;  %s6480_s10 = inlined_call_operand.vmem [shape: f32[64,2], index: 10, kind: input, shape index: {}]   ;;  %s6481_s11 = inlined_call_operand.vmem [shape: f32[1,2], index: 11, kind: input, shape index: {}]   ;;  %s6482_s12 = inlined_call_operand.vmem [shape: f32[8,2,2], index: 12, kind: output, shape index: {}]  }
   0x1   :  { %18 = vsyncpa [#allocation7], 0 }
   0x2   :  { %19 = vsyncpa [#allocation10], 0  ;;  %s5386_s21 = smov [#allocation6]  }
   0x3   :  { %s43_s22 = sshll.u32 %s5386_s21, 4  ;;  %s44_s22 = int_to_ptr.vmem [resolvable:$true] %s43_s22 }
   0x4   :  { %s5288_s23 = scalar_lea.vmem %s44_s22, 512  ;;  %p5293_p1 = scmp.lt.s32.totalorder %s44_s22, %s44_s22 }
   0x5   :  { %p5289_p0 = scmp.ne.s32.totalorder %s44_s22, %s5288_s23  ;;  %p5294_p2 = scmp.lt.s32.totalorder %s5288_s23, %s5288_s23 }
   0x7   :  { %p5295_p3 = por %p5294_p2, %p5293_p1 }
   0x9   :  { %p5296_p4 = pnand %p5295_p3, %p5289_p0 }
   0xb   :  { %5299 = shalt.err (!%p5296_p4)
}
   0xc   :  { %s5387_s24 = smov 128   ;;  %s5388_s25 = smov 8  }
   0xd   :  { %49 = dma.hbm_to_vmem [thread:$0]  %s6474_s4, 512, %s44_s22, [#allocation7], %s5387_s24, %s5387_s24, %s5388_s25  }
   0xe   :  { %s5389_s28 = smov [#allocation9]   ;;  %s5390_s30 = smov [#allocation4]  }
   0xf   :  { %s69_s29 = sshll.u32 %s5389_s28, 4  ;;  %s29_s13 = sshll.u32 %s5390_s30, 4  ;;  %s70_s29 = int_to_ptr.vmem [resolvable:$true] %s69_s29  ;;  %s30_s13 = int_to_ptr.vmem [resolvable:$true] %s29_s13 }
  0x10   :  { %s5308_s14 = scalar_lea.vmem %s70_s29, 512  ;;  %p5313_p6 = scmp.lt.s32.totalorder %s70_s29, %s70_s29 }
  0x11   :  { %p5309_p5 = scmp.ne.s32.totalorder %s70_s29, %s5308_s14  ;;  %p5314_p7 = scmp.lt.s32.totalorder %s5308_s14, %s5308_s14 }
  0x13   :  { %p5315_p8 = por %p5314_p7, %p5313_p6 }
  0x15   :  { %p5316_p9 = pnand %p5315_p8, %p5309_p5 }
  0x17   :  { %5319 = shalt.err (!%p5316_p9)
}
  0x18   :  { %75 = dma.hbm_to_vmem [thread:$0]  %s6477_s7, 512, %s70_s29, [#allocation10], %s5387_s24, %s5387_s24, %s5388_s25  }
  0x19   :  { %s5328_s4 = scalar_lea.vmem %s30_s13, 3328  ;;  %p5333_p11 = scmp.lt.s32.totalorder %s30_s13, %s30_s13 }
  0x1a   :  { %p5329_p10 = scmp.ne.s32.totalorder %s30_s13, %s5328_s4  ;;  %p5334_p12 = scmp.lt.s32.totalorder %s5328_s4, %s5328_s4 }
  0x1c   :  { %p5335_p13 = por %p5334_p12, %p5333_p11 }
  0x1e   :  { %p5336_p0 = pnand %p5335_p13, %p5329_p10 }
  0x20   :  { %5339 = shalt.err (!%p5336_p0)
}
  0x21   :  { %s5391_s17 = smov 256   ;;  %s5392_s18 = smov 16  }
  0x22   :  { %35 = dma.hbm_to_vmem [thread:$0]  %s6472_s2, 3328, %s30_s13, [#allocation5], %s5391_s17, %s5391_s17, %s5392_s18  }
  0x23   :  { %s5393_s21 = smov [#allocation8]   ;;  %s5394_s23 = smov [#allocation11]  }
  0x24   :  { %s57_s22 = sshll.u32 %s5393_s21, 4  ;;  %s81_s26 = sshll.u32 %s5394_s23, 4  ;;  %s58_s22 = int_to_ptr.vmem [resolvable:$true] %s57_s22  ;;  %s82_s26 = int_to_ptr.vmem [resolvable:$true] %s81_s26 }
  0x25   :  { %s5348_s7 = scalar_lea.vmem %s58_s22, 2048  ;;  %p5353_p2 = scmp.lt.s32.totalorder %s58_s22, %s58_s22 }
  0x26   :  { %p5349_p1 = scmp.ne.s32.totalorder %s58_s22, %s5348_s7  ;;  %p5354_p3 = scmp.lt.s32.totalorder %s5348_s7, %s5348_s7 }
  0x28   :  { %p5355_p4 = por %p5354_p3, %p5353_p2 }
  0x2a   :  { %p5356_p5 = pnand %p5355_p4, %p5349_p1 }
  0x2c   :  { %5359 = shalt.err (!%p5356_p5)
}
  0x2d   :  { %63 = dma.hbm_to_vmem [thread:$0]  %s6476_s6, 2048, %s58_s22, [#allocation7], %s5391_s17, %s5391_s17, %s5392_s18  }
  0x2e   :  { %s5368_s29 = scalar_lea.vmem %s82_s26, 512  ;;  %p5373_p7 = scmp.lt.s32.totalorder %s82_s26, %s82_s26 }
  0x2f   :  { %p5369_p6 = scmp.ne.s32.totalorder %s82_s26, %s5368_s29  ;;  %p5374_p8 = scmp.lt.s32.totalorder %s5368_s29, %s5368_s29 }
  0x31   :  { %p5375_p9 = por %p5374_p8, %p5373_p7 }
  0x33   :  { %p5376_p10 = pnand %p5375_p9, %p5369_p6 }
  0x35   :  { %5379 = shalt.err (!%p5376_p10)
}
  0x36   :  { %87 = dma.hbm_to_vmem [thread:$0]  %s6478_s8, 512, %s82_s26, [#allocation10], %s5387_s24, %s5387_s24, %s5388_s25  }
  0x37   :  { %5380 = dma.done.wait [#allocation5], 3328  }
  0x38   :  { %5381 = vsyncadd [#allocation5], 4294963968 }
  0x39   :  { %5382 = dma.done.wait [#allocation7], 2560  }
  0x3a   :  { %5383 = vsyncadd [#allocation7], 4294964736 }
  0x3b   :  { %5384 = dma.done.wait [#allocation10], 1024  }
  0x3c   :  { %5385 = vsyncadd [#allocation10], 4294966272  ;;  %v5395_v0 = vmov 0   ;;  %vm139_vm0 = vcmask 1041408   ;;  %v5396_v1 = vmov 0.0   ;;  %v109_v2 = vld [vmem:[%s6470_s0] sm:$0xff]  ;;  %v111_v34 = vlaneseq }
  0x3d   :  { %4977 = vset.pattern.permute.xlu0 %v5395_v0  ;;  %342 = vmatprep.mubr.f32.mxu1 %v5396_v1  ;;  %v131_v3 = vld [vmem:[%s6471_s1 + $0x30] sm:$0x3]  ;;  %v130_v4 = vld [vmem:[%s6471_s1 + $0x28] sm:$0xff]  ;;  %v129_v6 = vld [vmem:[%s6471_s1 + $0x20] sm:$0xff]  ;;  %vm271_vm1 = vcmask 1043456   ;;  %vm132_vm2 = vcmask 408576  }
  0x3e   :  { %114 = vperm.xlu0 %4977, %v109_v2   ;;  %4574 = vmatprep.subr.msk.mxu0 %vm139_vm0, %v131_v3  ;;  %v110_v5 = vld [vmem:[%s6470_s0 + $0x8] sm:$0xff]  ;;  %v251_v7 = vld [vmem:[#allocation4 + $0xc8] sm:$0xf]  ;;  %v250_v8 = vld [vmem:[#allocation4 + $0xc0] sm:$0xf]  ;;  %v112_v35 = vand.u32 127, %v111_v34 }
  0x3f   :  { %4575 = vmatpush3.msk.msra.mxu0 %vm139_vm0, %v131_v3  ;;  %v128_v9 = vld [vmem:[%s6471_s1 + $0x18] sm:$0xff]  ;;  %4326 = vmatprep.subr.msk.mxu1 %vm271_vm1, %v251_v7  ;;  %v249_v10 = vld [vmem:[#allocation4 + $0xb8] sm:$0xff]  ;;  %v248_v11 = vld [vmem:[#allocation4 + $0xb0] sm:$0xff]  ;;  %vm5397_vm5 = vmmov 0   ;;  %vm264_vm6 = vcmask 818176   ;;  %v5595_v57 = vshrl.u32 %v111_v34, 7 }
  0x40   :  { %4576 = vmatprep.subr.mxu0 %v130_v4  ;;  %v127_v12 = vld [vmem:[%s6471_s1 + $0x10] sm:$0xff]  ;;  %4327 = vmatpush1.msk.msra.mxu1 %vm271_vm1, %v250_v8  ;;  %v247_v13 = vld [vmem:[#allocation4 + $0xa8] sm:$0xff]  ;;  %v126_v15 = vld [vmem:[%s6471_s1 + $0x8] sm:$0xff]  ;;  %s5399_s15 = smov 32   ;;  %vm562_vm7 = vcmask 254976   ;;  %vm360_vm8 = vcmask 261120  }
  0x41   :  { %4577 = vmatpush3.msra.mxu0 %v130_v4  ;;  %286 = vmatprep.subr.mxu1 %v249_v10  ;;  %v246_v14 = vld [vmem:[#allocation4 + $0xa0] sm:$0xff]  ;;  %v245_v16 = vld [vmem:[#allocation4 + $0x98] sm:$0xff]  ;;  %v244_v17 = vld [vmem:[#allocation4 + $0x90] sm:$0xff]  ;;  %v256_v58 = vsub.s32 0, %v5595_v57  ;;  %v260_v60 = vsub.s32 1, %v5595_v57  ;;  %vm1011_vm9 = vcmask 259076  }
  0x42   :  { %117 = vperm.xlu0 %4977, %v110_v5   ;;  %4578 = vmatprep.subr.mxu0 %v129_v6  ;;  %v125_v18 = vld [vmem:[%s6471_s1] sm:$0xff]  ;;  %v243_v19 = vld [vmem:[#allocation4 + $0x88] sm:$0xff]  ;;  %v242_v20 = vld [vmem:[#allocation4 + $0x80] sm:$0xff]  ;;  %vm785_vm10 = vcmask 257026   ;;  %vm1017_vm11 = vcmask 519426   ;;  %vm1234_vm12 = vcmask 261126  }
  0x43   :  { %4579 = vmatpush3.msra.mxu0 %v129_v6  ;;  %287 = vmatpush1.msra.mxu1 %v248_v11  ;;  %v241_v21 = vld [vmem:[#allocation4 + $0x78] sm:$0xff]  ;;  %v240_v22 = vld [vmem:[#allocation4 + $0x70] sm:$0xff]  ;;  %v239_v23 = vld [vmem:[#allocation4 + $0x68] sm:$0xff]  ;;  %vm568_vm13 = vcmask 523526   ;;  %vm791_vm14 = vcmask 521476   ;;  %vm1240_vm15 = vcmask 517376  }
  0x44   :  { %4580 = vmatprep.subr.mxu0 %v128_v9  ;;  %288 = vmatprep.subr.mxu1 %v247_v13  ;;  %v238_v24 = vld [vmem:[#allocation4 + $0x60] sm:$0xff]  ;;  %v237_v25 = vld [vmem:[#allocation4 + $0x58] sm:$0xff]  ;;  %v236_v26 = vld [vmem:[#allocation4 + $0x50] sm:$0xff]  ;;  %vm2166_vm0 = vcmask 523264   ;;  %vm4153_vm1 = vcmask 9216  }
  0x45   :  { %4581 = vmatpush3.msra.mxu0 %v128_v9  ;;  %289 = vmatpush1.msra.mxu1 %v246_v14  ;;  %v235_v27 = vld [vmem:[#allocation4 + $0x48] sm:$0xff]  ;;  %v234_v28 = vld [vmem:[#allocation4 + $0x40] sm:$0xff]  ;;  %v233_v29 = vld [vmem:[#allocation4 + $0x38] sm:$0xff] }
  0x46   :  { %4582 = vmatprep.subr.mxu0 %v127_v12  ;;  %290 = vmatprep.subr.mxu1 %v245_v16  ;;  %v232_v30 = vld [vmem:[#allocation4 + $0x30] sm:$0xff]  ;;  %v231_v31 = vld [vmem:[#allocation4 + $0x28] sm:$0xff]  ;;  %v230_v32 = vld [vmem:[#allocation4 + $0x20] sm:$0xff] }
  0x47   :  { %4583 = vmatpush3.msra.mxu0 %v127_v12  ;;  %291 = vmatpush1.msra.mxu1 %v244_v17  ;;  %v229_v33 = vld [vmem:[#allocation4 + $0x18] sm:$0xff]  ;;  %v228_v40 = vld [vmem:[#allocation4 + $0x10] sm:$0xff]  ;;  %v5525_v41 = vld [vmem:[%s6473_s3 + $0x18] sm:$0xff] }
  0x48   :  { %4584 = vmatprep.subr.mxu0 %v126_v15  ;;  %292 = vmatprep.subr.mxu1 %v243_v19  ;;  %v227_v42 = vld [vmem:[#allocation4 + $0x8] sm:$0xff]  ;;  %v226_v43 = vld [vmem:[#allocation4] sm:$0xff]  ;;  %v5539_v45 = vld [vmem:[%s6473_s3 + $0x8] sm:$0xff] }
  0x49   :  { %4585 = vmatpush3.msra.mxu0 %v126_v15  ;;  %293 = vmatpush1.msra.mxu1 %v242_v20  ;;  %v5532_v44 = vld [vmem:[%s6473_s3 + $0x10] sm:$0xff]  ;;  %v5546_v46 = vld [vmem:[%s6473_s3] sm:$0xff]  ;;  %v5553_v47 = vld [vmem:[#allocation6 + $0x18] sm:$0xff] }
  0x4a   :  { %4586 = vmatprep.subr.mxu0 %v125_v18  ;;  %294 = vmatprep.subr.mxu1 %v241_v21  ;;  %v5556_v48 = vld [vmem:[#allocation6 + $0x10] sm:$0xff]  ;;  %v5562_v49 = vld [vmem:[#allocation6 + $0x8] sm:$0xff]  ;;  %v5566_v50 = vld [vmem:[#allocation6] sm:$0xff] }
  0x4b   :  { %4587 = vmatpush3.msra.mxu0 %v125_v18  ;;  %295 = vmatpush1.msra.mxu1 %v240_v22  ;;  %v252_v59 = vld [vmem:[%s6475_s5] sm:$0x3]  ;;  %s5398_s5 = smov 64  }
  0x4c   :  { %4591 = vmatprep.subr.mxu0 %v5396_v1  ;;  %296 = vmatprep.subr.mxu1 %v239_v23  ;;  %v257_v61 = vrot.slane %v252_v59, %v256_v58  ;;  %v261_v62 = vrot.slane %v252_v59, %v260_v60 }
  0x4d   :  { %297 = vmatpush1.msra.mxu1 %v238_v24 }
  0x4e   :  { %298 = vmatprep.subr.mxu1 %v237_v25 }
  0x4f   :  { %299 = vmatpush1.msra.mxu1 %v236_v26 }
  0x50   :  { %300 = vmatprep.subr.mxu1 %v235_v27 }
  0x51   :  { %301 = vmatpush1.msra.mxu1 %v234_v28 }
  0x52   :  { %302 = vmatprep.subr.mxu1 %v233_v29 }
  0x53   :  { %303 = vmatpush1.msra.mxu1 %v232_v30 }
  0x54   :  { %304 = vmatprep.subr.mxu1 %v231_v31 }
  0x55   :  { %305 = vmatpush1.msra.mxu1 %v230_v32 }
  0x56   :  { %306 = vmatprep.subr.mxu1 %v229_v33 }
  0x57   :  { %307 = vmatpush1.msra.mxu1 %v228_v40 }
  0x58   :  { %308 = vmatprep.subr.mxu1 %v227_v42 }
  0x59   :  { %309 = vmatpush1.msra.mxu1 %v226_v43 }
  0x5a   :  { %4635 = vmatprep.subr.mxu1 %v5396_v1 }
  0xb9   :  { %v115_v36 = vpop.permute.xlu0 %114 }
  0xba   :  { %vm119_vm3 = vcmp.eq.s32.totalorder %v112_v35, %v115_v36 }
  0xbb   :  { %v4321_v37 = vsel %vm119_vm3, 1.0, %v5396_v1 }
  0xbc   :  { %4588 = vmatprep.mubr.msk.f32.mxu0 %vm132_vm2, %v4321_v37 }
  0xbd   :  { %v118_v38 = vpop.permute.xlu0 %117 }
  0xbe   :  { %vm120_vm4 = vcmp.eq.s32.totalorder %v112_v35, %v118_v38 }
  0xbf   :  { %v4322_v39 = vsel %vm120_vm4, 1.0, %v5396_v1 }
  0xc0   :  { %4589 = vmatmul.mubr.msk.f32.vlgmr.msra.gmra.mxu0 %vm132_vm2, %v4322_v39 }
  0xc1   :  { %4592 = vmatpush3.msra.mxu0 %v5525_v41  ;;  %4599 = vmatprep.mubr.msk.f32.mxu0 %vm5397_vm5, %v5396_v1 }
  0xc2   :  { %4593 = vmatprep.subr.mxu0 %v5396_v1 }
  0xc3   :  { %4594 = vmatpush3.msra.mxu0 %v5532_v44 }
  0xc4   :  { %4595 = vmatprep.subr.mxu0 %v5396_v1 }
  0xc5   :  { %4596 = vmatpush3.msra.mxu0 %v5539_v45 }
  0xc6   :  { %4597 = vmatprep.subr.mxu0 %v5396_v1 }
  0xc7   :  { %4598 = vmatpush3.msra.mxu0 %v5546_v46 }
  0xc8   :  { %4602 = vmatprep.subr.mxu0 %v5396_v1  ;;  %4600 = vmatmul.mubr.f32.vlgmr.msra.gmra.mxu0 %v5396_v1 }
  0xc9   :  { %4603 = vmatpush3.msra.mxu0 %v5553_v47  ;;  %4610 = vmatprep.mubr.msk.f32.mxu0 %vm5397_vm5, %v5396_v1 }
  0xca   :  { %4604 = vmatprep.subr.mxu0 %v5396_v1 }
  0xcb   :  { %4605 = vmatpush3.msra.mxu0 %v5556_v48 }
  0xcc   :  { %4606 = vmatprep.subr.mxu0 %v5396_v1 }
  0xcd   :  { %4607 = vmatpush3.msra.mxu0 %v5562_v49 }
  0xce   :  { %4608 = vmatprep.subr.mxu0 %v5396_v1 }
  0xcf   :  { %4609 = vmatpush3.msra.mxu0 %v5566_v50 }
  0xd0   :  { %4611 = vmatmul.mubr.f32.vlgmr.msra.gmra.mxu0 %v5396_v1  ;;  %4613 = vmatprep.subr.mxu0 %v5396_v1 }
  0xd1   :  { %4614 = vmatpush3.msra.mxu0 %v5525_v41  ;;  %4621 = vmatprep.mubr.msk.f32.mxu0 %vm5397_vm5, %v5396_v1 }
  0xd2   :  { %4615 = vmatprep.subr.mxu0 %v5396_v1 }
  0xd3   :  { %4616 = vmatpush3.msra.mxu0 %v5532_v44 }
  0xd4   :  { %4617 = vmatprep.subr.mxu0 %v5396_v1 }
  0xd5   :  { %4618 = vmatpush3.msra.mxu0 %v5539_v45 }
  0xd6   :  { %4619 = vmatprep.subr.mxu0 %v5396_v1 }
  0xd7   :  { %4620 = vmatpush3.msra.mxu0 %v5546_v46 }
  0xd8   :  { %4624 = vmatprep.subr.mxu0 %v5396_v1 }
 0x180   :  { %v4590_v51 = vpop.f32.mrf.mxu0 }
 0x182   :  { %v209_v52 = vpop.f32.mrf.mxu0 }
 0x183   :  { %4328 = vmatmul.mubr.msk.f32.vlgmr.msra.gmra.mxu1 %vm264_vm6, %v209_v52 }
 0x184   :  { %348 = vmatprep.mubr.f32.mxu1 %v5396_v1  ;;  %4636 = vmatpush3.msra.mxu1 %v5525_v41 }
 0x185   :  { %4637 = vmatprep.subr.mxu1 %v5396_v1 }
 0x186   :  { %4638 = vmatpush3.msra.mxu1 %v5532_v44 }
 0x187   :  { %4329 = vmatmul.mubr.msk.f32.gmra.mxu1 %vm264_vm6, %v4590_v51  ;;  %4639 = vmatprep.subr.mxu1 %v5396_v1 }
 0x188   :  { %4640 = vmatpush3.msra.mxu1 %v5539_v45  ;;  %4643 = vmatprep.mubr.msk.f32.mxu1 %vm5397_vm5, %v5396_v1  ;;  %v430_v53 = vpop.f32.mrf.mxu0 }
 0x189   :  { %4641 = vmatprep.subr.mxu1 %v5396_v1 }
 0x18a   :  { %4642 = vmatpush3.msra.mxu1 %v5546_v46  ;;  %v4601_v54 = vpop.f32.mrf.mxu0 }
 0x18b   :  { %4657 = vmatprep.subr.mxu1 %v5396_v1 }
 0x190   :  { %v502_v55 = vpop.f32.mrf.mxu0 }
 0x191   :  { %v507_v10 = vrot.slane %v502_v55, 2 }
 0x192   :  { %v4612_v56 = vpop.f32.mrf.mxu0 }
 0x243   :  { %v344_v63 = vpop.f32.mrf.mxu1 }
 0x244   :  { %v345_v0 = vadd.f32 %v344_v63, %v257_v61 }
 0x245   :  { %v346_v2 = vpop.f32.mrf.mxu1 }
 0x246   :  { %355 = vst [vmem:[#allocation2 + $0x10] sm:$0xff] %v345_v0  ;;  %v347_v3 = vadd.f32 %v346_v2, %v261_v62 }
 0x247   :  { %v350_v4 = vpop.f32.mrf.mxu1 }
 0x248   :  { %356 = vst [vmem:[#allocation2] sm:$0xff] %v347_v3  ;;  %v351_v5 = vadd.f32 %v350_v4, %v257_v61 }
 0x249   :  { %v352_v6 = vpop.f32.mrf.mxu1 }
 0x24a   :  { %357 = vst [vmem:[#allocation2 + $0x18] sm:$0xff] %v351_v5  ;;  %v353_v7 = vadd.f32 %v352_v6, %v261_v62 }
 0x24c   :  { %358 = vst [vmem:[#allocation2 + $0x8] sm:$0xff] %v353_v7 }
 0x24d   :  { %v359_v8 = vld [vmem:[#allocation2 + $0x10] sm:$0x3]  ;;  %v570_v52 = vld [vmem:[#allocation2 + $0x10] sm:$0xc] }
 0x24e   :  { %v434_v9 = vadd.f32 %v430_v53, %v359_v8 }
 0x250   :  { %4978 = vtanh.f32 %v434_v9  ;;  %v4330_v15 = vmul.f32 -1.442695, %v434_v9 }
 0x253   :  { %v435_v11 = vld [vmem:[#allocation2 + $0x8] sm:$0xc0]  ;;  %v647_v59 = vld [vmem:[#allocation2 + $0x8] sm:$0x30] }
 0x254   :  { %v509_v12 = vadd.f32 %v507_v10, %v435_v11 }
 0x256   :  { %4980 = vtanh.f32 %v509_v12  ;;  %v4331_v16 = vmul.f32 -1.442695, %v509_v12 }
 0x257   :  { %4982 = vpow2.f32 %v4330_v15 }
 0x258   :  { %4984 = vpow2.f32 %v4331_v16 }
 0x25d   :  { %v4979_v13 = vpop.eup %4978 }
 0x25e   :  { %519 = vrot.lane.b32.xlu1 %v4979_v13, %s5398_s5 }
 0x263   :  { %v4981_v14 = vpop.eup %4980 }
 0x264   :  { %543 = vrot.lane.b32.xlu1 %v4981_v14, %s5398_s5  ;;  %v4983_v17 = vpop.eup %4982 }
 0x265   :  { %v513_v18 = vadd.f32 1.0, %v4983_v17  ;;  %v4985_v19 = vpop.eup %4984 }
 0x266   :  { %v537_v20 = vadd.f32 1.0, %v4985_v19 }
 0x267   :  { %4986 = vrcp.f32 %v513_v18 }
 0x268   :  { %4988 = vrcp.f32 %v537_v20 }
 0x274   :  { %v4987_v21 = vpop.eup %4986 }
 0x275   :  { %v4989_v24 = vpop.eup %4988  ;;  %v517_v27 = vmul.f32 0.0, %v4987_v21 }
 0x276   :  { %v541_v30 = vmul.f32 0.0, %v4989_v24 }
 0x2d0   :  { %v520_v22 = vpop.permute.xlu1 %519 }
 0x2d1   :  { %v522_v23 = vmul.f32 %v4987_v21, %v520_v22 }
 0x2d3   :  { %524 = vrot.lane.b32.xlu0 %v522_v23, %s5399_s15 }
 0x2d6   :  { %v544_v25 = vpop.permute.xlu1 %543 }
 0x2d7   :  { %v546_v26 = vmul.f32 %v4989_v24, %v544_v25 }
 0x2d9   :  { %548 = vrot.lane.b32.xlu1 %v546_v26, %s5399_s15 }
 0x345   :  { %v525_v28 = vpop.permute.xlu0 %524 }
 0x346   :  { %v5610_v29 = vadd.f32 %v525_v28, %v517_v27 }
 0x348   :  { %4990 = vtanh.f32 %v5610_v29  ;;  %v735_v14 = vrot.slane %v5610_v29, 6 }
 0x34b   :  { %v549_v31 = vpop.permute.xlu1 %548 }
 0x34c   :  { %v5613_v32 = vadd.f32 %v549_v31, %v541_v30 }
 0x34e   :  { %4992 = vtanh.f32 %v5613_v32  ;;  %v762_v18 = vrot.slane %v5613_v32, 2 }
 0x355   :  { %v4991_v33 = vpop.eup %4990 }
 0x356   :  { %530 = vrot.lane.b32.xlu0 %v4991_v33, %s5398_s5 }
 0x35b   :  { %v4993_v34 = vpop.eup %4992 }
 0x35c   :  { %554 = vrot.lane.b32.xlu1 %v4993_v34, %s5398_s5  ;;  %v793_v34 = vld [vmem:[#allocation2 + $0x10] sm:$0x30] }
 0x3c8   :  { %v531_v35 = vpop.permute.xlu0 %530 }
 0x3c9   :  { %v533_v36 = vmul.f32 %v4987_v21, %v531_v35 }
 0x3cb   :  { %559 = vrot.lane.b32.xlu0 %v533_v36, %s5399_s15 }
 0x3ce   :  { %v555_v37 = vpop.permute.xlu1 %554 }
 0x3cf   :  { %v5619_v38 = vmul.f32 %v4989_v24, %v555_v37 }
 0x3d1   :  { %v648_v39 = vrot.slane %v5619_v38, 6 }
 0x3d3   :  { %649 = vrot.lane.b32.xlu1 %v648_v39, %s5399_s15 }
 0x43d   :  { %v560_v40 = vpop.permute.xlu0 %559 }
 0x43e   :  { %563 = vst.msk [vmem:[#allocation3] sm:$0x3] %vm562_vm7, %v560_v40  ;;  %4622 = vmatmul.mubr.msk.f32.vlgmr.msra.gmra.mxu0 %vm360_vm8, %v560_v40  ;;  %v873_v40 = vld [vmem:[#allocation2 + $0x8] sm:$0xc] }
 0x43f   :  { %4625 = vmatpush3.msra.mxu0 %v5553_v47  ;;  %4632 = vmatprep.mubr.msk.f32.mxu0 %vm5397_vm5, %v5396_v1 }
 0x440   :  { %4626 = vmatprep.subr.mxu0 %v5396_v1 }
 0x441   :  { %4627 = vmatpush3.msra.mxu0 %v5556_v48 }
 0x442   :  { %4628 = vmatprep.subr.mxu0 %v5396_v1 }
 0x443   :  { %4629 = vmatpush3.msra.mxu0 %v5562_v49 }
 0x444   :  { %4630 = vmatprep.subr.mxu0 %v5396_v1 }
 0x445   :  { %v650_v42 = vpop.permute.xlu1 %649  ;;  %4631 = vmatpush3.msra.mxu0 %v5566_v50 }
 0x446   :  { %4633 = vmatmul.mubr.msk.f32.vlgmr.msra.gmra.mxu0 %vm360_vm8, %v650_v42  ;;  %4646 = vmatprep.subr.mxu0 %v5396_v1 }
 0x447   :  { %4647 = vmatpush3.msra.mxu0 %v5553_v47  ;;  %4654 = vmatprep.mubr.msk.f32.mxu0 %vm5397_vm5, %v5396_v1 }
 0x448   :  { %4648 = vmatprep.subr.mxu0 %v5396_v1 }
 0x449   :  { %4649 = vmatpush3.msra.mxu0 %v5556_v48 }
 0x44a   :  { %4650 = vmatprep.subr.mxu0 %v5396_v1 }
 0x44b   :  { %4651 = vmatpush3.msra.mxu0 %v5562_v49 }
 0x44c   :  { %4652 = vmatprep.subr.mxu0 %v5396_v1 }
 0x44d   :  { %4653 = vmatpush3.msra.mxu0 %v5566_v50 }
 0x44e   :  { %4668 = vmatprep.subr.mxu0 %v5396_v1 }
 0x4fe   :  { %v639_v43 = vpop.f32.mrf.mxu0 }
 0x4ff   :  { %v644_v51 = vrot.slane %v639_v43, 6 }
 0x500   :  { %v4623_v53 = vpop.f32.mrf.mxu0 }
 0x501   :  { %v646_v54 = vadd.f32 %v644_v51, %v570_v52 }
 0x503   :  { %4994 = vtanh.f32 %v646_v54  ;;  %v4334_v2 = vmul.f32 -1.442695, %v646_v54 }
 0x506   :  { %v719_v55 = vpop.f32.mrf.mxu0 }
 0x507   :  { %v724_v56 = vrot.slane %v719_v55, 4 }
 0x508   :  { %v4634_v61 = vpop.f32.mrf.mxu0 }
 0x509   :  { %v726_v62 = vadd.f32 %v724_v56, %v647_v59 }
 0x50b   :  { %4996 = vtanh.f32 %v726_v62  ;;  %v4335_v3 = vmul.f32 -1.442695, %v726_v62 }
 0x50c   :  { %4998 = vpow2.f32 %v4334_v2 }
 0x50d   :  { %5000 = vpow2.f32 %v4335_v3 }
 0x510   :  { %v4995_v63 = vpop.eup %4994 }
 0x511   :  { %739 = vrot.lane.b32.xlu1 %v4995_v63, %s5398_s5 }
 0x518   :  { %v4997_v0 = vpop.eup %4996 }
 0x519   :  { %766 = vrot.lane.b32.xlu0 %v4997_v0, %s5398_s5  ;;  %v4999_v4 = vpop.eup %4998 }
 0x51a   :  { %v730_v5 = vadd.f32 1.0, %v4999_v4  ;;  %v5001_v6 = vpop.eup %5000 }
 0x51b   :  { %v757_v7 = vadd.f32 1.0, %v5001_v6 }
 0x51c   :  { %5002 = vrcp.f32 %v730_v5 }
 0x51d   :  { %5004 = vrcp.f32 %v757_v7 }
 0x529   :  { %v5003_v8 = vpop.eup %5002 }
 0x52a   :  { %v5005_v11 = vpop.eup %5004  ;;  %v737_v15 = vmul.f32 %v5003_v8, %v735_v14 }
 0x52b   :  { %v764_v19 = vmul.f32 %v5005_v11, %v762_v18 }
 0x583   :  { %v740_v9 = vpop.permute.xlu1 %739 }
 0x584   :  { %v742_v10 = vmul.f32 %v5003_v8, %v740_v9 }
 0x586   :  { %744 = vrot.lane.b32.xlu1 %v742_v10, %s5399_s15 }
 0x58b   :  { %v767_v12 = vpop.permute.xlu0 %766 }
 0x58c   :  { %v769_v13 = vmul.f32 %v5005_v11, %v767_v12 }
 0x58e   :  { %771 = vrot.lane.b32.xlu0 %v769_v13, %s5399_s15 }
 0x5f8   :  { %v745_v16 = vpop.permute.xlu1 %744 }
 0x5f9   :  { %v5651_v17 = vadd.f32 %v745_v16, %v737_v15 }
 0x5fb   :  { %5006 = vtanh.f32 %v5651_v17  ;;  %v961_v5 = vrot.slane %v5651_v17, 6 }
 0x600   :  { %v772_v20 = vpop.permute.xlu0 %771 }
 0x601   :  { %v5655_v21 = vadd.f32 %v772_v20, %v764_v19 }
 0x603   :  { %5008 = vtanh.f32 %v5655_v21  ;;  %v988_v9 = vrot.slane %v5655_v21, 2 }
 0x608   :  { %v5007_v22 = vpop.eup %5006 }
 0x609   :  { %750 = vrot.lane.b32.xlu1 %v5007_v22, %s5398_s5 }
 0x610   :  { %v5009_v23 = vpop.eup %5008 }
 0x611   :  { %777 = vrot.lane.b32.xlu0 %v5009_v23, %s5398_s5 }
 0x67b   :  { %v751_v24 = vpop.permute.xlu1 %750 }
 0x67c   :  { %v5660_v25 = vmul.f32 %v5003_v8, %v751_v24 }
 0x67e   :  { %v794_v26 = vrot.slane %v5660_v25, 2 }
 0x680   :  { %795 = vrot.lane.b32.xlu1 %v794_v26, %s5399_s15  ;;  %v1019_v26 = vld [vmem:[#allocation2 + $0x10] sm:$0xc0] }
 0x683   :  { %v778_v27 = vpop.permute.xlu0 %777 }
 0x684   :  { %v5664_v28 = vmul.f32 %v5005_v11, %v778_v27 }
 0x686   :  { %v874_v29 = vrot.slane %v5664_v28, 4 }
 0x688   :  { %875 = vrot.lane.b32.xlu0 %v874_v29, %s5399_s15 }
 0x6f2   :  { %v796_v30 = vpop.permute.xlu1 %795 }
 0x6f3   :  { %4644 = vmatmul.mubr.msk.f32.vlgmr.msra.gmra.mxu1 %vm360_vm8, %v796_v30  ;;  %v1099_v30 = vld [vmem:[#allocation2 + $0x8] sm:$0x3] }
 0x6f4   :  { %4658 = vmatpush3.msra.mxu1 %v5525_v41  ;;  %4665 = vmatprep.mubr.msk.f32.mxu1 %vm5397_vm5, %v5396_v1 }
 0x6f5   :  { %4659 = vmatprep.subr.mxu1 %v5396_v1 }
 0x6f6   :  { %4660 = vmatpush3.msra.mxu1 %v5532_v44 }
 0x6f7   :  { %4661 = vmatprep.subr.mxu1 %v5396_v1 }
 0x6f8   :  { %4662 = vmatpush3.msra.mxu1 %v5539_v45 }
 0x6f9   :  { %4663 = vmatprep.subr.mxu1 %v5396_v1 }
 0x6fa   :  { %v876_v31 = vpop.permute.xlu0 %875  ;;  %4664 = vmatpush3.msra.mxu1 %v5546_v46 }
 0x6fb   :  { %4655 = vmatmul.mubr.msk.f32.vlgmr.msra.gmra.mxu0 %vm360_vm8, %v876_v31  ;;  %4679 = vmatprep.subr.mxu1 %v5396_v1 }
 0x6fc   :  { %4669 = vmatpush3.msra.mxu0 %v5553_v47  ;;  %4676 = vmatprep.mubr.msk.f32.mxu0 %vm5397_vm5, %v5396_v1 }
 0x6fd   :  { %4670 = vmatprep.subr.mxu0 %v5396_v1 }
 0x6fe   :  { %4671 = vmatpush3.msra.mxu0 %v5556_v48 }
 0x6ff   :  { %4672 = vmatprep.subr.mxu0 %v5396_v1 }
 0x700   :  { %4673 = vmatpush3.msra.mxu0 %v5562_v49 }
 0x701   :  { %4674 = vmatprep.subr.mxu0 %v5396_v1 }
 0x702   :  { %4675 = vmatpush3.msra.mxu0 %v5566_v50 }
 0x703   :  { %4690 = vmatprep.subr.mxu0 %v5396_v1 }
 0x7b3   :  { %v865_v32 = vpop.f32.mrf.mxu1 }
 0x7b4   :  { %v870_v33 = vrot.slane %v865_v32, 4 }
 0x7b5   :  { %v4645_v35 = vpop.f32.mrf.mxu1 }
 0x7b6   :  { %v872_v36 = vadd.f32 %v870_v33, %v793_v34 }
 0x7b8   :  { %5010 = vtanh.f32 %v872_v36  ;;  %v4338_v53 = vmul.f32 -1.442695, %v872_v36 }
 0x7bb   :  { %v945_v37 = vpop.f32.mrf.mxu0 }
 0x7bc   :  { %v950_v39 = vrot.slane %v945_v37, 6 }
 0x7bd   :  { %v4656_v42 = vpop.f32.mrf.mxu0 }
 0x7be   :  { %v952_v43 = vadd.f32 %v950_v39, %v873_v40 }
 0x7c0   :  { %5012 = vtanh.f32 %v952_v43  ;;  %v4339_v54 = vmul.f32 -1.442695, %v952_v43 }
 0x7c1   :  { %5014 = vpow2.f32 %v4338_v53 }
 0x7c2   :  { %5016 = vpow2.f32 %v4339_v54 }
 0x7c5   :  { %v5011_v51 = vpop.eup %5010 }
 0x7c6   :  { %965 = vrot.lane.b32.xlu1 %v5011_v51, %s5398_s5 }
 0x7cd   :  { %v5013_v52 = vpop.eup %5012 }
 0x7ce   :  { %992 = vrot.lane.b32.xlu0 %v5013_v52, %s5398_s5  ;;  %v5015_v55 = vpop.eup %5014 }
 0x7cf   :  { %v956_v56 = vadd.f32 1.0, %v5015_v55  ;;  %v5017_v59 = vpop.eup %5016 }
 0x7d0   :  { %v983_v61 = vadd.f32 1.0, %v5017_v59 }
 0x7d1   :  { %5018 = vrcp.f32 %v956_v56 }
 0x7d2   :  { %5020 = vrcp.f32 %v983_v61 }
 0x7de   :  { %v5019_v62 = vpop.eup %5018 }
 0x7df   :  { %v5021_v2 = vpop.eup %5020  ;;  %v963_v6 = vmul.f32 %v5019_v62, %v961_v5 }
 0x7e0   :  { %v990_v10 = vmul.f32 %v5021_v2, %v988_v9 }
 0x838   :  { %v966_v63 = vpop.permute.xlu1 %965 }
 0x839   :  { %v968_v0 = vmul.f32 %v5019_v62, %v966_v63 }
 0x83b   :  { %970 = vrot.lane.b32.xlu1 %v968_v0, %s5399_s15 }
 0x840   :  { %v993_v3 = vpop.permute.xlu0 %992 }
 0x841   :  { %v995_v4 = vmul.f32 %v5021_v2, %v993_v3 }
 0x843   :  { %997 = vrot.lane.b32.xlu0 %v995_v4, %s5399_s15 }
 0x8ad   :  { %v971_v7 = vpop.permute.xlu1 %970 }
 0x8ae   :  { %v5695_v8 = vadd.f32 %v971_v7, %v963_v6 }
 0x8b0   :  { %5022 = vtanh.f32 %v5695_v8  ;;  %v1184_v59 = vrot.slane %v5695_v8, 6 }
 0x8b5   :  { %v998_v11 = vpop.permute.xlu0 %997 }
 0x8b6   :  { %v5699_v12 = vadd.f32 %v998_v11, %v990_v10 }
 0x8b8   :  { %5024 = vtanh.f32 %v5699_v12  ;;  %v1211_v0 = vrot.slane %v5699_v12, 2 }
 0x8bd   :  { %v5023_v13 = vpop.eup %5022 }
 0x8be   :  { %976 = vrot.lane.b32.xlu1 %v5023_v13, %s5398_s5 }
 0x8c5   :  { %v5025_v14 = vpop.eup %5024 }
 0x8c6   :  { %1003 = vrot.lane.b32.xlu0 %v5025_v14, %s5398_s5  ;;  %v1242_v14 = vld [vmem:[#allocation2 + $0x18] sm:$0x3] }
 0x930   :  { %v977_v15 = vpop.permute.xlu1 %976 }
 0x931   :  { %v5704_v16 = vmul.f32 %v5019_v62, %v977_v15 }
 0x933   :  { %v1020_v17 = vrot.slane %v5704_v16, 4 }
 0x935   :  { %1021 = vrot.lane.b32.xlu1 %v1020_v17, %s5399_s15 }
 0x938   :  { %v1004_v18 = vpop.permute.xlu0 %1003 }
 0x939   :  { %v5708_v19 = vmul.f32 %v5021_v2, %v1004_v18 }
 0x93b   :  { %v1100_v20 = vrot.slane %v5708_v19, 2 }
 0x93d   :  { %1101 = vrot.lane.b32.xlu0 %v1100_v20, %s5399_s15 }
 0x9a7   :  { %v1022_v21 = vpop.permute.xlu1 %1021 }
 0x9a8   :  { %4666 = vmatmul.mubr.msk.f32.vlgmr.msra.gmra.mxu1 %vm360_vm8, %v1022_v21 }
 0x9a9   :  { %4680 = vmatpush3.msra.mxu1 %v5525_v41  ;;  %4687 = vmatprep.mubr.msk.f32.mxu1 %vm5397_vm5, %v5396_v1 }
 0x9aa   :  { %4681 = vmatprep.subr.mxu1 %v5396_v1 }
 0x9ab   :  { %4682 = vmatpush3.msra.mxu1 %v5532_v44 }
 0x9ac   :  { %4683 = vmatprep.subr.mxu1 %v5396_v1 }
 0x9ad   :  { %4684 = vmatpush3.msra.mxu1 %v5539_v45 }
 0x9ae   :  { %4685 = vmatprep.subr.mxu1 %v5396_v1 }
 0x9af   :  { %v1102_v22 = vpop.permute.xlu0 %1101  ;;  %4686 = vmatpush3.msra.mxu1 %v5546_v46 }
 0x9b0   :  { %4677 = vmatmul.mubr.msk.f32.vlgmr.msra.gmra.mxu0 %vm360_vm8, %v1102_v22  ;;  %4701 = vmatprep.subr.mxu1 %v5396_v1  ;;  %v1319_v22 = vld [vmem:[#allocation2] sm:$0xc0] }
 0x9b1   :  { %4691 = vmatpush3.msra.mxu0 %v5553_v47  ;;  %4698 = vmatprep.mubr.msk.f32.mxu0 %vm5397_vm5, %v5396_v1 }
 0x9b2   :  { %4692 = vmatprep.subr.mxu0 %v5396_v1 }
 0x9b3   :  { %4693 = vmatpush3.msra.mxu0 %v5556_v48 }
 0x9b4   :  { %4694 = vmatprep.subr.mxu0 %v5396_v1 }
 0x9b5   :  { %4695 = vmatpush3.msra.mxu0 %v5562_v49 }
 0x9b6   :  { %4696 = vmatprep.subr.mxu0 %v5396_v1 }
 0x9b7   :  { %4697 = vmatpush3.msra.mxu0 %v5566_v50 }
 0x9b8   :  { %4712 = vmatprep.subr.mxu0 %v5396_v1 }
 0xa68   :  { %v1091_v23 = vpop.f32.mrf.mxu1 }
 0xa69   :  { %v1096_v24 = vrot.slane %v1091_v23, 2 }
 0xa6a   :  { %v4667_v27 = vpop.f32.mrf.mxu1 }
 0xa6b   :  { %v1098_v29 = vadd.f32 %v1096_v24, %v1019_v26 }
 0xa6d   :  { %5026 = vtanh.f32 %v1098_v29  ;;  %v4342_v36 = vmul.f32 -1.442695, %v1098_v29 }
 0xa70   :  { %v1171_v31 = vpop.f32.mrf.mxu0 }
 0xa71   :  { %v1175_v32 = vadd.f32 %v1171_v31, %v1099_v30 }
 0xa72   :  { %v4678_v33 = vpop.f32.mrf.mxu0 }
 0xa73   :  { %5028 = vtanh.f32 %v1175_v32  ;;  %v4343_v37 = vmul.f32 -1.442695, %v1175_v32 }
 0xa74   :  { %5030 = vpow2.f32 %v4342_v36 }
 0xa75   :  { %5032 = vpow2.f32 %v4343_v37 }
 0xa7a   :  { %v5027_v34 = vpop.eup %5026 }
 0xa7b   :  { %1188 = vrot.lane.b32.xlu1 %v5027_v34, %s5398_s5 }
 0xa80   :  { %v5029_v35 = vpop.eup %5028 }
 0xa81   :  { %1215 = vrot.lane.b32.xlu0 %v5029_v35, %s5398_s5  ;;  %v5031_v39 = vpop.eup %5030 }
 0xa82   :  { %v1179_v40 = vadd.f32 1.0, %v5031_v39  ;;  %v5033_v42 = vpop.eup %5032 }
 0xa83   :  { %v1206_v43 = vadd.f32 1.0, %v5033_v42 }
 0xa84   :  { %5034 = vrcp.f32 %v1179_v40 }
 0xa85   :  { %5036 = vrcp.f32 %v1206_v43 }
 0xa91   :  { %v5035_v51 = vpop.eup %5034 }
 0xa92   :  { %v5037_v54 = vpop.eup %5036  ;;  %v1186_v61 = vmul.f32 %v5035_v51, %v1184_v59 }
 0xa93   :  { %v1213_v2 = vmul.f32 %v5037_v54, %v1211_v0 }
 0xaed   :  { %v1189_v52 = vpop.permute.xlu1 %1188 }
 0xaee   :  { %v1191_v53 = vmul.f32 %v5035_v51, %v1189_v52 }
 0xaf0   :  { %1193 = vrot.lane.b32.xlu1 %v1191_v53, %s5399_s15 }
 0xaf3   :  { %v1216_v55 = vpop.permute.xlu0 %1215 }
 0xaf4   :  { %v1218_v56 = vmul.f32 %v5037_v54, %v1216_v55 }
 0xaf6   :  { %1220 = vrot.lane.b32.xlu0 %v1218_v56, %s5399_s15 }
 0xb62   :  { %v1194_v62 = vpop.permute.xlu1 %1193 }
 0xb63   :  { %v5739_v63 = vadd.f32 %v1194_v62, %v1186_v61 }
 0xb65   :  { %5038 = vtanh.f32 %v5739_v63  ;;  %v1406_v43 = vrot.slane %v5739_v63, 6 }
 0xb68   :  { %v1221_v3 = vpop.permute.xlu0 %1220 }
 0xb69   :  { %v5743_v4 = vadd.f32 %v1221_v3, %v1213_v2 }
 0xb6b   :  { %5040 = vtanh.f32 %v5743_v4 }
 0xb72   :  { %v5039_v5 = vpop.eup %5038 }
 0xb73   :  { %1199 = vrot.lane.b32.xlu1 %v5039_v5, %s5398_s5 }
 0xb78   :  { %v5041_v6 = vpop.eup %5040 }
 0xb79   :  { %1226 = vrot.lane.b32.xlu0 %v5041_v6, %s5398_s5 }
 0xbe5   :  { %v1200_v7 = vpop.permute.xlu1 %1199 }
 0xbe6   :  { %v5748_v8 = vmul.f32 %v5035_v51, %v1200_v7 }
 0xbe8   :  { %v1243_v9 = vrot.slane %v5748_v8, 6 }
 0xbea   :  { %1244 = vrot.lane.b32.xlu1 %v1243_v9, %s5399_s15 }
 0xbeb   :  { %v1227_v10 = vpop.permute.xlu0 %1226 }
 0xbec   :  { %v5752_v11 = vmul.f32 %v5037_v54, %v1227_v10  ;;  %v1433_v54 = vrot.slane %v5743_v4, 2  ;;  %v1539_v10 = vld [vmem:[#allocation2] sm:$0x30] }
 0xbee   :  { %1320 = vrot.lane.b32.xlu0 %v5752_v11, %s5399_s15 }
 0xc5c   :  { %v1245_v12 = vpop.permute.xlu1 %1244 }
 0xc5d   :  { %4688 = vmatmul.mubr.msk.f32.vlgmr.msra.gmra.mxu1 %vm360_vm8, %v1245_v12 }
 0xc5e   :  { %4702 = vmatpush3.msra.mxu1 %v5525_v41  ;;  %4709 = vmatprep.mubr.msk.f32.mxu1 %vm5397_vm5, %v5396_v1 }
 0xc5f   :  { %4703 = vmatprep.subr.mxu1 %v5396_v1 }
 0xc60   :  { %v1321_v13 = vpop.permute.xlu0 %1320  ;;  %4704 = vmatpush3.msra.mxu1 %v5532_v44 }
 0xc61   :  { %4699 = vmatmul.mubr.msk.f32.vlgmr.msra.gmra.mxu0 %vm360_vm8, %v1321_v13  ;;  %4705 = vmatprep.subr.mxu1 %v5396_v1 }
 0xc62   :  { %4706 = vmatpush3.msra.mxu1 %v5539_v45  ;;  %4713 = vmatpush3.msra.mxu0 %v5553_v47 }
 0xc63   :  { %4707 = vmatprep.subr.mxu1 %v5396_v1  ;;  %4714 = vmatprep.subr.mxu0 %v5396_v1 }
 0xc64   :  { %4708 = vmatpush3.msra.mxu1 %v5546_v46  ;;  %4715 = vmatpush3.msra.mxu0 %v5556_v48 }
 0xc65   :  { %4716 = vmatprep.subr.mxu0 %v5396_v1  ;;  %4720 = vmatprep.mubr.msk.f32.mxu0 %vm5397_vm5, %v5396_v1 }
 0xc66   :  { %4717 = vmatpush3.msra.mxu0 %v5562_v49  ;;  %4723 = vmatprep.subr.mxu1 %v5396_v1 }
 0xc67   :  { %4718 = vmatprep.subr.mxu0 %v5396_v1 }
 0xc68   :  { %4719 = vmatpush3.msra.mxu0 %v5566_v50 }
 0xc69   :  { %4734 = vmatprep.subr.mxu0 %v5396_v1 }
 0xd1d   :  { %v1314_v15 = vpop.f32.mrf.mxu1 }
 0xd1e   :  { %v1318_v17 = vadd.f32 %v1314_v15, %v1242_v14 }
 0xd1f   :  { %v4689_v18 = vpop.f32.mrf.mxu1 }
 0xd20   :  { %5042 = vtanh.f32 %v1318_v17  ;;  %v4346_v29 = vmul.f32 -1.442695, %v1318_v17 }
 0xd21   :  { %v1390_v20 = vpop.f32.mrf.mxu0 }
 0xd22   :  { %v1395_v21 = vrot.slane %v1390_v20, 2 }
 0xd23   :  { %v4700_v23 = vpop.f32.mrf.mxu0 }
 0xd24   :  { %v1397_v24 = vadd.f32 %v1395_v21, %v1319_v22 }
 0xd26   :  { %5044 = vtanh.f32 %v1397_v24  ;;  %v4347_v30 = vmul.f32 -1.442695, %v1397_v24 }
 0xd27   :  { %5046 = vpow2.f32 %v4346_v29 }
 0xd28   :  { %5048 = vpow2.f32 %v4347_v30 }
 0xd2d   :  { %v5043_v26 = vpop.eup %5042 }
 0xd2e   :  { %1410 = vrot.lane.b32.xlu1 %v5043_v26, %s5398_s5 }
 0xd33   :  { %v5045_v27 = vpop.eup %5044 }
 0xd34   :  { %1437 = vrot.lane.b32.xlu0 %v5045_v27, %s5398_s5  ;;  %v5047_v31 = vpop.eup %5046 }
 0xd35   :  { %v1401_v32 = vadd.f32 1.0, %v5047_v31  ;;  %v5049_v33 = vpop.eup %5048 }
 0xd36   :  { %v1428_v34 = vadd.f32 1.0, %v5049_v33 }
 0xd37   :  { %5050 = vrcp.f32 %v1401_v32 }
 0xd38   :  { %5052 = vrcp.f32 %v1428_v34 }
 0xd44   :  { %v5051_v35 = vpop.eup %5050 }
 0xd45   :  { %v5053_v39 = vpop.eup %5052  ;;  %v1408_v51 = vmul.f32 %v5051_v35, %v1406_v43 }
 0xd46   :  { %v1435_v55 = vmul.f32 %v5053_v39, %v1433_v54 }
 0xda0   :  { %v1411_v36 = vpop.permute.xlu1 %1410 }
 0xda1   :  { %v1413_v37 = vmul.f32 %v5051_v35, %v1411_v36 }
 0xda3   :  { %1415 = vrot.lane.b32.xlu1 %v1413_v37, %s5399_s15 }
 0xda6   :  { %v1438_v40 = vpop.permute.xlu0 %1437 }
 0xda7   :  { %v1440_v42 = vmul.f32 %v5053_v39, %v1438_v40 }
 0xda9   :  { %1442 = vrot.lane.b32.xlu0 %v1440_v42, %s5399_s15 }
 0xe15   :  { %v1416_v52 = vpop.permute.xlu1 %1415 }
 0xe16   :  { %v5783_v53 = vadd.f32 %v1416_v52, %v1408_v51 }
 0xe18   :  { %5054 = vtanh.f32 %v5783_v53  ;;  %v1627_v31 = vrot.slane %v5783_v53, 6 }
 0xe1b   :  { %v1443_v56 = vpop.permute.xlu0 %1442 }
 0xe1c   :  { %v5787_v59 = vadd.f32 %v1443_v56, %v1435_v55 }
 0xe1e   :  { %5056 = vtanh.f32 %v5787_v59 }
 0xe25   :  { %v5055_v61 = vpop.eup %5054 }
 0xe26   :  { %1421 = vrot.lane.b32.xlu1 %v5055_v61, %s5398_s5  ;;  %v5267_v61 = vld [vmem:[%s6473_s3 + $0x10] sm:$0xff] }
 0xe2b   :  { %v5057_v62 = vpop.eup %5056 }
 0xe2c   :  { %1448 = vrot.lane.b32.xlu0 %v5057_v62, %s5398_s5  ;;  %v5268_v62 = vld [vmem:[%s6473_s3 + $0x8] sm:$0xff] }
 0xe98   :  { %v1422_v63 = vpop.permute.xlu1 %1421 }
 0xe99   :  { %v1424_v0 = vmul.f32 %v5051_v35, %v1422_v63  ;;  %v1654_v35 = vrot.slane %v5787_v59, 2  ;;  %v5266_v59 = vld [vmem:[%s6473_s3 + $0x18] sm:$0xff] }
 0xe9b   :  { %1453 = vrot.lane.b32.xlu1 %v1424_v0, %s5399_s15  ;;  %v5269_v0 = vld [vmem:[%s6473_s3] sm:$0xff] }
 0xe9e   :  { %v1449_v2 = vpop.permute.xlu0 %1448 }
 0xe9f   :  { %v5793_v3 = vmul.f32 %v5053_v39, %v1449_v2  ;;  %v5270_v2 = vld [vmem:[#allocation6 + $0x18] sm:$0xff] }
 0xea1   :  { %v1540_v4 = vrot.slane %v5793_v3, 6 }
 0xea3   :  { %1541 = vrot.lane.b32.xlu0 %v1540_v4, %s5399_s15  ;;  %v5271_v4 = vld [vmem:[#allocation6 + $0x10] sm:$0xff] }
 0xf0d   :  { %v5797_v5 = vpop.permute.xlu1 %1453 }
 0xf0e   :  { %4710 = vmatmul.mubr.msk.f32.vlgmr.msra.gmra.mxu1 %vm360_vm8, %v5797_v5 }
 0xf0f   :  { %4724 = vmatpush3.msra.mxu1 %v5525_v41  ;;  %4731 = vmatprep.mubr.msk.f32.mxu1 %vm5397_vm5, %v5396_v1 }
 0xf10   :  { %4725 = vmatprep.subr.mxu1 %v5396_v1 }
 0xf11   :  { %4726 = vmatpush3.msra.mxu1 %v5532_v44 }
 0xf12   :  { %4727 = vmatprep.subr.mxu1 %v5396_v1 }
 0xf13   :  { %4728 = vmatpush3.msra.mxu1 %v5539_v45  ;;  %v1462_v45 = vld [vmem:[#allocation2 + $0x18] sm:$0xc] }
 0xf14   :  { %4729 = vmatprep.subr.mxu1 %v5396_v1 }
 0xf15   :  { %v1542_v6 = vpop.permute.xlu0 %1541  ;;  %4730 = vmatpush3.msra.mxu1 %v5546_v46 }
 0xf16   :  { %4721 = vmatmul.mubr.msk.f32.vlgmr.msra.gmra.mxu0 %vm360_vm8, %v1542_v6  ;;  %4745 = vmatprep.subr.mxu1 %v5396_v1 }
 0xf17   :  { %4735 = vmatpush3.msra.mxu0 %v5553_v47  ;;  %4742 = vmatprep.mubr.msk.f32.mxu0 %vm5397_vm5, %v5396_v1 }
 0xf18   :  { %4736 = vmatprep.subr.mxu0 %v5396_v1 }
 0xf19   :  { %4737 = vmatpush3.msra.mxu0 %v5556_v48 }
 0xf1a   :  { %4738 = vmatprep.subr.mxu0 %v5396_v1 }
 0xf1b   :  { %4739 = vmatpush3.msra.mxu0 %v5562_v49 }
 0xf1c   :  { %4740 = vmatprep.subr.mxu0 %v5396_v1 }
 0xf1d   :  { %4741 = vmatpush3.msra.mxu0 %v5566_v50 }
 0xf1e   :  { %4756 = vmatprep.subr.mxu0 %v5396_v1 }
 0xfce   :  { %v1531_v41 = vpop.f32.mrf.mxu1 }
 0xfcf   :  { %v1536_v44 = vrot.slane %v1531_v41, 6 }
 0xfd0   :  { %v4711_v46 = vpop.f32.mrf.mxu1 }
 0xfd1   :  { %v1538_v47 = vadd.f32 %v1536_v44, %v1462_v45  ;;  %v1683_v44 = vld [vmem:[#allocation2 + $0x18] sm:$0x30] }
 0xfd3   :  { %5058 = vtanh.f32 %v1538_v47  ;;  %v4350_v15 = vmul.f32 -1.442695, %v1538_v47 }
 0xfd6   :  { %v1611_v7 = vpop.f32.mrf.mxu0 }
 0xfd7   :  { %v1616_v9 = vrot.slane %v1611_v7, 4 }
 0xfd8   :  { %v4722_v48 = vpop.f32.mrf.mxu0 }
 0xfd9   :  { %v1618_v12 = vadd.f32 %v1616_v9, %v1539_v10  ;;  %v1763_v9 = vld [vmem:[#allocation2] sm:$0xc] }
 0xfdb   :  { %5060 = vtanh.f32 %v1618_v12  ;;  %v4351_v17 = vmul.f32 -1.442695, %v1618_v12 }
 0xfdc   :  { %5062 = vpow2.f32 %v4350_v15 }
 0xfdd   :  { %5064 = vpow2.f32 %v4351_v17 }
 0xfe0   :  { %v5059_v13 = vpop.eup %5058 }
 0xfe1   :  { %1631 = vrot.lane.b32.xlu1 %v5059_v13, %s5398_s5 }
 0xfe8   :  { %v5061_v14 = vpop.eup %5060 }
 0xfe9   :  { %1658 = vrot.lane.b32.xlu0 %v5061_v14, %s5398_s5  ;;  %v5063_v18 = vpop.eup %5062 }
 0xfea   :  { %v1622_v20 = vadd.f32 1.0, %v5063_v18  ;;  %v5065_v21 = vpop.eup %5064 }
 0xfeb   :  { %v1649_v22 = vadd.f32 1.0, %v5065_v21 }
 0xfec   :  { %5066 = vrcp.f32 %v1622_v20 }
 0xfed   :  { %5068 = vrcp.f32 %v1649_v22 }
 0xff9   :  { %v5067_v23 = vpop.eup %5066 }
 0xffa   :  { %v5069_v27 = vpop.eup %5068  ;;  %v1629_v32 = vmul.f32 %v5067_v23, %v1627_v31 }
 0xffb   :  { %v1656_v36 = vmul.f32 %v5069_v27, %v1654_v35 }
0x1053   :  { %v1632_v24 = vpop.permute.xlu1 %1631 }
0x1054   :  { %v1634_v26 = vmul.f32 %v5067_v23, %v1632_v24 }
0x1056   :  { %1636 = vrot.lane.b32.xlu1 %v1634_v26, %s5399_s15 }
0x105b   :  { %v1659_v29 = vpop.permute.xlu0 %1658 }
0x105c   :  { %v1661_v30 = vmul.f32 %v5069_v27, %v1659_v29 }
0x105e   :  { %1663 = vrot.lane.b32.xlu0 %v1661_v30, %s5399_s15 }
0x10c8   :  { %v1637_v33 = vpop.permute.xlu1 %1636 }
0x10c9   :  { %v5827_v34 = vadd.f32 %v1637_v33, %v1629_v32 }
0x10cb   :  { %5070 = vtanh.f32 %v5827_v34 }
0x10d0   :  { %v1664_v37 = vpop.permute.xlu0 %1663 }
0x10d1   :  { %v5831_v39 = vadd.f32 %v1664_v37, %v1656_v36 }
0x10d3   :  { %5072 = vtanh.f32 %v5831_v39  ;;  %v1878_v32 = vrot.slane %v5831_v39, 2 }
0x10d8   :  { %v5071_v40 = vpop.eup %5070 }
0x10d9   :  { %1642 = vrot.lane.b32.xlu1 %v5071_v40, %s5398_s5 }
0x10e0   :  { %v5073_v42 = vpop.eup %5072 }
0x10e1   :  { %1669 = vrot.lane.b32.xlu0 %v5073_v42, %s5398_s5 }
0x114b   :  { %v1643_v43 = vpop.permute.xlu1 %1642 }
0x114c   :  { %v5836_v51 = vmul.f32 %v5067_v23, %v1643_v43 }
0x114e   :  { %v1684_v52 = vrot.slane %v5836_v51, 2 }
0x1150   :  { %1685 = vrot.lane.b32.xlu1 %v1684_v52, %s5399_s15 }
0x1153   :  { %v1670_v53 = vpop.permute.xlu0 %1669 }
0x1154   :  { %v5840_v54 = vmul.f32 %v5069_v27, %v1670_v53  ;;  %v1851_v27 = vrot.slane %v5827_v34, 6 }
0x1156   :  { %v1764_v55 = vrot.slane %v5840_v54, 4 }
0x1158   :  { %1765 = vrot.lane.b32.xlu0 %v1764_v55, %s5399_s15 }
0x11c2   :  { %v1686_v56 = vpop.permute.xlu1 %1685 }
0x11c3   :  { %4732 = vmatmul.mubr.msk.f32.vlgmr.msra.gmra.mxu1 %vm360_vm8, %v1686_v56 }
0x11c4   :  { %4746 = vmatpush3.msra.mxu1 %v5266_v59  ;;  %4753 = vmatprep.mubr.msk.f32.mxu1 %vm5397_vm5, %v5396_v1 }
0x11c5   :  { %4747 = vmatprep.subr.mxu1 %v5396_v1 }
0x11c6   :  { %4748 = vmatpush3.msra.mxu1 %v5267_v61 }
0x11c7   :  { %4749 = vmatprep.subr.mxu1 %v5396_v1 }
0x11c8   :  { %4750 = vmatpush3.msra.mxu1 %v5268_v62  ;;  %v1907_v62 = vld [vmem:[#allocation2 + $0x18] sm:$0xc0] }
0x11c9   :  { %4751 = vmatprep.subr.mxu1 %v5396_v1 }
0x11ca   :  { %v1766_v63 = vpop.permute.xlu0 %1765  ;;  %4752 = vmatpush3.msra.mxu1 %v5269_v0 }
0x11cb   :  { %4743 = vmatmul.mubr.msk.f32.vlgmr.msra.gmra.mxu0 %vm360_vm8, %v1766_v63 }
0x11cc   :  { %4757 = vmatpush3.msra.mxu0 %v5270_v2  ;;  %4764 = vmatprep.mubr.msk.f32.mxu0 %vm5397_vm5, %v5396_v1  ;;  %v1987_v2 = vld [vmem:[#allocation2] sm:$0x3] }
0x11cd   :  { %4758 = vmatprep.subr.mxu0 %v5396_v1 }
0x11ce   :  { %4759 = vmatpush3.msra.mxu0 %v5271_v4 }
0x11cf   :  { %4760 = vmatprep.subr.mxu0 %v5396_v1 }
0x11d0   :  { %4761 = vmatpush3.msra.mxu0 %v5562_v49 }
0x11d1   :  { %4762 = vmatprep.subr.mxu0 %v5396_v1 }
0x11d2   :  { %4763 = vmatpush3.msra.mxu0 %v5566_v50 }
0x11d3   :  { %4767 = vmatprep.subr.mxu0 %v5396_v1 }
0x1283   :  { %v1755_v6 = vpop.f32.mrf.mxu1 }
0x1284   :  { %v1760_v41 = vrot.slane %v1755_v6, 4 }
0x1285   :  { %v4733_v45 = vpop.f32.mrf.mxu1 }
0x1286   :  { %v1762_v46 = vadd.f32 %v1760_v41, %v1683_v44 }
0x1288   :  { %5074 = vtanh.f32 %v1762_v46  ;;  %v4354_v50 = vmul.f32 -1.442695, %v1762_v46 }
0x128b   :  { %v1835_v47 = vpop.f32.mrf.mxu0 }
0x128c   :  { %v1840_v7 = vrot.slane %v1835_v47, 6 }
0x128d   :  { %v4744_v10 = vpop.f32.mrf.mxu0 }
0x128e   :  { %v1842_v48 = vadd.f32 %v1840_v7, %v1763_v9 }
0x1290   :  { %5076 = vtanh.f32 %v1842_v48  ;;  %v4355_v13 = vmul.f32 -1.442695, %v1842_v48 }
0x1291   :  { %5078 = vpow2.f32 %v4354_v50 }
0x1292   :  { %5080 = vpow2.f32 %v4355_v13 }
0x1295   :  { %v5075_v12 = vpop.eup %5074 }
0x1296   :  { %1855 = vrot.lane.b32.xlu1 %v5075_v12, %s5398_s5 }
0x129d   :  { %v5077_v49 = vpop.eup %5076 }
0x129e   :  { %1882 = vrot.lane.b32.xlu0 %v5077_v49, %s5398_s5  ;;  %v5079_v14 = vpop.eup %5078 }
0x129f   :  { %v1846_v15 = vadd.f32 1.0, %v5079_v14  ;;  %v5081_v17 = vpop.eup %5080 }
0x12a0   :  { %v1873_v18 = vadd.f32 1.0, %v5081_v17 }
0x12a1   :  { %5082 = vrcp.f32 %v1846_v15 }
0x12a2   :  { %5084 = vrcp.f32 %v1873_v18 }
0x12ae   :  { %v5083_v20 = vpop.eup %5082 }
0x12af   :  { %v5085_v23 = vpop.eup %5084  ;;  %v1853_v29 = vmul.f32 %v5083_v20, %v1851_v27 }
0x12b0   :  { %v1880_v33 = vmul.f32 %v5085_v23, %v1878_v32  ;;  %v2143_v32 = vld [vmem:[#allocation8 + $0x28] sm:$0xff] }
0x1308   :  { %v1856_v21 = vpop.permute.xlu1 %1855 }
0x1309   :  { %v1858_v22 = vmul.f32 %v5083_v20, %v1856_v21 }
0x130b   :  { %1860 = vrot.lane.b32.xlu1 %v1858_v22, %s5399_s15 }
0x1310   :  { %v1883_v24 = vpop.permute.xlu0 %1882 }
0x1311   :  { %v1885_v26 = vmul.f32 %v5085_v23, %v1883_v24 }
0x1313   :  { %1887 = vrot.lane.b32.xlu0 %v1885_v26, %s5399_s15 }
0x137d   :  { %v1861_v30 = vpop.permute.xlu1 %1860 }
0x137e   :  { %v1863_v31 = vadd.f32 %v1861_v30, %v1853_v29  ;;  %v2153_v30 = vld [vmem:[#allocation8 + $0x78] sm:$0xff] }
0x137f   :  { %2189 = vmatprep.subr.mxu1 %v2153_v30 }
0x1380   :  { %5086 = vtanh.f32 %v1863_v31  ;;  %v2072_v17 = vrot.slane %v1863_v31, 6  ;;  %v2152_v31 = vld [vmem:[#allocation8 + $0x70] sm:$0xff] }
0x1385   :  { %v1888_v35 = vpop.permute.xlu0 %1887 }
0x1386   :  { %v1890_v36 = vadd.f32 %v1888_v35, %v1880_v33  ;;  %v2141_v33 = vld [vmem:[#allocation8 + $0x18] sm:$0xff]  ;;  %v2140_v35 = vld [vmem:[#allocation8 + $0x10] sm:$0xff] }
0x1388   :  { %5088 = vtanh.f32 %v1890_v36  ;;  %v2099_v22 = vrot.slane %v1890_v36, 2  ;;  %v5920_v36 = vld [vmem:[#allocation9 + $0x18] sm:$0xff] }
0x138d   :  { %v5087_v37 = vpop.eup %5086 }
0x138e   :  { %1866 = vrot.lane.b32.xlu1 %v5087_v37, %s5398_s5 }
0x1395   :  { %v5089_v40 = vpop.eup %5088 }
0x1396   :  { %1893 = vrot.lane.b32.xlu0 %v5089_v40, %s5398_s5  ;;  %v2139_v40 = vld [vmem:[#allocation8 + $0x8] sm:$0xff] }
0x1400   :  { %v1867_v42 = vpop.permute.xlu1 %1866 }
0x1401   :  { %v5879_v43 = vmul.f32 %v5083_v20, %v1867_v42  ;;  %v2138_v42 = vld [vmem:[#allocation8] sm:$0xff] }
0x1403   :  { %v1908_v34 = vrot.slane %v5879_v43, 4 }
0x1405   :  { %1909 = vrot.lane.b32.xlu1 %v1908_v34, %s5399_s15  ;;  %v5923_v34 = vld [vmem:[#allocation9 + $0x10] sm:$0xff] }
0x1408   :  { %v1894_v52 = vpop.permute.xlu0 %1893 }
0x1409   :  { %v1896_v53 = vmul.f32 %v5085_v23, %v1894_v52 }
0x140b   :  { %v1988_v39 = vrot.slane %v1896_v53, 2 }
0x140d   :  { %1989 = vrot.lane.b32.xlu0 %v1988_v39, %s5399_s15  ;;  %v5932_v39 = vld [vmem:[#allocation9] sm:$0xff] }
0x1477   :  { %v1910_v55 = vpop.permute.xlu1 %1909 }
0x1478   :  { %4754 = vmatmul.mubr.msk.f32.vlgmr.msra.gmra.mxu1 %vm360_vm8, %v1910_v55 }
0x1479   :  { %2237 = vmatprep.mubr.f32.mxu1 %v5396_v1  ;;  %2190 = vmatpush1.msra.mxu1 %v2152_v31 }
0x147f   :  { %v1990_v56 = vpop.permute.xlu0 %1989 }
0x1480   :  { %4765 = vmatmul.mubr.msk.f32.vlgmr.msra.gmra.mxu0 %vm360_vm8, %v1990_v56 }
0x1481   :  { %4775 = vmatprep.mubr.msk.f32.mxu0 %vm5397_vm5, %v5396_v1  ;;  %4768 = vmatpush3.msra.mxu0 %v5920_v36 }
0x1482   :  { %4769 = vmatprep.subr.mxu0 %v5396_v1 }
0x1483   :  { %4770 = vmatpush3.msra.mxu0 %v5923_v34 }
0x1484   :  { %4771 = vmatprep.subr.mxu0 %v5396_v1 }
0x1538   :  { %v1979_v59 = vpop.f32.mrf.mxu1 }
0x1539   :  { %v1984_v61 = vrot.slane %v1979_v59, 2 }
0x153a   :  { %v4755_v63 = vpop.f32.mrf.mxu1 }
0x153b   :  { %v1986_v0 = vadd.f32 %v1984_v61, %v1907_v62  ;;  %v5939_v61 = vld [vmem:[#allocation11 + $0x18] sm:$0xff]  ;;  %v5944_v63 = vld [vmem:[#allocation11 + $0x10] sm:$0xff] }
0x153d   :  { %5090 = vtanh.f32 %v1986_v0  ;;  %v4358_v46 = vmul.f32 -1.442695, %v1986_v0 }
0x1540   :  { %v2059_v4 = vpop.f32.mrf.mxu0 }
0x1541   :  { %v2063_v6 = vadd.f32 %v2059_v4, %v1987_v2  ;;  %v5951_v2 = vld [vmem:[#allocation11 + $0x8] sm:$0xff] }
0x1542   :  { %v4766_v41 = vpop.f32.mrf.mxu0 }
0x1543   :  { %5092 = vtanh.f32 %v2063_v6  ;;  %v4359_v47 = vmul.f32 -1.442695, %v2063_v6  ;;  %v5958_v6 = vld [vmem:[#allocation11] sm:$0xff] }
0x1544   :  { %5094 = vpow2.f32 %v4358_v46 }
0x1545   :  { %5096 = vpow2.f32 %v4359_v47 }
0x154a   :  { %v5091_v44 = vpop.eup %5090 }
0x154b   :  { %2076 = vrot.lane.b32.xlu1 %v5091_v44, %s5398_s5 }
0x1550   :  { %v5093_v45 = vpop.eup %5092 }
0x1551   :  { %2103 = vrot.lane.b32.xlu0 %v5093_v45, %s5398_s5  ;;  %v5095_v7 = vpop.eup %5094 }
0x1552   :  { %v2067_v9 = vadd.f32 1.0, %v5095_v7  ;;  %v5097_v10 = vpop.eup %5096 }
0x1553   :  { %v2094_v48 = vadd.f32 1.0, %v5097_v10 }
0x1554   :  { %5098 = vrcp.f32 %v2067_v9 }
0x1555   :  { %5100 = vrcp.f32 %v2094_v48 }
0x1561   :  { %v5099_v12 = vpop.eup %5098 }
0x1562   :  { %v5892_v13 = vpop.eup %5100  ;;  %v2074_v18 = vmul.f32 %v5099_v12, %v2072_v17 }
0x1563   :  { %v2101_v23 = vmul.f32 %v5892_v13, %v2099_v22 }
0x15bd   :  { %v2077_v49 = vpop.permute.xlu1 %2076 }
0x15be   :  { %v2079_v50 = vmul.f32 %v5099_v12, %v2077_v49 }
0x15c0   :  { %2081 = vrot.lane.b32.xlu1 %v2079_v50, %s5399_s15 }
0x15c3   :  { %v2104_v14 = vpop.permute.xlu0 %2103 }
0x15c4   :  { %v2106_v15 = vmul.f32 %v5892_v13, %v2104_v14  ;;  %v2154_v14 = vld [vmem:[%s6479_s9] sm:$0x3] }
0x15c5   :  { %v2163_v17 = vrot.slane %v2154_v14, %v260_v60 }
0x15c6   :  { %2108 = vrot.lane.b32.xlu0 %v2106_v15, %s5399_s15  ;;  %v2159_v15 = vrot.slane %v2154_v14, %v256_v58 }
0x1632   :  { %v2082_v20 = vpop.permute.xlu1 %2081 }
0x1633   :  { %v2084_v21 = vadd.f32 %v2082_v20, %v2074_v18 }
0x1635   :  { %5102 = vtanh.f32 %v2084_v21 }
0x1638   :  { %v2109_v24 = vpop.permute.xlu0 %2108 }
0x1639   :  { %v2111_v26 = vadd.f32 %v2109_v24, %v2101_v23 }
0x163b   :  { %5104 = vtanh.f32 %v2111_v26 }
0x1642   :  { %v5103_v27 = vpop.eup %5102 }
0x1643   :  { %2087 = vrot.lane.b32.xlu1 %v5103_v27, %s5398_s5 }
0x1647   :  { %1008 = vrot.lane.b32.xlu1 %v5704_v16, %s5399_s15  ;;  %v2150_v16 = vld [vmem:[#allocation8 + $0x60] sm:$0xff] }
0x1648   :  { %v5105_v29 = vpop.eup %5104 }
0x1649   :  { %2114 = vrot.lane.b32.xlu0 %v5105_v29, %s5398_s5 }
0x164b   :  { %1458 = vrot.lane.b32.xlu1 %v5793_v3, %s5398_s5  ;;  %v2147_v3 = vld [vmem:[#allocation8 + $0x48] sm:$0xff] }
0x164d   :  { %782 = vrot.lane.b32.xlu0 %v5660_v25, %s5399_s15  ;;  %v2151_v25 = vld [vmem:[#allocation8 + $0x68] sm:$0xff] }
0x164e   :  { %2191 = vmatprep.subr.mxu1 %v2151_v25 }
0x164f   :  { %1903 = vrot.lane.b32.xlu1 %v1896_v53, %s5398_s5  ;;  %2192 = vmatpush1.msra.mxu1 %v2150_v16  ;;  %v5928_v53 = vld [vmem:[#allocation9 + $0x8] sm:$0xff] }
0x1650   :  { %4772 = vmatpush3.msra.mxu0 %v5928_v53 }
0x1651   :  { %1231 = vrot.lane.b32.xlu0 %v5748_v8, %s5399_s15  ;;  %v2149_v8 = vld [vmem:[#allocation8 + $0x58] sm:$0xff]  ;;  %4773 = vmatprep.subr.mxu0 %v5396_v1 }
0x1652   :  { %2193 = vmatprep.subr.mxu1 %v2149_v8  ;;  %4774 = vmatpush3.msra.mxu0 %v5932_v39 }
0x1653   :  { %565 = vrot.lane.b32.xlu1 %v5619_v38, %s5398_s5  ;;  %v2148_v38 = vld [vmem:[#allocation8 + $0x50] sm:$0xff]  ;;  %4778 = vmatprep.subr.mxu0 %v5396_v1 }
0x1654   :  { %2194 = vmatpush1.msra.mxu1 %v2148_v38  ;;  %4776 = vmatmul.mubr.f32.vlgmr.msra.gmra.mxu0 %v5396_v1 }
0x1655   :  { %1679 = vrot.lane.b32.xlu0 %v5840_v54, %s5398_s5  ;;  %v2146_v54 = vld [vmem:[#allocation8 + $0x40] sm:$0xff]  ;;  %2195 = vmatprep.subr.mxu1 %v2147_v3 }
0x1656   :  { %2196 = vmatpush1.msra.mxu1 %v2146_v54  ;;  %4779 = vmatpush3.msra.mxu0 %v5939_v61 }
0x1657   :  { %1014 = vrot.lane.b32.xlu1 %v5708_v19, %s5398_s5  ;;  %v2145_v19 = vld [vmem:[#allocation8 + $0x38] sm:$0xff]  ;;  %4786 = vmatprep.mubr.msk.f32.mxu0 %vm5397_vm5, %v5396_v1 }
0x1658   :  { %2197 = vmatprep.subr.mxu1 %v2145_v19  ;;  %4780 = vmatprep.subr.mxu0 %v5396_v1 }
0x1659   :  { %788 = vrot.lane.b32.xlu0 %v5664_v28, %s5398_s5  ;;  %v2144_v28 = vld [vmem:[#allocation8 + $0x30] sm:$0xff]  ;;  %4781 = vmatpush3.msra.mxu0 %v5944_v63 }
0x165a   :  { %2198 = vmatpush1.msra.mxu1 %v2144_v28  ;;  %4782 = vmatprep.subr.mxu0 %v5396_v1 }
0x165b   :  { %1674 = vrot.lane.b32.xlu1 %v5836_v51, %s5399_s15  ;;  %v2142_v51 = vld [vmem:[#allocation8 + $0x20] sm:$0xff]  ;;  %2199 = vmatprep.subr.mxu1 %v2143_v32 }
0x165c   :  { %2200 = vmatpush1.msra.mxu1 %v2142_v51  ;;  %4783 = vmatpush3.msra.mxu0 %v5951_v2 }
0x165d   :  { %1237 = vrot.lane.b32.xlu0 %v5752_v11, %s5398_s5  ;;  %2201 = vmatprep.subr.mxu1 %v2141_v33 }
0x165e   :  { %2202 = vmatpush1.msra.mxu1 %v2140_v35  ;;  %4784 = vmatprep.subr.mxu0 %v5396_v1 }
0x165f   :  { %2203 = vmatprep.subr.mxu1 %v2139_v40  ;;  %4785 = vmatpush3.msra.mxu0 %v5958_v6 }
0x1660   :  { %2204 = vmatpush1.msra.mxu1 %v2138_v42  ;;  %4787 = vmatmul.mubr.f32.vlgmr.msra.gmra.mxu0 %v5396_v1 }
0x1661   :  { %4789 = vmatprep.subr.mxu1 %v5396_v1  ;;  %4800 = vmatprep.subr.mxu0 %v5396_v1 }
0x1662   :  { %4801 = vmatpush3.msra.mxu0 %v5939_v61  ;;  %4808 = vmatprep.mubr.msk.f32.mxu0 %vm5397_vm5, %v5396_v1 }
0x1663   :  { %4802 = vmatprep.subr.mxu0 %v5396_v1 }
0x1664   :  { %4803 = vmatpush3.msra.mxu0 %v5944_v63 }
0x1665   :  { %4804 = vmatprep.subr.mxu0 %v5396_v1 }
0x1666   :  { %4805 = vmatpush3.msra.mxu0 %v5951_v2 }
0x1667   :  { %4806 = vmatprep.subr.mxu0 %v5396_v1 }
0x1668   :  { %4807 = vmatpush3.msra.mxu0 %v5958_v6 }
0x1669   :  { %4822 = vmatprep.subr.mxu0 %v5396_v1 }
0x16b5   :  { %v2088_v11 = vpop.permute.xlu1 %2087 }
0x16b6   :  { %v2090_v37 = vmul.f32 %v5099_v12, %v2088_v11 }
0x16b8   :  { %2119 = vrot.lane.b32.xlu1 %v2090_v37, %s5399_s15 }
0x16b9   :  { %v1009_v52 = vpop.permute.xlu1 %1008 }
0x16ba   :  { %1012 = vst.msk [vmem:[#allocation3] sm:$0x30] %vm1011_vm9, %v1009_v52 }
0x16bb   :  { %v2115_v55 = vpop.permute.xlu0 %2114 }
0x16bc   :  { %v2117_v56 = vmul.f32 %v5892_v13, %v2115_v55 }
0x16bd   :  { %v1459_v59 = vpop.permute.xlu1 %1458 }
0x16be   :  { %2124 = vrot.lane.b32.xlu0 %v2117_v56, %s5398_s5 }
0x16bf   :  { %v783_v62 = vpop.permute.xlu0 %782 }
0x16c0   :  { %786 = vst.msk [vmem:[#allocation3] sm:$0xc] %vm785_vm10, %v783_v62 }
0x16c1   :  { %v1904_v0 = vpop.permute.xlu1 %1903 }
0x16c2   :  { %1906 = vst.msk [vmem:[#allocation3] sm:$0xc] %vm1017_vm11, %v1904_v0  ;;  %1898 = vrot.lane.b32.xlu0 %v5879_v43, %s5399_s15 }
0x16c3   :  { %v1232_v4 = vpop.permute.xlu0 %1231 }
0x16c4   :  { %1235 = vst.msk [vmem:[#allocation3] sm:$0xc0] %vm1234_vm12, %v1232_v4 }
0x16c5   :  { %1461 = vst.msk [vmem:[#allocation3] sm:$0xc0] %vm568_vm13, %v1459_v59  ;;  %v566_v41 = vpop.permute.xlu1 %565 }
0x16c6   :  { %569 = vst.msk [vmem:[#allocation3 + $0x8] sm:$0xc0] %vm568_vm13, %v566_v41 }
0x16c7   :  { %v1680_v43 = vpop.permute.xlu0 %1679 }
0x16c8   :  { %1682 = vst.msk [vmem:[#allocation3] sm:$0x30] %vm791_vm14, %v1680_v43 }
0x16c9   :  { %v1015_v44 = vpop.permute.xlu1 %1014 }
0x16ca   :  { %1018 = vst.msk [vmem:[#allocation3 + $0x8] sm:$0xc] %vm1017_vm11, %v1015_v44 }
0x16cb   :  { %v789_v45 = vpop.permute.xlu0 %788 }
0x16cc   :  { %792 = vst.msk [vmem:[#allocation3 + $0x8] sm:$0x30] %vm791_vm14, %v789_v45 }
0x16cd   :  { %v1675_v46 = vpop.permute.xlu1 %1674 }
0x16ce   :  { %1677 = vst.msk [vmem:[#allocation3 + $0x8] sm:$0xc] %vm785_vm10, %v1675_v46 }
0x16cf   :  { %v1238_v47 = vpop.permute.xlu0 %1237 }
0x16d0   :  { %1241 = vst.msk [vmem:[#allocation3 + $0x8] sm:$0x3] %vm1240_vm15, %v1238_v47 }
0x16d1   :  { %1456 = vst.msk [vmem:[#allocation3 + $0x8] sm:$0x3] %vm562_vm7, %v5797_v5 }
0x1714   :  { %v2321_v12 = vpop.f32.mrf.mxu0 }
0x1716   :  { %v4777_v49 = vpop.f32.mrf.mxu0 }
0x1720   :  { %v2393_v50 = vpop.f32.mrf.mxu0 }
0x1721   :  { %v2398_v31 = vrot.slane %v2393_v50, 2 }
0x1722   :  { %v4788_v13 = vpop.f32.mrf.mxu0 }
0x172a   :  { %v2120_v7 = vpop.permute.xlu1 %2119 }
0x172b   :  { %2122 = vst.msk [vmem:[#allocation3 + $0x8] sm:$0xc0] %vm1234_vm12, %v2120_v7 }
0x1730   :  { %v2125_v9 = vpop.permute.xlu0 %2124 }
0x1731   :  { %2127 = vst.msk [vmem:[#allocation3] sm:$0x3] %vm1240_vm15, %v2125_v9 }
0x1734   :  { %v1899_v10 = vpop.permute.xlu0 %1898 }
0x1735   :  { %1901 = vst.msk [vmem:[#allocation3 + $0x8] sm:$0x30] %vm1011_vm9, %v1899_v10 }
0x1738   :  { %v2128_v48 = vld [vmem:[#allocation3] sm:$0xff] }
0x1739   :  { %4360 = vmatmul.mubr.msk.f32.vlgmr.msra.gmra.mxu1 %vm2166_vm0, %v2128_v48 }
0x173a   :  { %2243 = vmatprep.mubr.f32.mxu1 %v5396_v1  ;;  %4790 = vmatpush3.msra.mxu1 %v5920_v36 }
0x173b   :  { %4791 = vmatprep.subr.mxu1 %v5396_v1 }
0x173c   :  { %v2129_v5 = vld [vmem:[#allocation3 + $0x8] sm:$0xff]  ;;  %4792 = vmatpush3.msra.mxu1 %v5923_v34 }
0x173d   :  { %4361 = vmatmul.mubr.msk.f32.gmra.mxu1 %vm2166_vm0, %v2129_v5  ;;  %4793 = vmatprep.subr.mxu1 %v5396_v1 }
0x173e   :  { %4794 = vmatpush3.msra.mxu1 %v5928_v53  ;;  %4797 = vmatprep.mubr.msk.f32.mxu1 %vm5397_vm5, %v5396_v1 }
0x173f   :  { %4795 = vmatprep.subr.mxu1 %v5396_v1 }
0x1740   :  { %4796 = vmatpush3.msra.mxu1 %v5932_v39 }
0x1741   :  { %4811 = vmatprep.subr.mxu1 %v5396_v1 }
0x17f9   :  { %v2239_v18 = vpop.f32.mrf.mxu1 }
0x17fa   :  { %v2240_v20 = vadd.f32 %v2239_v18, %v2159_v15 }
0x17fb   :  { %v2241_v21 = vpop.f32.mrf.mxu1 }
0x17fc   :  { %2250 = vst [vmem:[#allocation2 + $0x10] sm:$0xff] %v2240_v20  ;;  %v2242_v22 = vadd.f32 %v2241_v21, %v2163_v17 }
0x17fd   :  { %v2245_v23 = vpop.f32.mrf.mxu1 }
0x17fe   :  { %2251 = vst [vmem:[#allocation2] sm:$0xff] %v2242_v22  ;;  %v2246_v24 = vadd.f32 %v2245_v23, %v2159_v15 }
0x17ff   :  { %v2247_v26 = vpop.f32.mrf.mxu1 }
0x1800   :  { %2252 = vst [vmem:[#allocation2 + $0x18] sm:$0xff] %v2246_v24  ;;  %v2248_v27 = vadd.f32 %v2247_v26, %v2163_v17 }
0x1802   :  { %2253 = vst [vmem:[#allocation2 + $0x8] sm:$0xff] %v2248_v27 }
0x1803   :  { %v2254_v29 = vld [vmem:[#allocation2 + $0x10] sm:$0x3]  ;;  %v2459_v10 = vld [vmem:[#allocation2 + $0x10] sm:$0xc] }
0x1804   :  { %v2325_v30 = vadd.f32 %v2321_v12, %v2254_v29 }
0x1806   :  { %5106 = vtanh.f32 %v2325_v30  ;;  %v4362_v8 = vmul.f32 -1.442695, %v2325_v30 }
0x1809   :  { %v2326_v58 = vld [vmem:[#allocation2 + $0x8] sm:$0xc0]  ;;  %v2536_v50 = vld [vmem:[#allocation2 + $0x8] sm:$0x30] }
0x180a   :  { %v2400_v25 = vadd.f32 %v2398_v31, %v2326_v58 }
0x180c   :  { %5108 = vtanh.f32 %v2400_v25  ;;  %v4363_v38 = vmul.f32 -1.442695, %v2400_v25 }
0x180d   :  { %5110 = vpow2.f32 %v4362_v8 }
0x180e   :  { %5112 = vpow2.f32 %v4363_v38 }
0x1813   :  { %v5107_v60 = vpop.eup %5106 }
0x1814   :  { %2410 = vrot.lane.b32.xlu1 %v5107_v60, %s5398_s5 }
0x1819   :  { %v5109_v16 = vpop.eup %5108 }
0x181a   :  { %2434 = vrot.lane.b32.xlu0 %v5109_v16, %s5398_s5  ;;  %v5111_v3 = vpop.eup %5110 }
0x181b   :  { %v2404_v54 = vadd.f32 1.0, %v5111_v3  ;;  %v5113_v19 = vpop.eup %5112 }
0x181c   :  { %v2428_v28 = vadd.f32 1.0, %v5113_v19 }
0x181d   :  { %5114 = vrcp.f32 %v2404_v54 }
0x181e   :  { %5116 = vrcp.f32 %v2428_v28 }
0x182a   :  { %v5115_v32 = vpop.eup %5114 }
0x182b   :  { %v5117_v33 = vpop.eup %5116  ;;  %v2408_v40 = vmul.f32 0.0, %v5115_v32 }
0x182c   :  { %v2432_v55 = vmul.f32 0.0, %v5117_v33 }
0x1886   :  { %v2411_v51 = vpop.permute.xlu1 %2410 }
0x1887   :  { %v2413_v11 = vmul.f32 %v5115_v32, %v2411_v51 }
0x1889   :  { %2415 = vrot.lane.b32.xlu1 %v2413_v11, %s5399_s15 }
0x188c   :  { %v2435_v35 = vpop.permute.xlu0 %2434 }
0x188d   :  { %v2437_v37 = vmul.f32 %v5117_v33, %v2435_v35 }
0x188f   :  { %2439 = vrot.lane.b32.xlu0 %v2437_v37, %s5399_s15 }
0x18fb   :  { %v2416_v42 = vpop.permute.xlu1 %2415 }
0x18fc   :  { %v6012_v52 = vadd.f32 %v2416_v42, %v2408_v40 }
0x18fe   :  { %5118 = vtanh.f32 %v6012_v52  ;;  %v2624_v25 = vrot.slane %v6012_v52, 6 }
0x1901   :  { %v2440_v56 = vpop.permute.xlu0 %2439 }
0x1902   :  { %v6015_v59 = vadd.f32 %v2440_v56, %v2432_v55 }
0x1904   :  { %5120 = vtanh.f32 %v6015_v59  ;;  %v2651_v38 = vrot.slane %v6015_v59, 2  ;;  %v2680_v59 = vld [vmem:[#allocation2 + $0x10] sm:$0x30] }
0x190b   :  { %v5119_v62 = vpop.eup %5118 }
0x190c   :  { %2421 = vrot.lane.b32.xlu1 %v5119_v62, %s5398_s5 }
0x1911   :  { %v5121_v0 = vpop.eup %5120 }
0x1912   :  { %2445 = vrot.lane.b32.xlu0 %v5121_v0, %s5398_s5 }
0x197e   :  { %v2422_v4 = vpop.permute.xlu1 %2421 }
0x197f   :  { %v2424_v41 = vmul.f32 %v5115_v32, %v2422_v4 }
0x1981   :  { %2450 = vrot.lane.b32.xlu0 %v2424_v41, %s5399_s15 }
0x1984   :  { %v2446_v43 = vpop.permute.xlu0 %2445 }
0x1985   :  { %v6021_v44 = vmul.f32 %v5117_v33, %v2446_v43  ;;  %v2760_v43 = vld [vmem:[#allocation2 + $0x8] sm:$0xc] }
0x1987   :  { %v2537_v45 = vrot.slane %v6021_v44, 6 }
0x1989   :  { %2538 = vrot.lane.b32.xlu1 %v2537_v45, %s5399_s15 }
0x19f3   :  { %v2451_v46 = vpop.permute.xlu0 %2450 }
0x19f4   :  { %2453 = vst.msk [vmem:[#allocation3] sm:$0x3] %vm562_vm7, %v2451_v46  ;;  %4798 = vmatmul.mubr.msk.f32.vlgmr.msra.gmra.mxu1 %vm360_vm8, %v2451_v46 }
0x19f5   :  { %4812 = vmatpush3.msra.mxu1 %v5920_v36  ;;  %4819 = vmatprep.mubr.msk.f32.mxu1 %vm5397_vm5, %v5396_v1 }
0x19f6   :  { %4813 = vmatprep.subr.mxu1 %v5396_v1 }
0x19f7   :  { %4814 = vmatpush3.msra.mxu1 %v5923_v34 }
0x19f8   :  { %4815 = vmatprep.subr.mxu1 %v5396_v1 }
0x19f9   :  { %4816 = vmatpush3.msra.mxu1 %v5928_v53 }
0x19fa   :  { %4817 = vmatprep.subr.mxu1 %v5396_v1 }
0x19fb   :  { %v2539_v47 = vpop.permute.xlu1 %2538  ;;  %4818 = vmatpush3.msra.mxu1 %v5932_v39 }
0x19fc   :  { %4809 = vmatmul.mubr.msk.f32.vlgmr.msra.gmra.mxu0 %vm360_vm8, %v2539_v47  ;;  %4833 = vmatprep.subr.mxu1 %v5396_v1 }
0x19fd   :  { %4823 = vmatpush3.msra.mxu0 %v5939_v61  ;;  %4830 = vmatprep.mubr.msk.f32.mxu0 %vm5397_vm5, %v5396_v1 }
0x19fe   :  { %4824 = vmatprep.subr.mxu0 %v5396_v1 }
0x19ff   :  { %4825 = vmatpush3.msra.mxu0 %v5944_v63 }
0x1a00   :  { %4826 = vmatprep.subr.mxu0 %v5396_v1 }
0x1a01   :  { %4827 = vmatpush3.msra.mxu0 %v5951_v2 }
0x1a02   :  { %4828 = vmatprep.subr.mxu0 %v5396_v1 }
0x1a03   :  { %4829 = vmatpush3.msra.mxu0 %v5958_v6 }
0x1a04   :  { %4844 = vmatprep.subr.mxu0 %v5396_v1 }
0x1ab4   :  { %v2528_v7 = vpop.f32.mrf.mxu1 }
0x1ab5   :  { %v2533_v9 = vrot.slane %v2528_v7, 6 }
0x1ab6   :  { %v4799_v48 = vpop.f32.mrf.mxu1 }
0x1ab7   :  { %v2535_v5 = vadd.f32 %v2533_v9, %v2459_v10 }
0x1ab9   :  { %5122 = vtanh.f32 %v2535_v5  ;;  %v4366_v18 = vmul.f32 -1.442695, %v2535_v5 }
0x1abc   :  { %v2608_v12 = vpop.f32.mrf.mxu0 }
0x1abd   :  { %v2613_v49 = vrot.slane %v2608_v12, 4 }
0x1abe   :  { %v4810_v13 = vpop.f32.mrf.mxu0 }
0x1abf   :  { %v2615_v14 = vadd.f32 %v2613_v49, %v2536_v50 }
0x1ac1   :  { %5124 = vtanh.f32 %v2615_v14  ;;  %v4367_v20 = vmul.f32 -1.442695, %v2615_v14 }
0x1ac2   :  { %5126 = vpow2.f32 %v4366_v18 }
0x1ac3   :  { %5128 = vpow2.f32 %v4367_v20 }
0x1ac6   :  { %v5123_v15 = vpop.eup %5122 }
0x1ac7   :  { %2628 = vrot.lane.b32.xlu0 %v5123_v15, %s5398_s5 }
0x1ace   :  { %v5125_v17 = vpop.eup %5124 }
0x1acf   :  { %2655 = vrot.lane.b32.xlu1 %v5125_v17, %s5398_s5  ;;  %v5127_v21 = vpop.eup %5126 }
0x1ad0   :  { %v2619_v22 = vadd.f32 1.0, %v5127_v21  ;;  %v5129_v23 = vpop.eup %5128 }
0x1ad1   :  { %v2646_v24 = vadd.f32 1.0, %v5129_v23 }
0x1ad2   :  { %5130 = vrcp.f32 %v2619_v22 }
0x1ad3   :  { %5132 = vrcp.f32 %v2646_v24 }
0x1adf   :  { %v5131_v26 = vpop.eup %5130 }
0x1ae0   :  { %v5133_v30 = vpop.eup %5132  ;;  %v2626_v60 = vmul.f32 %v5131_v26, %v2624_v25 }
0x1ae1   :  { %v2653_v3 = vmul.f32 %v5133_v30, %v2651_v38 }
0x1b39   :  { %v2629_v27 = vpop.permute.xlu0 %2628 }
0x1b3a   :  { %v2631_v29 = vmul.f32 %v5131_v26, %v2629_v27 }
0x1b3c   :  { %2633 = vrot.lane.b32.xlu0 %v2631_v29, %s5399_s15 }
0x1b41   :  { %v2656_v31 = vpop.permute.xlu1 %2655 }
0x1b42   :  { %v2658_v58 = vmul.f32 %v5133_v30, %v2656_v31 }
0x1b44   :  { %2660 = vrot.lane.b32.xlu1 %v2658_v58, %s5399_s15 }
0x1bae   :  { %v2634_v16 = vpop.permute.xlu0 %2633 }
0x1baf   :  { %v6053_v8 = vadd.f32 %v2634_v16, %v2626_v60 }
0x1bb1   :  { %5134 = vtanh.f32 %v6053_v8  ;;  %v2848_v20 = vrot.slane %v6053_v8, 6 }
0x1bb6   :  { %v2661_v54 = vpop.permute.xlu1 %2660 }
0x1bb7   :  { %v6057_v19 = vadd.f32 %v2661_v54, %v2653_v3 }
0x1bb9   :  { %5136 = vtanh.f32 %v6057_v19  ;;  %v2875_v24 = vrot.slane %v6057_v19, 2 }
0x1bbe   :  { %v5135_v28 = vpop.eup %5134 }
0x1bbf   :  { %2639 = vrot.lane.b32.xlu0 %v5135_v28, %s5398_s5 }
0x1bc6   :  { %v5137_v32 = vpop.eup %5136 }
0x1bc7   :  { %2666 = vrot.lane.b32.xlu1 %v5137_v32, %s5398_s5  ;;  %v2904_v32 = vld [vmem:[#allocation2 + $0x10] sm:$0xc0] }
0x1c31   :  { %v2640_v51 = vpop.permute.xlu0 %2639 }
0x1c32   :  { %v6062_v11 = vmul.f32 %v5131_v26, %v2640_v51 }
0x1c34   :  { %v2681_v33 = vrot.slane %v6062_v11, 2 }
0x1c36   :  { %2682 = vrot.lane.b32.xlu0 %v2681_v33, %s5399_s15 }
0x1c39   :  { %v2667_v35 = vpop.permute.xlu1 %2666 }
0x1c3a   :  { %v6066_v37 = vmul.f32 %v5133_v30, %v2667_v35  ;;  %v2984_v35 = vld [vmem:[#allocation2 + $0x8] sm:$0x3] }
0x1c3c   :  { %v2761_v40 = vrot.slane %v6066_v37, 4 }
0x1c3e   :  { %2762 = vrot.lane.b32.xlu1 %v2761_v40, %s5399_s15 }
0x1ca8   :  { %v2683_v42 = vpop.permute.xlu0 %2682 }
0x1ca9   :  { %4820 = vmatmul.mubr.msk.f32.vlgmr.msra.gmra.mxu1 %vm360_vm8, %v2683_v42 }
0x1caa   :  { %4834 = vmatpush3.msra.mxu1 %v5920_v36  ;;  %4841 = vmatprep.mubr.msk.f32.mxu1 %vm5397_vm5, %v5396_v1 }
0x1cab   :  { %4835 = vmatprep.subr.mxu1 %v5396_v1 }
0x1cac   :  { %4836 = vmatpush3.msra.mxu1 %v5923_v34 }
0x1cad   :  { %4837 = vmatprep.subr.mxu1 %v5396_v1 }
0x1cae   :  { %4838 = vmatpush3.msra.mxu1 %v5928_v53 }
0x1caf   :  { %4839 = vmatprep.subr.mxu1 %v5396_v1 }
0x1cb0   :  { %v2763_v52 = vpop.permute.xlu1 %2762  ;;  %4840 = vmatpush3.msra.mxu1 %v5932_v39 }
0x1cb1   :  { %4831 = vmatmul.mubr.msk.f32.vlgmr.msra.gmra.mxu0 %vm360_vm8, %v2763_v52  ;;  %4855 = vmatprep.subr.mxu1 %v5396_v1 }
0x1cb2   :  { %4845 = vmatpush3.msra.mxu0 %v5939_v61  ;;  %4852 = vmatprep.mubr.msk.f32.mxu0 %vm5397_vm5, %v5396_v1 }
0x1cb3   :  { %4846 = vmatprep.subr.mxu0 %v5396_v1 }
0x1cb4   :  { %4847 = vmatpush3.msra.mxu0 %v5944_v63 }
0x1cb5   :  { %4848 = vmatprep.subr.mxu0 %v5396_v1 }
0x1cb6   :  { %4849 = vmatpush3.msra.mxu0 %v5951_v2 }
0x1cb7   :  { %4850 = vmatprep.subr.mxu0 %v5396_v1 }
0x1cb8   :  { %4851 = vmatpush3.msra.mxu0 %v5958_v6 }
0x1cb9   :  { %4866 = vmatprep.subr.mxu0 %v5396_v1 }
0x1d69   :  { %v2752_v55 = vpop.f32.mrf.mxu1 }
0x1d6a   :  { %v2757_v56 = vrot.slane %v2752_v55, 4 }
0x1d6b   :  { %v4821_v62 = vpop.f32.mrf.mxu1 }
0x1d6c   :  { %v2759_v0 = vadd.f32 %v2757_v56, %v2680_v59 }
0x1d6e   :  { %5138 = vtanh.f32 %v2759_v0  ;;  %v4370_v9 = vmul.f32 -1.442695, %v2759_v0 }
0x1d71   :  { %v2832_v4 = vpop.f32.mrf.mxu0 }
0x1d72   :  { %v2837_v41 = vrot.slane %v2832_v4, 6 }
0x1d73   :  { %v4832_v45 = vpop.f32.mrf.mxu0 }
0x1d74   :  { %v2839_v46 = vadd.f32 %v2837_v41, %v2760_v43 }
0x1d76   :  { %5140 = vtanh.f32 %v2839_v46  ;;  %v4371_v10 = vmul.f32 -1.442695, %v2839_v46 }
0x1d77   :  { %5142 = vpow2.f32 %v4370_v9 }
0x1d78   :  { %5144 = vpow2.f32 %v4371_v10 }
0x1d7b   :  { %v5139_v47 = vpop.eup %5138 }
0x1d7c   :  { %2852 = vrot.lane.b32.xlu0 %v5139_v47, %s5398_s5 }
0x1d83   :  { %v5141_v7 = vpop.eup %5140 }
0x1d84   :  { %2879 = vrot.lane.b32.xlu1 %v5141_v7, %s5398_s5  ;;  %v5143_v48 = vpop.eup %5142 }
0x1d85   :  { %v2843_v5 = vadd.f32 1.0, %v5143_v48  ;;  %v5145_v12 = vpop.eup %5144 }
0x1d86   :  { %v2870_v49 = vadd.f32 1.0, %v5145_v12 }
0x1d87   :  { %5146 = vrcp.f32 %v2843_v5 }
0x1d88   :  { %5148 = vrcp.f32 %v2870_v49 }
0x1d94   :  { %v5147_v50 = vpop.eup %5146 }
0x1d95   :  { %v5149_v15 = vpop.eup %5148  ;;  %v2850_v21 = vmul.f32 %v5147_v50, %v2848_v20 }
0x1d96   :  { %v2877_v26 = vmul.f32 %v5149_v15, %v2875_v24 }
0x1dee   :  { %v2853_v13 = vpop.permute.xlu0 %2852 }
0x1def   :  { %v2855_v14 = vmul.f32 %v5147_v50, %v2853_v13 }
0x1df1   :  { %2857 = vrot.lane.b32.xlu0 %v2855_v14, %s5399_s15 }
0x1df6   :  { %v2880_v17 = vpop.permute.xlu1 %2879 }
0x1df7   :  { %v2882_v18 = vmul.f32 %v5149_v15, %v2880_v17 }
0x1df9   :  { %2884 = vrot.lane.b32.xlu1 %v2882_v18, %s5399_s15 }
0x1e63   :  { %v2858_v22 = vpop.permute.xlu0 %2857 }
0x1e64   :  { %v6097_v23 = vadd.f32 %v2858_v22, %v2850_v21 }
0x1e66   :  { %5150 = vtanh.f32 %v6097_v23  ;;  %v3069_v48 = vrot.slane %v6097_v23, 6 }
0x1e6b   :  { %v2885_v27 = vpop.permute.xlu1 %2884 }
0x1e6c   :  { %v6101_v29 = vadd.f32 %v2885_v27, %v2877_v26 }
0x1e6e   :  { %5152 = vtanh.f32 %v6101_v29 }
0x1e73   :  { %v5151_v30 = vpop.eup %5150 }
0x1e74   :  { %2863 = vrot.lane.b32.xlu0 %v5151_v30, %s5398_s5 }
0x1e7b   :  { %v5153_v31 = vpop.eup %5152 }
0x1e7c   :  { %2890 = vrot.lane.b32.xlu1 %v5153_v31, %s5398_s5 }
0x1ee6   :  { %v2864_v58 = vpop.permute.xlu0 %2863 }
0x1ee7   :  { %v6106_v25 = vmul.f32 %v5147_v50, %v2864_v58  ;;  %v3096_v50 = vrot.slane %v6101_v29, 2  ;;  %v3125_v29 = vld [vmem:[#allocation2 + $0x18] sm:$0x3] }
0x1ee9   :  { %v2905_v60 = vrot.slane %v6106_v25, 4 }
0x1eeb   :  { %2906 = vrot.lane.b32.xlu0 %v2905_v60, %s5399_s15 }
0x1eee   :  { %v2891_v16 = vpop.permute.xlu1 %2890 }
0x1eef   :  { %v6110_v8 = vmul.f32 %v5149_v15, %v2891_v16 }
0x1ef1   :  { %v2985_v38 = vrot.slane %v6110_v8, 2 }
0x1ef3   :  { %2986 = vrot.lane.b32.xlu1 %v2985_v38, %s5399_s15  ;;  %v3202_v38 = vld [vmem:[#allocation2] sm:$0xc0] }
0x1f5d   :  { %v2907_v3 = vpop.permute.xlu0 %2906 }
0x1f5e   :  { %4842 = vmatmul.mubr.msk.f32.vlgmr.msra.gmra.mxu1 %vm360_vm8, %v2907_v3 }
0x1f5f   :  { %4856 = vmatpush3.msra.mxu1 %v5920_v36  ;;  %4863 = vmatprep.mubr.msk.f32.mxu1 %vm5397_vm5, %v5396_v1 }
0x1f60   :  { %4857 = vmatprep.subr.mxu1 %v5396_v1 }
0x1f61   :  { %4858 = vmatpush3.msra.mxu1 %v5923_v34 }
0x1f62   :  { %4859 = vmatprep.subr.mxu1 %v5396_v1 }
0x1f63   :  { %4860 = vmatpush3.msra.mxu1 %v5928_v53 }
0x1f64   :  { %4861 = vmatprep.subr.mxu1 %v5396_v1 }
0x1f65   :  { %v2987_v54 = vpop.permute.xlu1 %2986  ;;  %4862 = vmatpush3.msra.mxu1 %v5932_v39 }
0x1f66   :  { %4853 = vmatmul.mubr.msk.f32.vlgmr.msra.gmra.mxu0 %vm360_vm8, %v2987_v54  ;;  %4877 = vmatprep.subr.mxu1 %v5396_v1 }
0x1f67   :  { %4867 = vmatpush3.msra.mxu0 %v5939_v61  ;;  %4874 = vmatprep.mubr.msk.f32.mxu0 %vm5397_vm5, %v5396_v1 }
0x1f68   :  { %4868 = vmatprep.subr.mxu0 %v5396_v1 }
0x1f69   :  { %4869 = vmatpush3.msra.mxu0 %v5944_v63 }
0x1f6a   :  { %4870 = vmatprep.subr.mxu0 %v5396_v1 }
0x1f6b   :  { %4871 = vmatpush3.msra.mxu0 %v5951_v2 }
0x1f6c   :  { %4872 = vmatprep.subr.mxu0 %v5396_v1 }
0x1f6d   :  { %4873 = vmatpush3.msra.mxu0 %v5958_v6 }
0x1f6e   :  { %4888 = vmatprep.subr.mxu0 %v5396_v1 }
0x201e   :  { %v2976_v19 = vpop.f32.mrf.mxu1 }
0x201f   :  { %v2981_v28 = vrot.slane %v2976_v19, 2 }
0x2020   :  { %v4843_v51 = vpop.f32.mrf.mxu1 }
0x2021   :  { %v2983_v33 = vadd.f32 %v2981_v28, %v2904_v32 }
0x2023   :  { %5154 = vtanh.f32 %v2983_v33  ;;  %v4374_v59 = vmul.f32 -1.442695, %v2983_v33 }
0x2026   :  { %v3056_v40 = vpop.f32.mrf.mxu0 }
0x2027   :  { %v3060_v42 = vadd.f32 %v3056_v40, %v2984_v35 }
0x2028   :  { %v4854_v52 = vpop.f32.mrf.mxu0 }
0x2029   :  { %5156 = vtanh.f32 %v3060_v42  ;;  %v4375_v62 = vmul.f32 -1.442695, %v3060_v42 }
0x202a   :  { %5158 = vpow2.f32 %v4374_v59 }
0x202b   :  { %5160 = vpow2.f32 %v4375_v62 }
0x2030   :  { %v5155_v55 = vpop.eup %5154 }
0x2031   :  { %3073 = vrot.lane.b32.xlu1 %v5155_v55, %s5398_s5 }
0x2036   :  { %v5157_v56 = vpop.eup %5156 }
0x2037   :  { %3100 = vrot.lane.b32.xlu0 %v5157_v56, %s5398_s5  ;;  %v5159_v0 = vpop.eup %5158 }
0x2038   :  { %v3064_v4 = vadd.f32 1.0, %v5159_v0  ;;  %v5161_v41 = vpop.eup %5160 }
0x2039   :  { %v3091_v43 = vadd.f32 1.0, %v5161_v41 }
0x203a   :  { %5162 = vrcp.f32 %v3064_v4 }
0x203b   :  { %5164 = vrcp.f32 %v3091_v43 }
0x2047   :  { %v5163_v45 = vpop.eup %5162 }
0x2048   :  { %v5165_v7 = vpop.eup %5164  ;;  %v3071_v5 = vmul.f32 %v5163_v45, %v3069_v48 }
0x2049   :  { %v3098_v13 = vmul.f32 %v5165_v7, %v3096_v50 }
0x20a3   :  { %v3074_v46 = vpop.permute.xlu1 %3073 }
0x20a4   :  { %v3076_v47 = vmul.f32 %v5163_v45, %v3074_v46 }
0x20a6   :  { %3078 = vrot.lane.b32.xlu1 %v3076_v47, %s5399_s15 }
0x20a9   :  { %v3101_v9 = vpop.permute.xlu0 %3100 }
0x20aa   :  { %v3103_v10 = vmul.f32 %v5165_v7, %v3101_v9 }
0x20ac   :  { %3105 = vrot.lane.b32.xlu0 %v3103_v10, %s5399_s15 }
0x2118   :  { %v3079_v12 = vpop.permute.xlu1 %3078 }
0x2119   :  { %v6141_v49 = vadd.f32 %v3079_v12, %v3071_v5 }
0x211b   :  { %5166 = vtanh.f32 %v6141_v49  ;;  %v3289_v4 = vrot.slane %v6141_v49, 6 }
0x211e   :  { %v3106_v14 = vpop.permute.xlu0 %3105 }
0x211f   :  { %v6145_v15 = vadd.f32 %v3106_v14, %v3098_v13 }
0x2121   :  { %5168 = vtanh.f32 %v6145_v15  ;;  %v3316_v46 = vrot.slane %v6145_v15, 2 }
0x2128   :  { %v5167_v17 = vpop.eup %5166 }
0x2129   :  { %3084 = vrot.lane.b32.xlu1 %v5167_v17, %s5398_s5 }
0x212e   :  { %v5169_v18 = vpop.eup %5168 }
0x212f   :  { %3111 = vrot.lane.b32.xlu0 %v5169_v18, %s5398_s5 }
0x219b   :  { %v3085_v20 = vpop.permute.xlu1 %3084 }
0x219c   :  { %v6150_v21 = vmul.f32 %v5163_v45, %v3085_v20  ;;  %v3422_v20 = vld [vmem:[#allocation2] sm:$0x30] }
0x219e   :  { %v3126_v22 = vrot.slane %v6150_v21, 6 }
0x21a0   :  { %3127 = vrot.lane.b32.xlu1 %v3126_v22, %s5399_s15 }
0x21a1   :  { %v3112_v23 = vpop.permute.xlu0 %3111 }
0x21a2   :  { %v6154_v24 = vmul.f32 %v5165_v7, %v3112_v23 }
0x21a4   :  { %3203 = vrot.lane.b32.xlu0 %v6154_v24, %s5399_s15 }
0x2212   :  { %v3128_v26 = vpop.permute.xlu1 %3127 }
0x2213   :  { %4864 = vmatmul.mubr.msk.f32.vlgmr.msra.gmra.mxu1 %vm360_vm8, %v3128_v26 }
0x2214   :  { %4878 = vmatpush3.msra.mxu1 %v5920_v36  ;;  %4885 = vmatprep.mubr.msk.f32.mxu1 %vm5397_vm5, %v5396_v1 }
0x2215   :  { %4879 = vmatprep.subr.mxu1 %v5396_v1 }
0x2216   :  { %v3204_v27 = vpop.permute.xlu0 %3203  ;;  %4880 = vmatpush3.msra.mxu1 %v5923_v34 }
0x2217   :  { %4875 = vmatmul.mubr.msk.f32.vlgmr.msra.gmra.mxu0 %vm360_vm8, %v3204_v27  ;;  %4881 = vmatprep.subr.mxu1 %v5396_v1 }
0x2218   :  { %4882 = vmatpush3.msra.mxu1 %v5928_v53  ;;  %4889 = vmatpush3.msra.mxu0 %v5939_v61 }
0x2219   :  { %4883 = vmatprep.subr.mxu1 %v5396_v1  ;;  %4890 = vmatprep.subr.mxu0 %v5396_v1 }
0x221a   :  { %4884 = vmatpush3.msra.mxu1 %v5932_v39  ;;  %4891 = vmatpush3.msra.mxu0 %v5944_v63 }
0x221b   :  { %4892 = vmatprep.subr.mxu0 %v5396_v1  ;;  %4896 = vmatprep.mubr.msk.f32.mxu0 %vm5397_vm5, %v5396_v1 }
0x221c   :  { %4893 = vmatpush3.msra.mxu0 %v5951_v2  ;;  %4899 = vmatprep.subr.mxu1 %v5396_v1 }
0x221d   :  { %4894 = vmatprep.subr.mxu0 %v5396_v1 }
0x221e   :  { %4895 = vmatpush3.msra.mxu0 %v5958_v6 }
0x221f   :  { %4910 = vmatprep.subr.mxu0 %v5396_v1 }
0x22d3   :  { %v3197_v30 = vpop.f32.mrf.mxu1 }
0x22d4   :  { %v3201_v31 = vadd.f32 %v3197_v30, %v3125_v29 }
0x22d5   :  { %v4865_v58 = vpop.f32.mrf.mxu1 }
0x22d6   :  { %5170 = vtanh.f32 %v3201_v31  ;;  %v4378_v32 = vmul.f32 -1.442695, %v3201_v31 }
0x22d7   :  { %v3273_v60 = vpop.f32.mrf.mxu0 }
0x22d8   :  { %v3278_v16 = vrot.slane %v3273_v60, 2 }
0x22d9   :  { %v4876_v3 = vpop.f32.mrf.mxu0 }
0x22da   :  { %v3280_v54 = vadd.f32 %v3278_v16, %v3202_v38 }
0x22dc   :  { %5172 = vtanh.f32 %v3280_v54  ;;  %v4379_v51 = vmul.f32 -1.442695, %v3280_v54 }
0x22dd   :  { %5174 = vpow2.f32 %v4378_v32 }
0x22de   :  { %5176 = vpow2.f32 %v4379_v51 }
0x22e3   :  { %v5171_v19 = vpop.eup %5170 }
0x22e4   :  { %3293 = vrot.lane.b32.xlu1 %v5171_v19, %s5398_s5 }
0x22e9   :  { %v5173_v28 = vpop.eup %5172 }
0x22ea   :  { %3320 = vrot.lane.b32.xlu0 %v5173_v28, %s5398_s5  ;;  %v5175_v33 = vpop.eup %5174 }
0x22eb   :  { %v3284_v35 = vadd.f32 1.0, %v5175_v33  ;;  %v5177_v40 = vpop.eup %5176 }
0x22ec   :  { %v3311_v42 = vadd.f32 1.0, %v5177_v40 }
0x22ed   :  { %5178 = vrcp.f32 %v3284_v35 }
0x22ee   :  { %5180 = vrcp.f32 %v3311_v42 }
0x22fa   :  { %v5179_v52 = vpop.eup %5178 }
0x22fb   :  { %v5181_v59 = vpop.eup %5180  ;;  %v3291_v41 = vmul.f32 %v5179_v52, %v3289_v4 }
0x22fc   :  { %v3318_v47 = vmul.f32 %v5181_v59, %v3316_v46  ;;  %v5273_v46 = vld [vmem:[#allocation9 + $0x10] sm:$0xff] }
0x2356   :  { %v3294_v55 = vpop.permute.xlu1 %3293 }
0x2357   :  { %v3296_v56 = vmul.f32 %v5179_v52, %v3294_v55 }
0x2359   :  { %3298 = vrot.lane.b32.xlu1 %v3296_v56, %s5399_s15 }
0x235c   :  { %v3321_v62 = vpop.permute.xlu0 %3320 }
0x235d   :  { %v3323_v0 = vmul.f32 %v5181_v59, %v3321_v62 }
0x235f   :  { %3325 = vrot.lane.b32.xlu0 %v3323_v0, %s5399_s15 }
0x23cb   :  { %v3299_v43 = vpop.permute.xlu1 %3298 }
0x23cc   :  { %v6185_v45 = vadd.f32 %v3299_v43, %v3291_v41 }
0x23ce   :  { %5182 = vtanh.f32 %v6185_v45  ;;  %v3510_v19 = vrot.slane %v6185_v45, 6  ;;  %v5272_v45 = vld [vmem:[#allocation9 + $0x18] sm:$0xff] }
0x23d1   :  { %v3326_v7 = vpop.permute.xlu0 %3325 }
0x23d2   :  { %v6189_v9 = vadd.f32 %v3326_v7, %v3318_v47  ;;  %v5274_v47 = vld [vmem:[#allocation9 + $0x8] sm:$0xff] }
0x23d4   :  { %5184 = vtanh.f32 %v6189_v9  ;;  %v3537_v33 = vrot.slane %v6189_v9, 2  ;;  %v5275_v9 = vld [vmem:[#allocation9] sm:$0xff] }
0x23db   :  { %v5183_v10 = vpop.eup %5182 }
0x23dc   :  { %3304 = vrot.lane.b32.xlu1 %v5183_v10, %s5398_s5  ;;  %v5276_v10 = vld [vmem:[#allocation11 + $0x18] sm:$0xff] }
0x23e1   :  { %v5185_v48 = vpop.eup %5184 }
0x23e2   :  { %3331 = vrot.lane.b32.xlu0 %v5185_v48, %s5398_s5  ;;  %v5277_v48 = vld [vmem:[#allocation11 + $0x10] sm:$0xff] }
0x244e   :  { %v3305_v5 = vpop.permute.xlu1 %3304 }
0x244f   :  { %v3307_v12 = vmul.f32 %v5179_v52, %v3305_v5  ;;  %v5278_v5 = vld [vmem:[#allocation11 + $0x8] sm:$0xff] }
0x2451   :  { %3336 = vrot.lane.b32.xlu0 %v3307_v12, %s5399_s15  ;;  %v5279_v12 = vld [vmem:[#allocation11] sm:$0xff] }
0x2454   :  { %v3332_v49 = vpop.permute.xlu0 %3331 }
0x2455   :  { %v6195_v50 = vmul.f32 %v5181_v59, %v3332_v49 }
0x2457   :  { %v3423_v13 = vrot.slane %v6195_v50, 6 }
0x2459   :  { %3424 = vrot.lane.b32.xlu1 %v3423_v13, %s5399_s15 }
0x24c3   :  { %v6199_v14 = vpop.permute.xlu0 %3336 }
0x24c4   :  { %4886 = vmatmul.mubr.msk.f32.vlgmr.msra.gmra.mxu1 %vm360_vm8, %v6199_v14 }
0x24c5   :  { %4900 = vmatpush3.msra.mxu1 %v5920_v36  ;;  %4907 = vmatprep.mubr.msk.f32.mxu1 %vm5397_vm5, %v5396_v1 }
0x24c6   :  { %4901 = vmatprep.subr.mxu1 %v5396_v1 }
0x24c7   :  { %4902 = vmatpush3.msra.mxu1 %v5923_v34 }
0x24c8   :  { %4903 = vmatprep.subr.mxu1 %v5396_v1 }
0x24c9   :  { %4904 = vmatpush3.msra.mxu1 %v5928_v53  ;;  %v3345_v53 = vld [vmem:[#allocation2 + $0x18] sm:$0xc] }
0x24ca   :  { %4905 = vmatprep.subr.mxu1 %v5396_v1 }
0x24cb   :  { %v3425_v15 = vpop.permute.xlu1 %3424  ;;  %4906 = vmatpush3.msra.mxu1 %v5932_v39 }
0x24cc   :  { %4897 = vmatmul.mubr.msk.f32.vlgmr.msra.gmra.mxu0 %vm360_vm8, %v3425_v15  ;;  %4921 = vmatprep.subr.mxu1 %v5396_v1  ;;  %v3566_v15 = vld [vmem:[#allocation2 + $0x18] sm:$0x30] }
0x24cd   :  { %4911 = vmatpush3.msra.mxu0 %v5939_v61  ;;  %4918 = vmatprep.mubr.msk.f32.mxu0 %vm5397_vm5, %v5396_v1 }
0x24ce   :  { %4912 = vmatprep.subr.mxu0 %v5396_v1 }
0x24cf   :  { %4913 = vmatpush3.msra.mxu0 %v5944_v63 }
0x24d0   :  { %4914 = vmatprep.subr.mxu0 %v5396_v1 }
0x24d1   :  { %4915 = vmatpush3.msra.mxu0 %v5951_v2 }
0x24d2   :  { %4916 = vmatprep.subr.mxu0 %v5396_v1 }
0x24d3   :  { %4917 = vmatpush3.msra.mxu0 %v5958_v6 }
0x24d4   :  { %4932 = vmatprep.subr.mxu0 %v5396_v1 }
0x2584   :  { %v3414_v36 = vpop.f32.mrf.mxu1 }
0x2585   :  { %v3419_v34 = vrot.slane %v3414_v36, 6 }
0x2586   :  { %v4887_v39 = vpop.f32.mrf.mxu1 }
0x2587   :  { %v3421_v61 = vadd.f32 %v3419_v34, %v3345_v53 }
0x2589   :  { %5186 = vtanh.f32 %v3421_v61  ;;  %v4382_v6 = vmul.f32 -1.442695, %v3421_v61  ;;  %v3646_v61 = vld [vmem:[#allocation2] sm:$0xc] }
0x258c   :  { %v3494_v17 = vpop.f32.mrf.mxu0 }
0x258d   :  { %v3499_v18 = vrot.slane %v3494_v17, 4 }
0x258e   :  { %v4898_v63 = vpop.f32.mrf.mxu0 }
0x258f   :  { %v3501_v22 = vadd.f32 %v3499_v18, %v3422_v20 }
0x2591   :  { %5188 = vtanh.f32 %v3501_v22  ;;  %v4383_v26 = vmul.f32 -1.442695, %v3501_v22 }
0x2592   :  { %5190 = vpow2.f32 %v4382_v6 }
0x2593   :  { %5192 = vpow2.f32 %v4383_v26 }
0x2596   :  { %v5187_v23 = vpop.eup %5186 }
0x2597   :  { %3514 = vrot.lane.b32.xlu0 %v5187_v23, %s5398_s5 }
0x259e   :  { %v5189_v2 = vpop.eup %5188 }
0x259f   :  { %3541 = vrot.lane.b32.xlu1 %v5189_v2, %s5398_s5  ;;  %v5191_v27 = vpop.eup %5190 }
0x25a0   :  { %v3505_v29 = vadd.f32 1.0, %v5191_v27  ;;  %v5193_v30 = vpop.eup %5192 }
0x25a1   :  { %v3532_v31 = vadd.f32 1.0, %v5193_v30 }
0x25a2   :  { %5194 = vrcp.f32 %v3505_v29 }
0x25a3   :  { %5196 = vrcp.f32 %v3532_v31 }
0x25af   :  { %v5195_v58 = vpop.eup %5194 }
0x25b0   :  { %v5197_v38 = vpop.eup %5196  ;;  %v3512_v28 = vmul.f32 %v5195_v58, %v3510_v19 }
0x25b1   :  { %v3539_v35 = vmul.f32 %v5197_v38, %v3537_v33 }
0x2609   :  { %v3515_v60 = vpop.permute.xlu0 %3514 }
0x260a   :  { %v3517_v16 = vmul.f32 %v5195_v58, %v3515_v60 }
0x260c   :  { %3519 = vrot.lane.b32.xlu0 %v3517_v16, %s5399_s15 }
0x2611   :  { %v3542_v3 = vpop.permute.xlu1 %3541 }
0x2612   :  { %v3544_v54 = vmul.f32 %v5197_v38, %v3542_v3 }
0x2614   :  { %3546 = vrot.lane.b32.xlu1 %v3544_v54, %s5399_s15 }
0x267e   :  { %v3520_v32 = vpop.permute.xlu0 %3519 }
0x267f   :  { %v6229_v51 = vadd.f32 %v3520_v32, %v3512_v28 }
0x2681   :  { %5198 = vtanh.f32 %v6229_v51  ;;  %v3734_v16 = vrot.slane %v6229_v51, 6 }
0x2686   :  { %v3547_v40 = vpop.permute.xlu1 %3546 }
0x2687   :  { %v6233_v42 = vadd.f32 %v3547_v40, %v3539_v35 }
0x2689   :  { %5200 = vtanh.f32 %v6233_v42  ;;  %v3761_v19 = vrot.slane %v6233_v42, 2 }
0x268e   :  { %v5199_v52 = vpop.eup %5198 }
0x268f   :  { %3525 = vrot.lane.b32.xlu0 %v5199_v52, %s5398_s5 }
0x2696   :  { %v5201_v55 = vpop.eup %5200 }
0x2697   :  { %3552 = vrot.lane.b32.xlu1 %v5201_v55, %s5398_s5 }
0x2701   :  { %v3526_v56 = vpop.permute.xlu0 %3525 }
0x2702   :  { %v6238_v59 = vmul.f32 %v5195_v58, %v3526_v56 }
0x2704   :  { %v3567_v62 = vrot.slane %v6238_v59, 2 }
0x2706   :  { %3568 = vrot.lane.b32.xlu0 %v3567_v62, %s5399_s15 }
0x2709   :  { %v3553_v0 = vpop.permute.xlu1 %3552 }
0x270a   :  { %v6242_v4 = vmul.f32 %v5197_v38, %v3553_v0 }
0x270c   :  { %v3647_v41 = vrot.slane %v6242_v4, 4 }
0x270e   :  { %3648 = vrot.lane.b32.xlu1 %v3647_v41, %s5399_s15 }
0x2778   :  { %v3569_v43 = vpop.permute.xlu0 %3568 }
0x2779   :  { %4908 = vmatmul.mubr.msk.f32.vlgmr.msra.gmra.mxu1 %vm360_vm8, %v3569_v43 }
0x277a   :  { %4922 = vmatpush3.msra.mxu1 %v5272_v45  ;;  %4929 = vmatprep.mubr.msk.f32.mxu1 %vm5397_vm5, %v5396_v1 }
0x277b   :  { %4923 = vmatprep.subr.mxu1 %v5396_v1 }
0x277c   :  { %4924 = vmatpush3.msra.mxu1 %v5273_v46  ;;  %v3790_v46 = vld [vmem:[#allocation2 + $0x18] sm:$0xc0] }
0x277d   :  { %4925 = vmatprep.subr.mxu1 %v5396_v1 }
0x277e   :  { %4926 = vmatpush3.msra.mxu1 %v5274_v47 }
0x277f   :  { %4927 = vmatprep.subr.mxu1 %v5396_v1 }
0x2780   :  { %v3649_v7 = vpop.permute.xlu1 %3648  ;;  %4928 = vmatpush3.msra.mxu1 %v5275_v9  ;;  %v3870_v9 = vld [vmem:[#allocation2] sm:$0x3] }
0x2781   :  { %4919 = vmatmul.mubr.msk.f32.vlgmr.msra.gmra.mxu0 %vm360_vm8, %v3649_v7 }
0x2782   :  { %4933 = vmatpush3.msra.mxu0 %v5276_v10  ;;  %4940 = vmatprep.mubr.msk.f32.mxu0 %vm5397_vm5, %v5396_v1 }
0x2783   :  { %4934 = vmatprep.subr.mxu0 %v5396_v1 }
0x2784   :  { %4935 = vmatpush3.msra.mxu0 %v5277_v48 }
0x2785   :  { %4936 = vmatprep.subr.mxu0 %v5396_v1 }
0x2786   :  { %4937 = vmatpush3.msra.mxu0 %v5278_v5 }
0x2787   :  { %4938 = vmatprep.subr.mxu0 %v5396_v1 }
0x2788   :  { %4939 = vmatpush3.msra.mxu0 %v5279_v12 }
0x2839   :  { %v3638_v49 = vpop.f32.mrf.mxu1 }
0x283a   :  { %v3643_v13 = vrot.slane %v3638_v49, 4 }
0x283b   :  { %v4909_v36 = vpop.f32.mrf.mxu1 }
0x283c   :  { %v3645_v34 = vadd.f32 %v3643_v13, %v3566_v15 }
0x283e   :  { %5202 = vtanh.f32 %v3645_v34  ;;  %v4386_v1 = vmul.f32 -1.442695, %v3645_v34 }
0x2841   :  { %v3718_v53 = vpop.f32.mrf.mxu0 }
0x2842   :  { %v3723_v39 = vrot.slane %v3718_v53, 6 }
0x2843   :  { %v4920_v17 = vpop.f32.mrf.mxu0 }
0x2844   :  { %v3725_v18 = vadd.f32 %v3723_v39, %v3646_v61 }
0x2846   :  { %5204 = vtanh.f32 %v3725_v18  ;;  %v4387_v22 = vmul.f32 -1.442695, %v3725_v18 }
0x2847   :  { %5206 = vpow2.f32 %v4386_v1 }
0x2848   :  { %5208 = vpow2.f32 %v4387_v22 }
0x284b   :  { %v5203_v20 = vpop.eup %5202 }
0x284c   :  { %3738 = vrot.lane.b32.xlu0 %v5203_v20, %s5398_s5 }
0x2853   :  { %v5205_v63 = vpop.eup %5204 }
0x2854   :  { %3765 = vrot.lane.b32.xlu1 %v5205_v63, %s5398_s5  ;;  %v5207_v23 = vpop.eup %5206 }
0x2855   :  { %v3729_v2 = vadd.f32 1.0, %v5207_v23  ;;  %v5209_v6 = vpop.eup %5208 }
0x2856   :  { %v3756_v26 = vadd.f32 1.0, %v5209_v6 }
0x2857   :  { %5210 = vrcp.f32 %v3729_v2 }
0x2858   :  { %5212 = vrcp.f32 %v3756_v26 }
0x2864   :  { %v5211_v27 = vpop.eup %5210 }
0x2865   :  { %v5213_v31 = vpop.eup %5212  ;;  %v3736_v38 = vmul.f32 %v5211_v27, %v3734_v16 }
0x2866   :  { %v3763_v28 = vmul.f32 %v5213_v31, %v3761_v19 }
0x28be   :  { %v3739_v29 = vpop.permute.xlu0 %3738 }
0x28bf   :  { %v3741_v30 = vmul.f32 %v5211_v27, %v3739_v29 }
0x28c1   :  { %3743 = vrot.lane.b32.xlu0 %v3741_v30, %s5399_s15 }
0x28c6   :  { %v3766_v58 = vpop.permute.xlu1 %3765 }
0x28c7   :  { %v3768_v60 = vmul.f32 %v5213_v31, %v3766_v58 }
0x28c9   :  { %3770 = vrot.lane.b32.xlu1 %v3768_v60, %s5399_s15  ;;  %v4013_v60 = vld [vmem:[%s6480_s10] sm:$0xff] }
0x2933   :  { %v3744_v3 = vpop.permute.xlu0 %3743 }
0x2934   :  { %v3746_v54 = vadd.f32 %v3744_v3, %v3736_v38 }
0x2936   :  { %5214 = vtanh.f32 %v3746_v54  ;;  %v3955_v22 = vrot.slane %v3746_v54, 6 }
0x293b   :  { %v3771_v32 = vpop.permute.xlu1 %3770 }
0x293c   :  { %v3773_v33 = vadd.f32 %v3771_v32, %v3763_v28 }
0x293e   :  { %5216 = vtanh.f32 %v3773_v33  ;;  %v3982_v26 = vrot.slane %v3773_v33, 2 }
0x2943   :  { %v5215_v35 = vpop.eup %5214 }
0x2944   :  { %3749 = vrot.lane.b32.xlu0 %v5215_v35, %s5398_s5 }
0x294b   :  { %v5217_v40 = vpop.eup %5216 }
0x294c   :  { %3776 = vrot.lane.b32.xlu1 %v5217_v40, %s5398_s5 }
0x29b6   :  { %v3750_v52 = vpop.permute.xlu0 %3749 }
0x29b7   :  { %v6266_v55 = vmul.f32 %v5211_v27, %v3750_v52 }
0x29b9   :  { %v3791_v51 = vrot.slane %v6266_v55, 4 }
0x29bb   :  { %3792 = vrot.lane.b32.xlu0 %v3791_v51, %s5399_s15 }
0x29be   :  { %v3777_v56 = vpop.permute.xlu1 %3776 }
0x29bf   :  { %v3779_v62 = vmul.f32 %v5213_v31, %v3777_v56 }
0x29c1   :  { %v3871_v42 = vrot.slane %v3779_v62, 2 }
0x29c3   :  { %3872 = vrot.lane.b32.xlu1 %v3871_v42, %s5399_s15 }
0x2a2d   :  { %v3793_v0 = vpop.permute.xlu0 %3792 }
0x2a2e   :  { %4930 = vmatmul.mubr.msk.f32.vlgmr.msra.gmra.mxu1 %vm360_vm8, %v3793_v0 }
0x2a35   :  { %v3873_v41 = vpop.permute.xlu1 %3872 }
0x2a36   :  { %4941 = vmatmul.mubr.msk.f32.vlgmr.msra.gmra.mxu0 %vm360_vm8, %v3873_v41 }
0x2aee   :  { %v3862_v43 = vpop.f32.mrf.mxu1 }
0x2aef   :  { %v3867_v45 = vrot.slane %v3862_v43, 2 }
0x2af0   :  { %v4931_v47 = vpop.f32.mrf.mxu1 }
0x2af1   :  { %v3869_v7 = vadd.f32 %v3867_v45, %v3790_v46  ;;  %v4392_v45 = vld [vmem:[%s6481_s11] ss:$0 sm:$0xff] }
0x2af3   :  { %5218 = vtanh.f32 %v3869_v7  ;;  %v4390_v13 = vmul.f32 -1.442695, %v3869_v7 }
0x2af6   :  { %v3942_v10 = vpop.f32.mrf.mxu0 }
0x2af7   :  { %v3946_v48 = vadd.f32 %v3942_v10, %v3870_v9 }
0x2af8   :  { %v4942_v5 = vpop.f32.mrf.mxu0 }
0x2af9   :  { %5220 = vtanh.f32 %v3946_v48  ;;  %v4391_v15 = vmul.f32 -1.442695, %v3946_v48 }
0x2afa   :  { %5222 = vpow2.f32 %v4390_v13 }
0x2afb   :  { %5224 = vpow2.f32 %v4391_v15 }
0x2b00   :  { %v5219_v12 = vpop.eup %5218 }
0x2b01   :  { %3959 = vrot.lane.b32.xlu1 %v5219_v12, %s5398_s5 }
0x2b06   :  { %v5221_v49 = vpop.eup %5220 }
0x2b07   :  { %3986 = vrot.lane.b32.xlu0 %v5221_v49, %s5398_s5  ;;  %v5223_v36 = vpop.eup %5222 }
0x2b08   :  { %v3950_v34 = vadd.f32 1.0, %v5223_v36  ;;  %v5225_v53 = vpop.eup %5224 }
0x2b09   :  { %v3977_v39 = vadd.f32 1.0, %v5225_v53 }
0x2b0a   :  { %5226 = vrcp.f32 %v3950_v34 }
0x2b0b   :  { %5228 = vrcp.f32 %v3977_v39 }
0x2b17   :  { %v5227_v61 = vpop.eup %5226 }
0x2b18   :  { %v5229_v20 = vpop.eup %5228  ;;  %v3957_v23 = vmul.f32 %v5227_v61, %v3955_v22 }
0x2b19   :  { %v3984_v27 = vmul.f32 %v5229_v20, %v3982_v26 }
0x2b73   :  { %v3960_v17 = vpop.permute.xlu1 %3959 }
0x2b74   :  { %v3962_v18 = vmul.f32 %v5227_v61, %v3960_v17 }
0x2b76   :  { %3964 = vrot.lane.b32.xlu1 %v3962_v18, %s5399_s15 }
0x2b79   :  { %v3987_v63 = vpop.permute.xlu0 %3986 }
0x2b7a   :  { %v3989_v1 = vmul.f32 %v5229_v20, %v3987_v63 }
0x2b7c   :  { %3991 = vrot.lane.b32.xlu0 %v3989_v1, %s5399_s15 }
0x2be8   :  { %v3965_v2 = vpop.permute.xlu1 %3964 }
0x2be9   :  { %v3967_v6 = vadd.f32 %v3965_v2, %v3957_v23 }
0x2beb   :  { %5230 = vtanh.f32 %v3967_v6 }
0x2bee   :  { %v3992_v29 = vpop.permute.xlu0 %3991 }
0x2bef   :  { %v3994_v30 = vadd.f32 %v3992_v29, %v3984_v27 }
0x2bf1   :  { %5232 = vtanh.f32 %v3994_v30 }
0x2bf8   :  { %v5231_v31 = vpop.eup %5230 }
0x2bf9   :  { %3970 = vrot.lane.b32.xlu1 %v5231_v31, %s5398_s5 }
0x2bfd   :  { %2895 = vrot.lane.b32.xlu1 %v6106_v25, %s5399_s15  ;;  %v4017_v25 = vld [vmem:[%s6480_s10 + $0x20] sm:$0xff] }
0x2bfe   :  { %v5233_v58 = vpop.eup %5232 }
0x2bff   :  { %3997 = vrot.lane.b32.xlu0 %v5233_v58, %s5398_s5 }
0x2c01   :  { %2455 = vrot.lane.b32.xlu1 %v6021_v44, %s5398_s5  ;;  %v4020_v44 = vld [vmem:[%s6480_s10 + $0x38] sm:$0xff] }
0x2c02   :  { %4943 = vmatprep.subr.mxu1 %v4020_v44 }
0x2c03   :  { %2671 = vrot.lane.b32.xlu0 %v6062_v11, %s5399_s15  ;;  %v4019_v11 = vld [vmem:[%s6480_s10 + $0x30] sm:$0xff]  ;;  %4944 = vmatpush3.msra.mxu1 %v4020_v44 }
0x2c04   :  { %4945 = vmatprep.subr.mxu1 %v4019_v11 }
0x2c05   :  { %2900 = vrot.lane.b32.xlu1 %v6110_v8, %s5398_s5  ;;  %4946 = vmatpush3.msra.mxu1 %v4019_v11 }
0x2c07   :  { %3116 = vrot.lane.b32.xlu0 %v6150_v21, %s5399_s15  ;;  %v4016_v21 = vld [vmem:[%s6480_s10 + $0x18] sm:$0xff] }
0x2c09   :  { %3341 = vrot.lane.b32.xlu1 %v6195_v50, %s5398_s5 }
0x2c0b   :  { %2676 = vrot.lane.b32.xlu0 %v6066_v37, %s5398_s5  ;;  %v4018_v37 = vld [vmem:[%s6480_s10 + $0x28] sm:$0xff] }
0x2c0c   :  { %4947 = vmatprep.subr.mxu1 %v4018_v37 }
0x2c0d   :  { %3786 = vrot.lane.b32.xlu1 %v3779_v62, %s5398_s5  ;;  %4948 = vmatpush3.msra.mxu1 %v4018_v37 }
0x2c0e   :  { %4949 = vmatprep.subr.mxu1 %v4017_v25 }
0x2c0f   :  { %3121 = vrot.lane.b32.xlu0 %v6154_v24, %s5398_s5  ;;  %4950 = vmatpush3.msra.mxu1 %v4017_v25  ;;  %v4015_v24 = vld [vmem:[%s6480_s10 + $0x10] sm:$0xff] }
0x2c10   :  { %4951 = vmatprep.subr.mxu1 %v4016_v21 }
0x2c11   :  { %3557 = vrot.lane.b32.xlu1 %v6238_v59, %s5399_s15  ;;  %4952 = vmatpush3.msra.mxu1 %v4016_v21  ;;  %v4014_v59 = vld [vmem:[%s6480_s10 + $0x8] sm:$0xff] }
0x2c12   :  { %4953 = vmatprep.subr.mxu1 %v4015_v24 }
0x2c13   :  { %3562 = vrot.lane.b32.xlu0 %v6242_v4, %s5398_s5  ;;  %4954 = vmatpush3.msra.mxu1 %v4015_v24 }
0x2c14   :  { %4955 = vmatprep.subr.mxu1 %v4014_v59 }
0x2c15   :  { %4956 = vmatpush3.msra.mxu1 %v4014_v59 }
0x2c16   :  { %4957 = vmatprep.subr.mxu1 %v4013_v60 }
0x2c17   :  { %4958 = vmatpush3.msra.mxu1 %v4013_v60 }
0x2c6b   :  { %v3971_v8 = vpop.permute.xlu1 %3970 }
0x2c6c   :  { %v3973_v50 = vmul.f32 %v5227_v61, %v3971_v8 }
0x2c6e   :  { %4002 = vrot.lane.b32.xlu1 %v3973_v50, %s5399_s15 }
0x2c6f   :  { %v2896_v4 = vpop.permute.xlu1 %2895 }
0x2c70   :  { %2898 = vst.msk [vmem:[#allocation3] sm:$0x30] %vm1011_vm9, %v2896_v4 }
0x2c71   :  { %v3998_v16 = vpop.permute.xlu0 %3997 }
0x2c72   :  { %v4000_v38 = vmul.f32 %v5229_v20, %v3998_v16 }
0x2c73   :  { %v2456_v3 = vpop.permute.xlu1 %2455 }
0x2c74   :  { %2458 = vst.msk [vmem:[#allocation3 + $0x8] sm:$0xc0] %vm568_vm13, %v2456_v3  ;;  %4007 = vrot.lane.b32.xlu0 %v4000_v38, %s5398_s5 }
0x2c75   :  { %v2672_v54 = vpop.permute.xlu0 %2671 }
0x2c76   :  { %2674 = vst.msk [vmem:[#allocation3] sm:$0xc] %vm785_vm10, %v2672_v54 }
0x2c77   :  { %v2901_v19 = vpop.permute.xlu1 %2900 }
0x2c78   :  { %2903 = vst.msk [vmem:[#allocation3 + $0x8] sm:$0xc] %vm1017_vm11, %v2901_v19  ;;  %3781 = vrot.lane.b32.xlu0 %v6266_v55, %s5399_s15 }
0x2c79   :  { %v3117_v28 = vpop.permute.xlu0 %3116 }
0x2c7a   :  { %3119 = vst.msk [vmem:[#allocation3] sm:$0xc0] %vm1234_vm12, %v3117_v28 }
0x2c7b   :  { %v3342_v32 = vpop.permute.xlu1 %3341 }
0x2c7c   :  { %3344 = vst.msk [vmem:[#allocation3] sm:$0xc0] %vm568_vm13, %v3342_v32 }
0x2c7d   :  { %v2677_v33 = vpop.permute.xlu0 %2676 }
0x2c7e   :  { %2679 = vst.msk [vmem:[#allocation3 + $0x8] sm:$0x30] %vm791_vm14, %v2677_v33 }
0x2c7f   :  { %v3787_v35 = vpop.permute.xlu1 %3786 }
0x2c80   :  { %3789 = vst.msk [vmem:[#allocation3] sm:$0xc] %vm1017_vm11, %v3787_v35 }
0x2c81   :  { %v3122_v40 = vpop.permute.xlu0 %3121 }
0x2c82   :  { %3124 = vst.msk [vmem:[#allocation3 + $0x8] sm:$0x3] %vm1240_vm15, %v3122_v40 }
0x2c83   :  { %3339 = vst.msk [vmem:[#allocation3 + $0x8] sm:$0x3] %vm562_vm7, %v6199_v14  ;;  %v3558_v52 = vpop.permute.xlu1 %3557  ;;  %v5400_v14 = vmov 1983009808  }
0x2c84   :  { %3560 = vst.msk [vmem:[#allocation3 + $0x8] sm:$0xc] %vm785_vm10, %v3558_v52  ;;  %v4113_v41 = vunpack.c.l.s4 %v5400_v14 }
0x2c85   :  { %v3563_v55 = vpop.permute.xlu0 %3562 }
0x2c86   :  { %3565 = vst.msk [vmem:[#allocation3] sm:$0x30] %vm791_vm14, %v3563_v55  ;;  %v4114_v43 = vunpack.c.0.s8 %v4113_v41 }
0x2c88   :  { %v4117_v46 = vsub.s32 %v4114_v43, %v5595_v57 }
0x2ce0   :  { %v4003_v51 = vpop.permute.xlu1 %4002 }
0x2ce1   :  { %4005 = vst.msk [vmem:[#allocation3 + $0x8] sm:$0xc0] %vm1234_vm12, %v4003_v51 }
0x2ce6   :  { %v4008_v56 = vpop.permute.xlu0 %4007 }
0x2ce7   :  { %4010 = vst.msk [vmem:[#allocation3] sm:$0x3] %vm1240_vm15, %v4008_v56 }
0x2cea   :  { %v3782_v62 = vpop.permute.xlu0 %3781 }
0x2ceb   :  { %3784 = vst.msk [vmem:[#allocation3 + $0x8] sm:$0x30] %vm1011_vm9, %v3782_v62 }
0x2cee   :  { %v4011_v42 = vld [vmem:[#allocation3] sm:$0xff] }
0x2cef   :  { %4959 = vmatprep.mubr.msk.f32.mxu1 %vm2166_vm0, %v4011_v42 }
0x2cf2   :  { %v4012_v0 = vld [vmem:[#allocation3 + $0x8] sm:$0xff] }
0x2cf3   :  { %4960 = vmatmul.mubr.msk.f32.vlgmr.msra.gmra.mxu1 %vm2166_vm0, %v4012_v0 }
0x2db3   :  { %v4961_v47 = vpop.f32.mrf.mxu1 }
0x2db4   :  { %v4106_v7 = vadd.f32 %v4961_v47, %v4392_v45 }
0x2db5   :  { %v4100_v9 = vpop.f32.mrf.mxu1 }
0x2db6   :  { %v4128_v10 = vcombine.high %v4106_v7, %v4106_v7  ;;  %v6350_v48 = vrot.slane %v4106_v7, %v4117_v46  ;;  %v4101_v5 = vadd.f32 %v4392_v45, %v4100_v9 }
0x2db8   :  { %v6352_v12 = vrot.slane %v4128_v10, %v4117_v46  ;;  %v6356_v49 = vcombine.high %v6350_v48, %v6350_v48  ;;  %v4182_v13 = vsel %vm4153_vm1, %v6350_v48, -inf  ;;  %v4111_v15 = vcombine.high %v4101_v5, %v4101_v5 }
0x2db9   :  { %v4183_v36 = vrot.slane %v4182_v13, 4  ;;  %v6360_v57 = vrot.slane %v4101_v5, %v4117_v46 }
0x2dba   :  { %v6364_v34 = vcombine.high %v6352_v12, %v6352_v12  ;;  %v4189_v53 = vsel %vm4153_vm1, %v6356_v49, -inf  ;;  %v4196_v39 = vsel %vm4153_vm1, %v6352_v12, -inf  ;;  %v6370_v61 = vrot.slane %v4111_v15, %v4117_v46 }
0x2dbb   :  { %v4184_v17 = vmax.f32 %v4182_v13, %v4183_v36  ;;  %v4190_v18 = vrot.slane %v4189_v53, 4  ;;  %v4197_v20 = vrot.slane %v4196_v39, 4  ;;  %v6374_v63 = vcombine.high %v6360_v57, %v6360_v57 }
0x2dbc   :  { %v4203_v1 = vsel %vm4153_vm1, %v6364_v34, -inf  ;;  %v6380_v22 = vcombine.high %v6370_v61, %v6370_v61  ;;  %v4154_v23 = vsel %vm4153_vm1, %v6360_v57, -inf  ;;  %v4168_v2 = vsel %vm4153_vm1, %v6370_v61, -inf }
0x2dbd   :  { %v4185_v6 = vrot.slane %v4184_v17, 2  ;;  %v4191_v26 = vmax.f32 %v4189_v53, %v4190_v18  ;;  %v4198_v27 = vmax.f32 %v4196_v39, %v4197_v20  ;;  %v4204_v29 = vrot.slane %v4203_v1, 4 }
0x2dbe   :  { %v4155_v30 = vrot.slane %v4154_v23, 4  ;;  %v4161_v31 = vsel %vm4153_vm1, %v6374_v63, -inf  ;;  %v4169_v58 = vrot.slane %v4168_v2, 4  ;;  %v4175_v44 = vsel %vm4153_vm1, %v6380_v22, -inf }
0x2dbf   :  { %v4186_v11 = vmax.f32 %v4184_v17, %v4185_v6  ;;  %v4192_v37 = vrot.slane %v4191_v26, 2  ;;  %v4199_v25 = vrot.slane %v4198_v27, 2  ;;  %v4205_v8 = vmax.f32 %v4203_v1, %v4204_v29 }
0x2dc0   :  { %v4156_v21 = vmax.f32 %v4154_v23, %v4155_v30  ;;  %v4162_v24 = vrot.slane %v4161_v31, 4  ;;  %v4170_v50 = vmax.f32 %v4168_v2, %v4169_v58  ;;  %v4176_v59 = vrot.slane %v4175_v44, 4 }
0x2dc1   :  { %v4187_v4 = vrot.slane %v4186_v11, 1  ;;  %v4193_v60 = vmax.f32 %v4191_v26, %v4192_v37  ;;  %v4200_v16 = vmax.f32 %v4198_v27, %v4199_v25  ;;  %v4206_v38 = vrot.slane %v4205_v8, 2 }
0x2dc2   :  { %v4157_v3 = vrot.slane %v4156_v21, 2  ;;  %v4163_v54 = vmax.f32 %v4161_v31, %v4162_v24  ;;  %v4171_v19 = vrot.slane %v4170_v50, 2  ;;  %v4177_v28 = vmax.f32 %v4175_v44, %v4176_v59 }
0x2dc3   :  { %v4188_v32 = vmax.f32 %v4186_v11, %v4187_v4  ;;  %v4194_v33 = vrot.slane %v4193_v60, 1  ;;  %v4201_v35 = vrot.slane %v4200_v16, 1  ;;  %v4207_v40 = vmax.f32 %v4205_v8, %v4206_v38 }
0x2dc4   :  { %v4158_v52 = vmax.f32 %v4156_v21, %v4157_v3  ;;  %v4164_v55 = vrot.slane %v4163_v54, 2  ;;  %v4172_v51 = vmax.f32 %v4170_v50, %v4171_v19  ;;  %v4178_v56 = vrot.slane %v4177_v28, 2 }
0x2dc5   :  { %v4195_v62 = vmax.f32 %v4193_v60, %v4194_v33  ;;  %v4202_v42 = vmax.f32 %v4200_v16, %v4201_v35  ;;  %v4208_v0 = vrot.slane %v4207_v40, 1  ;;  %v4214_v14 = vsub.f32 %v6350_v48, %v4188_v32 }
0x2dc6   :  { %v4159_v41 = vrot.slane %v4158_v52, 1  ;;  %v4165_v43 = vmax.f32 %v4163_v54, %v4164_v55  ;;  %v4173_v45 = vrot.slane %v4172_v51, 1  ;;  %v4179_v46 = vmax.f32 %v4177_v28, %v4178_v56 }
0x2dc7   :  { %v4209_v47 = vmax.f32 %v4207_v40, %v4208_v0  ;;  %v4215_v7 = vsub.f32 %v6356_v49, %v4195_v62  ;;  %v4216_v9 = vsub.f32 %v6352_v12, %v4202_v42  ;;  %v4226_v10 = vmul.f32 1.442695, %v4214_v14 }
0x2dc8   :  { %v4160_v5 = vmax.f32 %v4158_v52, %v4159_v41  ;;  %v4166_v13 = vrot.slane %v4165_v43, 1  ;;  %v4174_v15 = vmax.f32 %v4172_v51, %v4173_v45  ;;  %v4180_v36 = vrot.slane %v4179_v46, 1 }
0x2dc9   :  { %v4217_v53 = vsub.f32 %v6364_v34, %v4209_v47  ;;  %5234 = vpow2.f32 %v4226_v10  ;;  %v4228_v39 = vmul.f32 1.442695, %v4215_v7  ;;  %v4230_v17 = vmul.f32 1.442695, %v4216_v9 }
0x2dca   :  { %v4167_v48 = vmax.f32 %v4165_v43, %v4166_v13  ;;  %v4181_v18 = vmax.f32 %v4179_v46, %v4180_v36  ;;  %v4210_v20 = vsub.f32 %v6360_v57, %v4160_v5  ;;  %v4212_v1 = vsub.f32 %v6370_v61, %v4174_v15 }
0x2dcb   :  { %5236 = vpow2.f32 %v4228_v39  ;;  %v4232_v49 = vmul.f32 1.442695, %v4217_v53 }
0x2dcc   :  { %5238 = vpow2.f32 %v4230_v17  ;;  %v4211_v12 = vsub.f32 %v6374_v63, %v4167_v48  ;;  %v4213_v23 = vsub.f32 %v6380_v22, %v4181_v18  ;;  %v4218_v2 = vmul.f32 1.442695, %v4210_v20 }
0x2dcd   :  { %5240 = vpow2.f32 %v4232_v49  ;;  %v4222_v6 = vmul.f32 1.442695, %v4212_v1 }
0x2dce   :  { %5242 = vpow2.f32 %v4218_v2  ;;  %v4220_v34 = vmul.f32 1.442695, %v4211_v12  ;;  %v4224_v26 = vmul.f32 1.442695, %v4213_v23 }
0x2dcf   :  { %5244 = vpow2.f32 %v4222_v6 }
0x2dd0   :  { %5246 = vpow2.f32 %v4220_v34 }
0x2dd1   :  { %5248 = vpow2.f32 %v4224_v26 }
0x2dd6   :  { %v6398_v27 = vpop.eup %5234 }
0x2dd7   :  { %v4262_v57 = vsel %vm4153_vm1, %v6398_v27, 0.0 }
0x2dd8   :  { %v6402_v61 = vpop.eup %5236  ;;  %v4263_v29 = vrot.slane %v4262_v57, 4 }
0x2dd9   :  { %v6404_v63 = vpop.eup %5238  ;;  %v4269_v22 = vsel %vm4153_vm1, %v6402_v61, 0.0 }
0x2dda   :  { %v6408_v30 = vpop.eup %5240  ;;  %v4264_v31 = vadd.f32 %v4263_v29, %v4262_v57  ;;  %v4270_v58 = vrot.slane %v4269_v22, 4  ;;  %v4276_v44 = vsel %vm4153_vm1, %v6404_v63, 0.0 }
0x2ddb   :  { %v6412_v11 = vpop.eup %5242  ;;  %v4277_v37 = vrot.slane %v4276_v44, 4  ;;  %v4283_v25 = vsel %vm4153_vm1, %v6408_v30, 0.0 }
0x2ddc   :  { %v6416_v8 = vpop.eup %5244  ;;  %v4265_v21 = vrot.slane %v4264_v31, 2  ;;  %v4271_v24 = vadd.f32 %v4270_v58, %v4269_v22  ;;  %v4284_v50 = vrot.slane %v4283_v25, 4  ;;  %v4234_v59 = vsel %vm4153_vm1, %v6412_v11, 0.0 }
0x2ddd   :  { %v6420_v4 = vpop.eup %5246  ;;  %v4278_v60 = vadd.f32 %v4277_v37, %v4276_v44  ;;  %v4235_v16 = vrot.slane %v4234_v59, 4  ;;  %v4248_v38 = vsel %vm4153_vm1, %v6416_v8, 0.0 }
0x2dde   :  { %v6424_v3 = vpop.eup %5248  ;;  %v4266_v54 = vadd.f32 %v4265_v21, %v4264_v31  ;;  %v4272_v19 = vrot.slane %v4271_v24, 2  ;;  %v4285_v28 = vadd.f32 %v4284_v50, %v4283_v25  ;;  %v4241_v32 = vsel %vm4153_vm1, %v6420_v4, 0.0 }
0x2ddf   :  { %v4279_v33 = vrot.slane %v4278_v60, 2  ;;  %v4236_v35 = vadd.f32 %v4235_v16, %v4234_v59  ;;  %v4242_v40 = vrot.slane %v4241_v32, 4  ;;  %v4249_v52 = vrot.slane %v4248_v38, 4 }
0x2de0   :  { %v4267_v55 = vrot.slane %v4266_v54, 1  ;;  %v4273_v51 = vadd.f32 %v4272_v19, %v4271_v24  ;;  %v4286_v56 = vrot.slane %v4285_v28, 2  ;;  %v4255_v62 = vsel %vm4153_vm1, %v6424_v3, 0.0 }
0x2de1   :  { %v4280_v42 = vadd.f32 %v4279_v33, %v4278_v60  ;;  %v4237_v0 = vrot.slane %v4236_v35, 2  ;;  %v4243_v14 = vadd.f32 %v4242_v40, %v4241_v32  ;;  %v4250_v41 = vadd.f32 %v4249_v52, %v4248_v38 }
0x2de2   :  { %v4268_v43 = vadd.f32 %v4267_v55, %v4266_v54  ;;  %v4274_v45 = vrot.slane %v4273_v51, 1  ;;  %v4287_v46 = vadd.f32 %v4286_v56, %v4285_v28  ;;  %v4256_v47 = vrot.slane %v4255_v62, 4 }
0x2de3   :  { %v4281_v7 = vrot.slane %v4280_v42, 1  ;;  %v4238_v9 = vadd.f32 %v4237_v0, %v4236_v35  ;;  %v4244_v10 = vrot.slane %v4243_v14, 2  ;;  %v4251_v5 = vrot.slane %v4250_v41, 2 }
0x2de4   :  { %v4275_v13 = vadd.f32 %v4274_v45, %v4273_v51  ;;  %v4288_v15 = vrot.slane %v4287_v46, 1  ;;  %5250 = vrcp.f32 %v4268_v43  ;;  %v4257_v36 = vadd.f32 %v4256_v47, %v4255_v62 }
0x2de5   :  { %v4282_v53 = vadd.f32 %v4281_v7, %v4280_v42  ;;  %v4239_v39 = vrot.slane %v4238_v9, 1  ;;  %v4245_v17 = vadd.f32 %v4244_v10, %v4243_v14  ;;  %v4252_v48 = vadd.f32 %v4251_v5, %v4250_v41 }
0x2de6   :  { %v4289_v18 = vadd.f32 %v4288_v15, %v4287_v46  ;;  %5252 = vrcp.f32 %v4275_v13  ;;  %v4258_v20 = vrot.slane %v4257_v36, 2 }
0x2de7   :  { %5254 = vrcp.f32 %v4282_v53  ;;  %v4240_v1 = vadd.f32 %v4239_v39, %v4238_v9  ;;  %v4246_v49 = vrot.slane %v4245_v17, 1  ;;  %v4253_v12 = vrot.slane %v4252_v48, 1 }
0x2de8   :  { %5256 = vrcp.f32 %v4289_v18  ;;  %v4259_v23 = vadd.f32 %v4258_v20, %v4257_v36 }
0x2de9   :  { %v4247_v2 = vadd.f32 %v4246_v49, %v4245_v17  ;;  %v4254_v6 = vadd.f32 %v4253_v12, %v4252_v48  ;;  %5258 = vrcp.f32 %v4240_v1 }
0x2dea   :  { %v4260_v34 = vrot.slane %v4259_v23, 1 }
0x2deb   :  { %5260 = vrcp.f32 %v4247_v2 }
0x2dec   :  { %v4261_v26 = vadd.f32 %v4260_v34, %v4259_v23  ;;  %5262 = vrcp.f32 %v4254_v6 }
0x2dee   :  { %5264 = vrcp.f32 %v4261_v26 }
0x2df1   :  { %v5251_v57 = vpop.eup %5250 }
0x2df2   :  { %v4302_v29 = vmul.f32 %v5251_v57, %v6398_v27 }
0x2df3   :  { %v5253_v22 = vpop.eup %5252 }
0x2df4   :  { %v5255_v31 = vpop.eup %5254  ;;  %v4303_v58 = vmul.f32 %v5253_v22, %v6402_v61  ;;  %4310 = vst.msk [vmem:[%s6482_s12 + $0x8] sm:$0x3] %vm4153_vm1, %v4302_v29 }
0x2df5   :  { %v5257_v44 = vpop.eup %5256  ;;  %v4304_v37 = vmul.f32 %v5255_v31, %v6404_v63 }
0x2df6   :  { %v5259_v25 = vpop.eup %5258  ;;  %v4305_v21 = vmul.f32 %v5257_v44, %v6408_v30  ;;  %4311 = vst.msk [vmem:[%s6482_s12 + $0xa] sm:$0x3] %vm4153_vm1, %v4303_v58 }
0x2df7   :  { %4312 = vst.msk [vmem:[%s6482_s12 + $0xc] sm:$0x3] %vm4153_vm1, %v4304_v37  ;;  %v4298_v27 = vmul.f32 %v5259_v25, %v6412_v11 }
0x2df8   :  { %v5261_v61 = vpop.eup %5260  ;;  %4313 = vst.msk [vmem:[%s6482_s12 + $0xe] sm:$0x3] %vm4153_vm1, %v4305_v21 }
0x2df9   :  { %v5263_v63 = vpop.eup %5262  ;;  %v4299_v30 = vmul.f32 %v5261_v61, %v6420_v4  ;;  %4306 = vst.msk [vmem:[%s6482_s12] sm:$0x3] %vm4153_vm1, %v4298_v27 }
0x2dfa   :  { %v4300_v24 = vmul.f32 %v5263_v63, %v6416_v8 }
0x2dfb   :  { %v5265_v50 = vpop.eup %5264  ;;  %4307 = vst.msk [vmem:[%s6482_s12 + $0x2] sm:$0x3] %vm4153_vm1, %v4299_v30 }
0x2dfc   :  { %v4301_v11 = vmul.f32 %v5265_v50, %v6424_v3  ;;  %4308 = vst.msk [vmem:[%s6482_s12 + $0x4] sm:$0x3] %vm4153_vm1, %v4300_v24 }
0x2dfe   :  { %4309 = vst.msk [vmem:[%s6482_s12 + $0x6] sm:$0x3] %vm4153_vm1, %v4301_v11 }
0x2dff   :  { %4318 = vsyncpa [#allocation5], 1 }
0x2e00   :  { %4319 = vsyncpa [#allocation7], 1 }
0x2e01   :  { %4320 = vsyncpa [#allocation10], 1 }

</bundles_post_ra>
